<compile_context>
chip_gen: v6e
topology: v6e:2x2x1
jax: 0.10.0
libtpu: 0.0.40
codegen_flags: <defaults>
</compile_context>

<pallas_src>
import jax
import jax.numpy as jnp
from jax import lax
from jax.experimental import pallas as pl
from jax.experimental.pallas import tpu as pltpu


def basic_block_kernel(xp_ref, w1_ref, b1_ref, w2_ref, b2_ref, o_ref,
                       pad_ref, col_ref):
    """One batch element per grid step.

    xp_ref : (H+2, W+2, Cin)   zero-padded input, f32              (VMEM)
    w1_ref : (9*Cin, Cout)     conv1 weights, BN1 scale folded, bf16
    b1_ref : (1, Cout)         BN1 bias, f32
    w2_ref : (9*Cout, Cout)    conv2 weights, BN2 scale folded, bf16
    b2_ref : (1, Cout)         BN2 bias, f32
    o_ref  : (H*W, Cout)       output, f32
    pad_ref: (H+2, W+2, Cout)  padded hidden activation scratch    (VMEM)
    col_ref: (H*W, 9*Cin)      im2col patch-matrix scratch         (VMEM)
    """
    Hp, Wp, Cin = xp_ref.shape
    H, W = Hp - 2, Wp - 2
    Cout = o_ref.shape[-1]
    taps = [(kh, kw) for kh in range(3) for kw in range(3)]

    # ---- im2col of the padded input: (H*W, 9*Cin) patch matrix.
    for t, (kh, kw) in enumerate(taps):
        col_ref[:, t * Cin:(t + 1) * Cin] = (
            xp_ref[kh:kh + H, kw:kw + W, :].reshape(H * W, Cin))

    # ---- conv1 (3x3, pad=1, stride=1) + folded BN1 scale: ONE matmul, K=9*Cin.
    acc1 = jnp.dot(col_ref[...].astype(jnp.bfloat16), w1_ref[...],
                   preferred_element_type=jnp.float32)           # (H*W, Cout) f32
    h1 = jnp.maximum(acc1 + b1_ref[...], 0.0)                    # bn1 bias + relu

    # ---- re-pad hidden activation for conv2.  Only the 1-pixel border is
    #      zeroed; the interior is fully overwritten every step.
    pad_ref[0:1, :, :] = jnp.zeros((1, Wp, Cout), jnp.float32)
    pad_ref[H + 1:H + 2, :, :] = jnp.zeros((1, Wp, Cout), jnp.float32)
    pad_ref[:, 0:1, :] = jnp.zeros((Hp, 1, Cout), jnp.float32)
    pad_ref[:, W + 1:W + 2, :] = jnp.zeros((Hp, 1, Cout), jnp.float32)
    pad_ref[1:H + 1, 1:W + 1, :] = h1.reshape(H, W, Cout)

    # ---- im2col of the hidden activation (reuses col_ref; Cin == Cout).
    for t, (kh, kw) in enumerate(taps):
        col_ref[:, t * Cout:(t + 1) * Cout] = (
            pad_ref[kh:kh + H, kw:kw + W, :].reshape(H * W, Cout))

    # ---- conv2 + folded BN2 scale: ONE matmul, K=9*Cout.
    acc2 = jnp.dot(col_ref[...].astype(jnp.bfloat16), w2_ref[...],
                   preferred_element_type=jnp.float32)           # (H*W, Cout) f32

    # ---- bn2 bias + residual (interior of the padded input — no second copy
    #      of x is DMA'd) + relu, all in f32.
    identity = xp_ref[1:1 + H, 1:1 + W, :].reshape(H * W, Cin)
    o_ref[...] = jnp.maximum(acc2 + b2_ref[...] + identity, 0.0).astype(o_ref.dtype)


def basic_block_pallas_nhwc(x_nhwc, w1_hwio, s1, b1, w2_hwio, s2, b2):
    """Forward of BasicBlock (stride=1, downsample=None). NHWC in / NHWC out."""
    x = x_nhwc.astype(jnp.float32)
    N, H, W, Cin = x.shape
    Cout = w1_hwio.shape[-1]
    assert Cin == Cout, "no-downsample BasicBlock requires inplanes == planes"

    # Single padded copy of the input (the residual is read from its interior
    # inside the kernel — no duplicate, unpadded input is passed).
    xp = jnp.pad(x, ((0, 0), (1, 1), (1, 1), (0, 0)))

    # Fold BN scales into the conv weights (host side); reshape HWIO -> matmul
    # form (9*Cin, Cout) matching the (kh, kw, ci) im2col ordering; cast to
    # bf16 for the MXU.  Only the biases go to the kernel as separate inputs.
    s1f = s1.astype(jnp.float32)
    s2f = s2.astype(jnp.float32)
    w1_mat = (w1_hwio.astype(jnp.float32) * s1f[None, None, None, :]
              ).reshape(9 * Cin, Cout).astype(jnp.bfloat16)
    w2_mat = (w2_hwio.astype(jnp.float32) * s2f[None, None, None, :]
              ).reshape(9 * Cout, Cout).astype(jnp.bfloat16)
    b1_2d = b1.reshape(1, Cout).astype(jnp.float32)
    b2_2d = b2.reshape(1, Cout).astype(jnp.float32)

    out2d = pl.pallas_call(
        basic_block_kernel,
        out_shape=jax.ShapeDtypeStruct((N, H * W, Cout), jnp.float32),
        grid_spec=pltpu.PrefetchScalarGridSpec(
            num_scalar_prefetch=0,
            grid=(N,),
            in_specs=[
                pl.BlockSpec((pl.Squeezed(), H + 2, W + 2, Cin),
                             lambda n: (n, 0, 0, 0)),
                pl.BlockSpec((9 * Cin, Cout), lambda n: (0, 0)),
                pl.BlockSpec((1, Cout), lambda n: (0, 0)),
                pl.BlockSpec((9 * Cout, Cout), lambda n: (0, 0)),
                pl.BlockSpec((1, Cout), lambda n: (0, 0)),
            ],
            out_specs=pl.BlockSpec((pl.Squeezed(), H * W, Cout),
                                   lambda n: (n, 0, 0)),
            scratch_shapes=[
                pltpu.VMEM((H + 2, W + 2, Cout), jnp.float32),   # padded hidden
                pltpu.VMEM((H * W, 9 * Cin), jnp.float32),       # im2col patches
            ],
        ),
        compiler_params=pltpu.CompilerParams(
            dimension_semantics=("parallel",)),
    )(xp, w1_mat, b1_2d, w2_mat, b2_2d)

    return out2d.reshape(N, H, W, Cout)


def basic_block_pallas(x_nchw, w1_hwio, s1, b1, w2_hwio, s2, b2):
    """NCHW wrapper for parity with the PyTorch module interface.

    NOTE: in a full network keep activations NHWC and call
    basic_block_pallas_nhwc directly to avoid these boundary transposes.
    """
    x_nhwc = jnp.transpose(x_nchw, (0, 2, 3, 1))
    out = basic_block_pallas_nhwc(x_nhwc, w1_hwio, s1, b1, w2_hwio, s2, b2)
    return jnp.transpose(out, (0, 3, 1, 2))


def ref_basic_block(x_nchw, w1_oihw, s1, b1, w2_oihw, s2, b2):
    """Pure-JAX f32 reference (eval-mode BN folded into scale/bias)."""
    dn = ("NCHW", "OIHW", "NCHW")
    out = lax.conv_general_dilated(x_nchw, w1_oihw, (1, 1),
                                   ((1, 1), (1, 1)), dimension_numbers=dn)
    out = out * s1[None, :, None, None] + b1[None, :, None, None]
    out = jnp.maximum(out, 0.0)
    out = lax.conv_general_dilated(out, w2_oihw, (1, 1),
                                   ((1, 1), (1, 1)), dimension_numbers=dn)
    out = out * s2[None, :, None, None] + b2[None, :, None, None]
    out = jnp.maximum(out + x_nchw, 0.0)
    return out


def fold_bn(gamma, beta, running_mean, running_var, eps=1e-5):
    scale = gamma / jnp.sqrt(running_var + eps)
    bias = beta - running_mean * scale
    return scale, bias


if __name__ == "__main__":
    # BasicBlock(inplanes=4, planes=4, stride=1, downsample=None)
    N, C, H, W = 2, 4, 16, 16
    key = jax.random.PRNGKey(0)
    ks = jax.random.split(key, 9)

    x = jax.random.normal(ks[0], (N, C, H, W), jnp.float32)

    # conv weights in PyTorch OIHW layout, deterministically initialized
    w1_oihw = jax.random.normal(ks[1], (C, C, 3, 3), jnp.float32) * 0.1
    w2_oihw = jax.random.normal(ks[2], (C, C, 3, 3), jnp.float32) * 0.1

    # BatchNorm parameters / running stats
    g1 = 1.0 + 0.1 * jax.random.normal(ks[3], (C,), jnp.float32)
    be1 = 0.1 * jax.random.normal(ks[4], (C,), jnp.float32)
    m1 = 0.1 * jax.random.normal(ks[5], (C,), jnp.float32)
    v1 = jnp.abs(1.0 + 0.1 * jax.random.normal(ks[6], (C,), jnp.float32))
    g2 = 1.0 + 0.1 * jax.random.normal(ks[7], (C,), jnp.float32)
    be2 = 0.1 * jax.random.normal(ks[8], (C,), jnp.float32)
    m2 = jnp.zeros((C,), jnp.float32)
    v2 = jnp.ones((C,), jnp.float32)

    s1, b1 = fold_bn(g1, be1, m1, v1)
    s2, b2 = fold_bn(g2, be2, m2, v2)

    # OIHW -> HWIO for the NHWC kernel
    w1_hwio = jnp.transpose(w1_oihw, (2, 3, 1, 0))
    w2_hwio = jnp.transpose(w2_oihw, (2, 3, 1, 0))

    out = basic_block_pallas(x, w1_hwio, s1, b1, w2_hwio, s2, b2)
    out = jax.block_until_ready(out)

    ref = jax.block_until_ready(
        ref_basic_block(x, w1_oihw, s1, b1, w2_oihw, s2, b2))

    assert out.shape == (N, C, H, W)
    # Tolerance loosened vs. the pure-f32 version: matmul operands are bf16
    # (f32 accumulation + f32 epilogue/residual).
    assert jnp.allclose(out, ref, rtol=2e-2, atol=2e-2), (
        f"max abs err = {float(jnp.max(jnp.abs(out - ref)))}")

    print("KERNEL_OK")
</pallas_src>

<mosaic_0001>
module attributes {stable_mosaic.version = 11 : i64} {
  func.func @basic_block_kernel(%arg0: i32, %arg1: memref<1x18x18x4xf32, #tpu.memory_space<vmem>>, %arg2: memref<36x4xbf16, #tpu.memory_space<vmem>>, %arg3: memref<1x4xf32, #tpu.memory_space<vmem>>, %arg4: memref<36x4xbf16, #tpu.memory_space<vmem>>, %arg5: memref<1x4xf32, #tpu.memory_space<vmem>>, %arg6: memref<1x256x4xf32, #tpu.memory_space<vmem>>, %arg7: memref<18x18x4xf32, #tpu.memory_space<vmem>>, %arg8: memref<256x36xf32, #tpu.memory_space<vmem>>) attributes {dimension_semantics = [#tpu.dimension_semantics<parallel>], iteration_bounds = array<i64: 2>, scalar_prefetch = 0 : i64, scratch_operands = 2 : i64, tpu.core_type = #tpu.core_type<tc>, window_params = [{transform_indices = @transform_0, window_bounds = array<i64: 1, 18, 18, 4>}, {pipeline_mode = #tpu.pipeline_mode<synchronous>, transform_indices = @transform_1, window_bounds = array<i64: 36, 4>}, {pipeline_mode = #tpu.pipeline_mode<synchronous>, transform_indices = @transform_2, window_bounds = array<i64: 1, 4>}, {pipeline_mode = #tpu.pipeline_mode<synchronous>, transform_indices = @transform_3, window_bounds = array<i64: 36, 4>}, {pipeline_mode = #tpu.pipeline_mode<synchronous>, transform_indices = @transform_4, window_bounds = array<i64: 1, 4>}, {transform_indices = @transform_5, window_bounds = array<i64: 1, 256, 4>}]} {
    %c0 = arith.constant 0 : index
    %c0_0 = arith.constant 0 : index
    %c0_1 = arith.constant 0 : index
    %c0_2 = arith.constant 0 : index
    %0 = vector.load %arg1[%c0, %c0_0, %c0_1, %c0_2] : memref<1x18x18x4xf32, #tpu.memory_space<vmem>>, vector<1x16x16x4xf32>
    %1 = vector.shape_cast %0 : vector<1x16x16x4xf32> to vector<16x16x4xf32>
    %2 = vector.shape_cast %1 : vector<16x16x4xf32> to vector<256x4xf32>
    %c0_3 = arith.constant 0 : index
    %c0_4 = arith.constant 0 : index
    %3 = vector.load %arg8[%c0_3, %c0_4] : memref<256x36xf32, #tpu.memory_space<vmem>>, vector<256x4xf32>
    tpu.vector_store %arg8[%c0_3, %c0_4], %2 {strides = array<i32>} : memref<256x36xf32, #tpu.memory_space<vmem>>, vector<256x4xf32>,
    %c0_5 = arith.constant 0 : index
    %c0_6 = arith.constant 0 : index
    %c1 = arith.constant 1 : index
    %c0_7 = arith.constant 0 : index
    %4 = vector.load %arg1[%c0_5, %c0_6, %c1, %c0_7] : memref<1x18x18x4xf32, #tpu.memory_space<vmem>>, vector<1x16x16x4xf32>
    %5 = vector.shape_cast %4 : vector<1x16x16x4xf32> to vector<16x16x4xf32>
    %6 = vector.shape_cast %5 : vector<16x16x4xf32> to vector<256x4xf32>
    %c0_8 = arith.constant 0 : index
    %c4 = arith.constant 4 : index
    %7 = vector.load %arg8[%c0_8, %c4] : memref<256x36xf32, #tpu.memory_space<vmem>>, vector<256x4xf32>
    tpu.vector_store %arg8[%c0_8, %c4], %6 {strides = array<i32>} : memref<256x36xf32, #tpu.memory_space<vmem>>, vector<256x4xf32>,
    %c0_9 = arith.constant 0 : index
    %c0_10 = arith.constant 0 : index
    %c2 = arith.constant 2 : index
    %c0_11 = arith.constant 0 : index
    %8 = vector.load %arg1[%c0_9, %c0_10, %c2, %c0_11] : memref<1x18x18x4xf32, #tpu.memory_space<vmem>>, vector<1x16x16x4xf32>
    %9 = vector.shape_cast %8 : vector<1x16x16x4xf32> to vector<16x16x4xf32>
    %10 = vector.shape_cast %9 : vector<16x16x4xf32> to vector<256x4xf32>
    %c0_12 = arith.constant 0 : index
    %c8 = arith.constant 8 : index
    %11 = vector.load %arg8[%c0_12, %c8] : memref<256x36xf32, #tpu.memory_space<vmem>>, vector<256x4xf32>
    tpu.vector_store %arg8[%c0_12, %c8], %10 {strides = array<i32>} : memref<256x36xf32, #tpu.memory_space<vmem>>, vector<256x4xf32>,
    %c0_13 = arith.constant 0 : index
    %c1_14 = arith.constant 1 : index
    %c0_15 = arith.constant 0 : index
    %c0_16 = arith.constant 0 : index
    %12 = vector.load %arg1[%c0_13, %c1_14, %c0_15, %c0_16] : memref<1x18x18x4xf32, #tpu.memory_space<vmem>>, vector<1x16x16x4xf32>
    %13 = vector.shape_cast %12 : vector<1x16x16x4xf32> to vector<16x16x4xf32>
    %14 = vector.shape_cast %13 : vector<16x16x4xf32> to vector<256x4xf32>
    %c0_17 = arith.constant 0 : index
    %c12 = arith.constant 12 : index
    %15 = vector.load %arg8[%c0_17, %c12] : memref<256x36xf32, #tpu.memory_space<vmem>>, vector<256x4xf32>
    tpu.vector_store %arg8[%c0_17, %c12], %14 {strides = array<i32>} : memref<256x36xf32, #tpu.memory_space<vmem>>, vector<256x4xf32>,
    %c0_18 = arith.constant 0 : index
    %c1_19 = arith.constant 1 : index
    %c1_20 = arith.constant 1 : index
    %c0_21 = arith.constant 0 : index
    %16 = vector.load %arg1[%c0_18, %c1_19, %c1_20, %c0_21] : memref<1x18x18x4xf32, #tpu.memory_space<vmem>>, vector<1x16x16x4xf32>
    %17 = vector.shape_cast %16 : vector<1x16x16x4xf32> to vector<16x16x4xf32>
    %18 = vector.shape_cast %17 : vector<16x16x4xf32> to vector<256x4xf32>
    %c0_22 = arith.constant 0 : index
    %c16 = arith.constant 16 : index
    %19 = vector.load %arg8[%c0_22, %c16] : memref<256x36xf32, #tpu.memory_space<vmem>>, vector<256x4xf32>
    tpu.vector_store %arg8[%c0_22, %c16], %18 {strides = array<i32>} : memref<256x36xf32, #tpu.memory_space<vmem>>, vector<256x4xf32>,
    %c0_23 = arith.constant 0 : index
    %c1_24 = arith.constant 1 : index
    %c2_25 = arith.constant 2 : index
    %c0_26 = arith.constant 0 : index
    %20 = vector.load %arg1[%c0_23, %c1_24, %c2_25, %c0_26] : memref<1x18x18x4xf32, #tpu.memory_space<vmem>>, vector<1x16x16x4xf32>
    %21 = vector.shape_cast %20 : vector<1x16x16x4xf32> to vector<16x16x4xf32>
    %22 = vector.shape_cast %21 : vector<16x16x4xf32> to vector<256x4xf32>
    %c0_27 = arith.constant 0 : index
    %c20 = arith.constant 20 : index
    %23 = vector.load %arg8[%c0_27, %c20] : memref<256x36xf32, #tpu.memory_space<vmem>>, vector<256x4xf32>
    tpu.vector_store %arg8[%c0_27, %c20], %22 {strides = array<i32>} : memref<256x36xf32, #tpu.memory_space<vmem>>, vector<256x4xf32>,
    %c0_28 = arith.constant 0 : index
    %c2_29 = arith.constant 2 : index
    %c0_30 = arith.constant 0 : index
    %c0_31 = arith.constant 0 : index
    %24 = vector.load %arg1[%c0_28, %c2_29, %c0_30, %c0_31] : memref<1x18x18x4xf32, #tpu.memory_space<vmem>>, vector<1x16x16x4xf32>
    %25 = vector.shape_cast %24 : vector<1x16x16x4xf32> to vector<16x16x4xf32>
    %26 = vector.shape_cast %25 : vector<16x16x4xf32> to vector<256x4xf32>
    %c0_32 = arith.constant 0 : index
    %c24 = arith.constant 24 : index
    %27 = vector.load %arg8[%c0_32, %c24] : memref<256x36xf32, #tpu.memory_space<vmem>>, vector<256x4xf32>
    tpu.vector_store %arg8[%c0_32, %c24], %26 {strides = array<i32>} : memref<256x36xf32, #tpu.memory_space<vmem>>, vector<256x4xf32>,
    %c0_33 = arith.constant 0 : index
    %c2_34 = arith.constant 2 : index
    %c1_35 = arith.constant 1 : index
    %c0_36 = arith.constant 0 : index
    %28 = vector.load %arg1[%c0_33, %c2_34, %c1_35, %c0_36] : memref<1x18x18x4xf32, #tpu.memory_space<vmem>>, vector<1x16x16x4xf32>
    %29 = vector.shape_cast %28 : vector<1x16x16x4xf32> to vector<16x16x4xf32>
    %30 = vector.shape_cast %29 : vector<16x16x4xf32> to vector<256x4xf32>
    %c0_37 = arith.constant 0 : index
    %c28 = arith.constant 28 : index
    %31 = vector.load %arg8[%c0_37, %c28] : memref<256x36xf32, #tpu.memory_space<vmem>>, vector<256x4xf32>
    tpu.vector_store %arg8[%c0_37, %c28], %30 {strides = array<i32>} : memref<256x36xf32, #tpu.memory_space<vmem>>, vector<256x4xf32>,
    %c0_38 = arith.constant 0 : index
    %c2_39 = arith.constant 2 : index
    %c2_40 = arith.constant 2 : index
    %c0_41 = arith.constant 0 : index
    %32 = vector.load %arg1[%c0_38, %c2_39, %c2_40, %c0_41] : memref<1x18x18x4xf32, #tpu.memory_space<vmem>>, vector<1x16x16x4xf32>
    %33 = vector.shape_cast %32 : vector<1x16x16x4xf32> to vector<16x16x4xf32>
    %34 = vector.shape_cast %33 : vector<16x16x4xf32> to vector<256x4xf32>
    %c0_42 = arith.constant 0 : index
    %c32 = arith.constant 32 : index
    %35 = vector.load %arg8[%c0_42, %c32] : memref<256x36xf32, #tpu.memory_space<vmem>>, vector<256x4xf32>
    tpu.vector_store %arg8[%c0_42, %c32], %34 {strides = array<i32>} : memref<256x36xf32, #tpu.memory_space<vmem>>, vector<256x4xf32>,
    %c0_43 = arith.constant 0 : index
    %c0_44 = arith.constant 0 : index
    %36 = vector.load %arg8[%c0_43, %c0_44] : memref<256x36xf32, #tpu.memory_space<vmem>>, vector<256x36xf32>
    %37 = arith.truncf %36 : vector<256x36xf32> to vector<256x36xbf16>
    %c0_45 = arith.constant 0 : index
    %c0_46 = arith.constant 0 : index
    %38 = vector.load %arg2[%c0_45, %c0_46] : memref<36x4xbf16, #tpu.memory_space<vmem>>, vector<36x4xbf16>
    %cst = arith.constant dense<0.000000e+00> : vector<256x4xf32>
    %39 = tpu.matmul %37, %38, %cst {dimension_numbers = #tpu.dot_dimension_numbers<[1], [0], [0], [1], [0, 0, 1, 1], [], []>} : vector<256x36xbf16>, vector<36x4xbf16>, vector<256x4xf32> -> vector<256x4xf32>
    %c0_47 = arith.constant 0 : index
    %c0_48 = arith.constant 0 : index
    %40 = vector.load %arg3[%c0_47, %c0_48] : memref<1x4xf32, #tpu.memory_space<vmem>>, vector<1x4xf32>
    %41 = vector.broadcast %40 : vector<1x4xf32> to vector<256x4xf32>
    %42 = arith.addf %39, %41 : vector<256x4xf32>
    %cst_49 = arith.constant 0.000000e+00 : f32
    %43 = vector.broadcast %cst_49 : f32 to vector<256x4xf32>
    %44 = arith.maximumf %42, %43 : vector<256x4xf32>
    %cst_50 = arith.constant 0.000000e+00 : f32
    %45 = vector.broadcast %cst_50 : f32 to vector<1x18x4xf32>
    %c0_51 = arith.constant 0 : index
    %c0_52 = arith.constant 0 : index
    %c0_53 = arith.constant 0 : index
    %46 = vector.load %arg7[%c0_51, %c0_52, %c0_53] : memref<18x18x4xf32, #tpu.memory_space<vmem>>, vector<1x18x4xf32>
    tpu.vector_store %arg7[%c0_51, %c0_52, %c0_53], %45 {strides = array<i32>} : memref<18x18x4xf32, #tpu.memory_space<vmem>>, vector<1x18x4xf32>,
    %cst_54 = arith.constant 0.000000e+00 : f32
    %47 = vector.broadcast %cst_54 : f32 to vector<1x18x4xf32>
    %c17 = arith.constant 17 : index
    %c0_55 = arith.constant 0 : index
    %c0_56 = arith.constant 0 : index
    %48 = vector.load %arg7[%c17, %c0_55, %c0_56] : memref<18x18x4xf32, #tpu.memory_space<vmem>>, vector<1x18x4xf32>
    tpu.vector_store %arg7[%c17, %c0_55, %c0_56], %47 {strides = array<i32>} : memref<18x18x4xf32, #tpu.memory_space<vmem>>, vector<1x18x4xf32>,
    %cst_57 = arith.constant 0.000000e+00 : f32
    %49 = vector.broadcast %cst_57 : f32 to vector<18x1x4xf32>
    %c0_58 = arith.constant 0 : index
    %c0_59 = arith.constant 0 : index
    %c0_60 = arith.constant 0 : index
    %50 = vector.load %arg7[%c0_58, %c0_59, %c0_60] : memref<18x18x4xf32, #tpu.memory_space<vmem>>, vector<18x1x4xf32>
    tpu.vector_store %arg7[%c0_58, %c0_59, %c0_60], %49 {strides = array<i32>} : memref<18x18x4xf32, #tpu.memory_space<vmem>>, vector<18x1x4xf32>,
    %cst_61 = arith.constant 0.000000e+00 : f32
    %51 = vector.broadcast %cst_61 : f32 to vector<18x1x4xf32>
    %c0_62 = arith.constant 0 : index
    %c17_63 = arith.constant 17 : index
    %c0_64 = arith.constant 0 : index
    %52 = vector.load %arg7[%c0_62, %c17_63, %c0_64] : memref<18x18x4xf32, #tpu.memory_space<vmem>>, vector<18x1x4xf32>
    tpu.vector_store %arg7[%c0_62, %c17_63, %c0_64], %51 {strides = array<i32>} : memref<18x18x4xf32, #tpu.memory_space<vmem>>, vector<18x1x4xf32>,
    %53 = vector.shape_cast %44 : vector<256x4xf32> to vector<16x16x4xf32>
    %c1_65 = arith.constant 1 : index
    %c1_66 = arith.constant 1 : index
    %c0_67 = arith.constant 0 : index
    %54 = vector.load %arg7[%c1_65, %c1_66, %c0_67] : memref<18x18x4xf32, #tpu.memory_space<vmem>>, vector<16x16x4xf32>
    tpu.vector_store %arg7[%c1_65, %c1_66, %c0_67], %53 {strides = array<i32>} : memref<18x18x4xf32, #tpu.memory_space<vmem>>, vector<16x16x4xf32>,
    %c0_68 = arith.constant 0 : index
    %c0_69 = arith.constant 0 : index
    %c0_70 = arith.constant 0 : index
    %55 = vector.load %arg7[%c0_68, %c0_69, %c0_70] : memref<18x18x4xf32, #tpu.memory_space<vmem>>, vector<16x16x4xf32>
    %56 = vector.shape_cast %55 : vector<16x16x4xf32> to vector<256x4xf32>
    %c0_71 = arith.constant 0 : index
    %c0_72 = arith.constant 0 : index
    %57 = vector.load %arg8[%c0_71, %c0_72] : memref<256x36xf32, #tpu.memory_space<vmem>>, vector<256x4xf32>
    tpu.vector_store %arg8[%c0_71, %c0_72], %56 {strides = array<i32>} : memref<256x36xf32, #tpu.memory_space<vmem>>, vector<256x4xf32>,
    %c0_73 = arith.constant 0 : index
    %c1_74 = arith.constant 1 : index
    %c0_75 = arith.constant 0 : index
    %58 = vector.load %arg7[%c0_73, %c1_74, %c0_75] : memref<18x18x4xf32, #tpu.memory_space<vmem>>, vector<16x16x4xf32>
    %59 = vector.shape_cast %58 : vector<16x16x4xf32> to vector<256x4xf32>
    %c0_76 = arith.constant 0 : index
    %c4_77 = arith.constant 4 : index
    %60 = vector.load %arg8[%c0_76, %c4_77] : memref<256x36xf32, #tpu.memory_space<vmem>>, vector<256x4xf32>
    tpu.vector_store %arg8[%c0_76, %c4_77], %59 {strides = array<i32>} : memref<256x36xf32, #tpu.memory_space<vmem>>, vector<256x4xf32>,
    %c0_78 = arith.constant 0 : index
    %c2_79 = arith.constant 2 : index
    %c0_80 = arith.constant 0 : index
    %61 = vector.load %arg7[%c0_78, %c2_79, %c0_80] : memref<18x18x4xf32, #tpu.memory_space<vmem>>, vector<16x16x4xf32>
    %62 = vector.shape_cast %61 : vector<16x16x4xf32> to vector<256x4xf32>
    %c0_81 = arith.constant 0 : index
    %c8_82 = arith.constant 8 : index
    %63 = vector.load %arg8[%c0_81, %c8_82] : memref<256x36xf32, #tpu.memory_space<vmem>>, vector<256x4xf32>
    tpu.vector_store %arg8[%c0_81, %c8_82], %62 {strides = array<i32>} : memref<256x36xf32, #tpu.memory_space<vmem>>, vector<256x4xf32>,
    %c1_83 = arith.constant 1 : index
    %c0_84 = arith.constant 0 : index
    %c0_85 = arith.constant 0 : index
    %64 = vector.load %arg7[%c1_83, %c0_84, %c0_85] : memref<18x18x4xf32, #tpu.memory_space<vmem>>, vector<16x16x4xf32>
    %65 = vector.shape_cast %64 : vector<16x16x4xf32> to vector<256x4xf32>
    %c0_86 = arith.constant 0 : index
    %c12_87 = arith.constant 12 : index
    %66 = vector.load %arg8[%c0_86, %c12_87] : memref<256x36xf32, #tpu.memory_space<vmem>>, vector<256x4xf32>
    tpu.vector_store %arg8[%c0_86, %c12_87], %65 {strides = array<i32>} : memref<256x36xf32, #tpu.memory_space<vmem>>, vector<256x4xf32>,
    %c1_88 = arith.constant 1 : index
    %c1_89 = arith.constant 1 : index
    %c0_90 = arith.constant 0 : index
    %67 = vector.load %arg7[%c1_88, %c1_89, %c0_90] : memref<18x18x4xf32, #tpu.memory_space<vmem>>, vector<16x16x4xf32>
    %68 = vector.shape_cast %67 : vector<16x16x4xf32> to vector<256x4xf32>
    %c0_91 = arith.constant 0 : index
    %c16_92 = arith.constant 16 : index
    %69 = vector.load %arg8[%c0_91, %c16_92] : memref<256x36xf32, #tpu.memory_space<vmem>>, vector<256x4xf32>
    tpu.vector_store %arg8[%c0_91, %c16_92], %68 {strides = array<i32>} : memref<256x36xf32, #tpu.memory_space<vmem>>, vector<256x4xf32>,
    %c1_93 = arith.constant 1 : index
    %c2_94 = arith.constant 2 : index
    %c0_95 = arith.constant 0 : index
    %70 = vector.load %arg7[%c1_93, %c2_94, %c0_95] : memref<18x18x4xf32, #tpu.memory_space<vmem>>, vector<16x16x4xf32>
    %71 = vector.shape_cast %70 : vector<16x16x4xf32> to vector<256x4xf32>
    %c0_96 = arith.constant 0 : index
    %c20_97 = arith.constant 20 : index
    %72 = vector.load %arg8[%c0_96, %c20_97] : memref<256x36xf32, #tpu.memory_space<vmem>>, vector<256x4xf32>
    tpu.vector_store %arg8[%c0_96, %c20_97], %71 {strides = array<i32>} : memref<256x36xf32, #tpu.memory_space<vmem>>, vector<256x4xf32>,
    %c2_98 = arith.constant 2 : index
    %c0_99 = arith.constant 0 : index
    %c0_100 = arith.constant 0 : index
    %73 = vector.load %arg7[%c2_98, %c0_99, %c0_100] : memref<18x18x4xf32, #tpu.memory_space<vmem>>, vector<16x16x4xf32>
    %74 = vector.shape_cast %73 : vector<16x16x4xf32> to vector<256x4xf32>
    %c0_101 = arith.constant 0 : index
    %c24_102 = arith.constant 24 : index
    %75 = vector.load %arg8[%c0_101, %c24_102] : memref<256x36xf32, #tpu.memory_space<vmem>>, vector<256x4xf32>
    tpu.vector_store %arg8[%c0_101, %c24_102], %74 {strides = array<i32>} : memref<256x36xf32, #tpu.memory_space<vmem>>, vector<256x4xf32>,
    %c2_103 = arith.constant 2 : index
    %c1_104 = arith.constant 1 : index
    %c0_105 = arith.constant 0 : index
    %76 = vector.load %arg7[%c2_103, %c1_104, %c0_105] : memref<18x18x4xf32, #tpu.memory_space<vmem>>, vector<16x16x4xf32>
    %77 = vector.shape_cast %76 : vector<16x16x4xf32> to vector<256x4xf32>
    %c0_106 = arith.constant 0 : index
    %c28_107 = arith.constant 28 : index
    %78 = vector.load %arg8[%c0_106, %c28_107] : memref<256x36xf32, #tpu.memory_space<vmem>>, vector<256x4xf32>
    tpu.vector_store %arg8[%c0_106, %c28_107], %77 {strides = array<i32>} : memref<256x36xf32, #tpu.memory_space<vmem>>, vector<256x4xf32>,
    %c2_108 = arith.constant 2 : index
    %c2_109 = arith.constant 2 : index
    %c0_110 = arith.constant 0 : index
    %79 = vector.load %arg7[%c2_108, %c2_109, %c0_110] : memref<18x18x4xf32, #tpu.memory_space<vmem>>, vector<16x16x4xf32>
    %80 = vector.shape_cast %79 : vector<16x16x4xf32> to vector<256x4xf32>
    %c0_111 = arith.constant 0 : index
    %c32_112 = arith.constant 32 : index
    %81 = vector.load %arg8[%c0_111, %c32_112] : memref<256x36xf32, #tpu.memory_space<vmem>>, vector<256x4xf32>
    tpu.vector_store %arg8[%c0_111, %c32_112], %80 {strides = array<i32>} : memref<256x36xf32, #tpu.memory_space<vmem>>, vector<256x4xf32>,
    %c0_113 = arith.constant 0 : index
    %c0_114 = arith.constant 0 : index
    %82 = vector.load %arg8[%c0_113, %c0_114] : memref<256x36xf32, #tpu.memory_space<vmem>>, vector<256x36xf32>
    %83 = arith.truncf %82 : vector<256x36xf32> to vector<256x36xbf16>
    %c0_115 = arith.constant 0 : index
    %c0_116 = arith.constant 0 : index
    %84 = vector.load %arg4[%c0_115, %c0_116] : memref<36x4xbf16, #tpu.memory_space<vmem>>, vector<36x4xbf16>
    %cst_117 = arith.constant dense<0.000000e+00> : vector<256x4xf32>
    %85 = tpu.matmul %83, %84, %cst_117 {dimension_numbers = #tpu.dot_dimension_numbers<[1], [0], [0], [1], [0, 0, 1, 1], [], []>} : vector<256x36xbf16>, vector<36x4xbf16>, vector<256x4xf32> -> vector<256x4xf32>
    %c0_118 = arith.constant 0 : index
    %c1_119 = arith.constant 1 : index
    %c1_120 = arith.constant 1 : index
    %c0_121 = arith.constant 0 : index
    %86 = vector.load %arg1[%c0_118, %c1_119, %c1_120, %c0_121] : memref<1x18x18x4xf32, #tpu.memory_space<vmem>>, vector<1x16x16x4xf32>
    %87 = vector.shape_cast %86 : vector<1x16x16x4xf32> to vector<16x16x4xf32>
    %88 = vector.shape_cast %87 : vector<16x16x4xf32> to vector<256x4xf32>
    %c0_122 = arith.constant 0 : index
    %c0_123 = arith.constant 0 : index
    %89 = vector.load %arg5[%c0_122, %c0_123] : memref<1x4xf32, #tpu.memory_space<vmem>>, vector<1x4xf32>
    %90 = vector.broadcast %89 : vector<1x4xf32> to vector<256x4xf32>
    %91 = arith.addf %85, %90 : vector<256x4xf32>
    %92 = arith.addf %91, %88 : vector<256x4xf32>
    %cst_124 = arith.constant 0.000000e+00 : f32
    %93 = vector.broadcast %cst_124 : f32 to vector<256x4xf32>
    %94 = arith.maximumf %92, %93 : vector<256x4xf32>
    %c0_125 = arith.constant 0 : index
    %c0_126 = arith.constant 0 : index
    %c0_127 = arith.constant 0 : index
    %95 = vector.load %arg6[%c0_125, %c0_126, %c0_127] : memref<1x256x4xf32, #tpu.memory_space<vmem>>, vector<1x256x4xf32>
    %96 = vector.shape_cast %95 : vector<1x256x4xf32> to vector<256x4xf32>
    %97 = vector.shape_cast %94 : vector<256x4xf32> to vector<1x256x4xf32>
    tpu.vector_store %arg6[%c0_125, %c0_126, %c0_127], %97 {strides = array<i32>} : memref<1x256x4xf32, #tpu.memory_space<vmem>>, vector<1x256x4xf32>,
    return
  }
  func.func @transform_0(%arg0: i32) -> (i32, i32, i32, i32) {
    %c0_i32 = arith.constant 0 : i32
    %c0_i32_0 = arith.constant 0 : i32
    %c0_i32_1 = arith.constant 0 : i32
    %c0_i32_2 = arith.constant 0 : i32
    return %arg0, %c0_i32, %c0_i32_0, %c0_i32_1 : i32, i32, i32, i32
  }
  func.func @transform_1(%arg0: i32) -> (i32, i32) {
    %c0_i32 = arith.constant 0 : i32
    %c0_i32_0 = arith.constant 0 : i32
    %c0_i32_1 = arith.constant 0 : i32
    return %c0_i32, %c0_i32_0 : i32, i32
  }
  func.func @transform_2(%arg0: i32) -> (i32, i32) {
    %c0_i32 = arith.constant 0 : i32
    %c0_i32_0 = arith.constant 0 : i32
    %c0_i32_1 = arith.constant 0 : i32
    return %c0_i32, %c0_i32_0 : i32, i32
  }
  func.func @transform_3(%arg0: i32) -> (i32, i32) {
    %c0_i32 = arith.constant 0 : i32
    %c0_i32_0 = arith.constant 0 : i32
    %c0_i32_1 = arith.constant 0 : i32
    return %c0_i32, %c0_i32_0 : i32, i32
  }
  func.func @transform_4(%arg0: i32) -> (i32, i32) {
    %c0_i32 = arith.constant 0 : i32
    %c0_i32_0 = arith.constant 0 : i32
    %c0_i32_1 = arith.constant 0 : i32
    return %c0_i32, %c0_i32_0 : i32, i32
  }
  func.func @transform_5(%arg0: i32) -> (i32, i32, i32) {
    %c0_i32 = arith.constant 0 : i32
    %c0_i32_0 = arith.constant 0 : i32
    %c0_i32_1 = arith.constant 0 : i32
    return %arg0, %c0_i32, %c0_i32_0 : i32, i32, i32
  }
}

</mosaic_0001>

<bundles_post_ra>
// kernel: tpu_custom_call.1
= control target key start
LH: loop header
LB: loop body
LE: loop exit
PB: predicated region body
PF: predicated region fallthrough
CT: control target
= control target key end

     0   :  { %s4769_s18 = smov 0   ;;  %s7011_s0 = inlined_call_operand.vmem [shape: f32[2,18,18,4], index: 0, kind: input, shape index: {}]   ;;  %s7012_s1 = inlined_call_operand.vmem [shape: bf16[36,4], index: 1, kind: input, shape index: {}]   ;;  %s7013_s2 = inlined_call_operand.vmem [shape: f32[1,4], index: 2, kind: input, shape index: {}]   ;;  %s7014_s3 = inlined_call_operand.vmem [shape: bf16[36,4], index: 3, kind: input, shape index: {}]   ;;  %s7015_s4 = inlined_call_operand.vmem [shape: f32[1,4], index: 4, kind: input, shape index: {}]   ;;  %s7016_s5 = inlined_call_operand.vmem [shape: f32[2,256,4], index: 5, kind: output, shape index: {}]  }
   0x1 LB: > { %s4307_s19 = sadd.s32 4294967295, %s4728_s18   ;;  %p4311_p0 = scmp.ge.s32.totalorder %s4728_s18, 1  ;;  %s4728_s18 = sphi %s4769_s18, %s15_s18  }
   0x2   : > { %p187_p1 = scmp.lt.s32.totalorder %s4728_s18, 3 }
   0x4   : > { %p188_p2 = pnand %p4311_p0, %p187_p1 }
   0x6   : > { %191 = sbr.rel (%p188_p2) target bundleno = 1641 (0x669), region = 40 }
   0xb   : > { %p215_p3 = scmp.lt.s32.totalorder %s4307_s19, 1  ;;  %s4730_s24 = smov 4   ;;  %vm258_vm0 = vcmask 31744   ;;  %vm451_vm1 = vcmask 64544   ;;  %vm644_vm2 = vcmask 97344   ;;  %vm838_vm3 = vcmask 130144  }
   0xc   : > { %s4731_s25 = smov 8   ;;  %s4732_s26 = smov 12   ;;  %vm1031_vm4 = vcmask 162944   ;;  %vm1224_vm5 = vcmask 195744   ;;  %vm1961_vm6 = vcmask 1041408   ;;  %vm1418_vm7 = vcmask 228544  }
   0xd   : > { %s7108_s19 = smov (!%p215_p3, %s4307_s19), 1  ;;  %s4733_s27 = smov 16   ;;  %vm1611_vm8 = vcmask 261344   ;;  %vm1804_vm9 = vcmask 294144   ;;  %vm1912_vm10 = vcmask 293888   ;;  %vm2166_vm11 = vcmask 24576  }
   0xe   : > { %s4698_s20 = smul.u32 432, %s7108_s19  ;;  %s4734_s28 = smov 20   ;;  %vm2160_vm12 = vcmask 25600  }
   0xf   : > { %s4735_s29 = smov 24   ;;  %s4736_s30 = smov 28  }
  0x10   : > { %s4783_s23 = scalar_lea.vmem %s7011_s0, %s4698_s20  ;;  %s4737_s12 = smov 32  }
  0x11   : > { %v4786_v0 = vld [vmem:[%s4783_s23 + $0x19] sm:$0xff]  ;;  %v291_v1 = vld [vmem:[%s4783_s23 + $0x1] sm:$0xff]  ;;  %v292_v3 = vld [vmem:[%s4783_s23 + $0x9] sm:$0xff] }
  0x12   : > { %359 = vrot.lane.b32.xlu1 %v4786_v0, %s4730_s24  ;;  %355 = vrot.lane.b32.xlu0 %v291_v1, %s4730_s24  ;;  %v4793_v2 = vld [vmem:[%s4783_s23 + $0x21] sm:$0xff]  ;;  %v4800_v4 = vld [vmem:[%s4783_s23 + $0x39] sm:$0xff] }
  0x13   : > { %v4803_v5 = vld [vmem:[%s4783_s23 + $0x31] sm:$0xff]  ;;  %v4813_v7 = vld [vmem:[%s4783_s23 + $0x49] sm:$0xff]  ;;  %v4823_v9 = vld [vmem:[%s4783_s23 + $0x61] sm:$0xff] }
  0x14   : > { %v4810_v6 = vld [vmem:[%s4783_s23 + $0x51] sm:$0xff]  ;;  %v4820_v8 = vld [vmem:[%s4783_s23 + $0x69] sm:$0xff]  ;;  %v4830_v10 = vld [vmem:[%s4783_s23 + $0x81] sm:$0xff] }
  0x15   : > { %v4833_v11 = vld [vmem:[%s4783_s23 + $0x79] sm:$0xff]  ;;  %v4847_v15 = vld [vmem:[%s4783_s23 + $0x91] sm:$0xff]  ;;  %v227_v17 = vld [vmem:[%s4783_s23 + $0x8] sm:$0xff] }
  0x16   : > { %361 = vrot.lane.b32.xlu1 %v4793_v2, %s4730_s24  ;;  %357 = vrot.lane.b32.xlu0 %v292_v3, %s4730_s24  ;;  %v4840_v12 = vld [vmem:[%s4783_s23 + $0x18] sm:$0xff]  ;;  %v226_v13 = vld [vmem:[%s4783_s23] sm:$0xff]  ;;  %260 = vst.msk [vmem:[#allocation3 + $0x8] sm:$0xff] %vm258_vm0, %v227_v17 }
  0x17   : > { %v4844_v14 = vld [vmem:[%s4783_s23 + $0x99] sm:$0xff]  ;;  %261 = vst.msk [vmem:[#allocation3 + $0x10] sm:$0xff] %vm258_vm0, %v4840_v12  ;;  %259 = vst.msk [vmem:[#allocation3] sm:$0xff] %vm258_vm0, %v226_v13  ;;  %v4859_v18 = vld [vmem:[%s4783_s23 + $0xb1] sm:$0xff] }
  0x18   : > { %v4853_v16 = vld [vmem:[%s4783_s23 + $0x20] sm:$0xff]  ;;  %v4863_v19 = vld [vmem:[%s4783_s23 + $0x38] sm:$0xff]  ;;  %v4866_v20 = vld [vmem:[%s4783_s23 + $0x30] sm:$0xff] }
  0x19   : > { %262 = vst.msk [vmem:[#allocation3 + $0x18] sm:$0xff] %vm258_vm0, %v4853_v16  ;;  %v4873_v21 = vld [vmem:[%s4783_s23 + $0xa9] sm:$0xff]  ;;  %264 = vst.msk [vmem:[#allocation3 + $0x28] sm:$0xff] %vm258_vm0, %v4863_v19  ;;  %v4891_v25 = vld [vmem:[%s4783_s23 + $0x60] sm:$0xff] }
  0x1a   : > { %365 = vrot.lane.b32.xlu1 %v4800_v4, %s4730_s24  ;;  %363 = vrot.lane.b32.xlu0 %v4803_v5, %s4730_s24  ;;  %263 = vst.msk [vmem:[#allocation3 + $0x20] sm:$0xff] %vm258_vm0, %v4866_v20  ;;  %v4880_v22 = vld [vmem:[%s4783_s23 + $0x50] sm:$0xff]  ;;  %v4885_v23 = vld [vmem:[%s4783_s23 + $0x48] sm:$0xff]  ;;  %267 = vst.msk [vmem:[#allocation3 + $0x40] sm:$0xff] %vm258_vm0, %v4891_v25 }
  0x1b   : > { %266 = vst.msk [vmem:[#allocation3 + $0x38] sm:$0xff] %vm258_vm0, %v4880_v22  ;;  %v4888_v24 = vld [vmem:[%s4783_s23 + $0x68] sm:$0xff]  ;;  %265 = vst.msk [vmem:[#allocation3 + $0x30] sm:$0xff] %vm258_vm0, %v4885_v23  ;;  %v4900_v26 = vld [vmem:[%s4783_s23 + $0x80] sm:$0xff] }
  0x1c   : > { %268 = vst.msk [vmem:[#allocation3 + $0x48] sm:$0xff] %vm258_vm0, %v4888_v24  ;;  %v4903_v27 = vld [vmem:[%s4783_s23 + $0x78] sm:$0xff]  ;;  %v4909_v29 = vld [vmem:[%s4783_s23 + $0xc9] sm:$0xff]  ;;  %v4912_v30 = vld [vmem:[%s4783_s23 + $0xc1] sm:$0xff] }
  0x1d   : > { %v4906_v28 = vld [vmem:[%s4783_s23 + $0x98] sm:$0xff]  ;;  %270 = vst.msk [vmem:[#allocation3 + $0x58] sm:$0xff] %vm258_vm0, %v4900_v26  ;;  %269 = vst.msk [vmem:[#allocation3 + $0x50] sm:$0xff] %vm258_vm0, %v4903_v27  ;;  %v4921_v31 = vld [vmem:[%s4783_s23 + $0x90] sm:$0xff] }
  0x1e   : > { %369 = vrot.lane.b32.xlu1 %v4810_v6, %s4730_s24  ;;  %367 = vrot.lane.b32.xlu0 %v4813_v7, %s4730_s24  ;;  %272 = vst.msk [vmem:[#allocation3 + $0x68] sm:$0xff] %vm258_vm0, %v4906_v28  ;;  %v4924_v32 = vld [vmem:[%s4783_s23 + $0xb0] sm:$0xff]  ;;  %v4927_v33 = vld [vmem:[%s4783_s23 + $0xa8] sm:$0xff]  ;;  %271 = vst.msk [vmem:[#allocation3 + $0x60] sm:$0xff] %vm258_vm0, %v4921_v31 }
  0x1f   : > { %274 = vst.msk [vmem:[#allocation3 + $0x78] sm:$0xff] %vm258_vm0, %v4924_v32  ;;  %273 = vst.msk [vmem:[#allocation3 + $0x70] sm:$0xff] %vm258_vm0, %v4927_v33  ;;  %v4940_v34 = vld [vmem:[%s4783_s23 + $0xc8] sm:$0xff]  ;;  %v4943_v35 = vld [vmem:[%s4783_s23 + $0xc0] sm:$0xff] }
  0x20   : > { %276 = vst.msk [vmem:[#allocation3 + $0x88] sm:$0xff] %vm258_vm0, %v4940_v34  ;;  %275 = vst.msk [vmem:[#allocation3 + $0x80] sm:$0xff] %vm258_vm0, %v4943_v35  ;;  %v4950_v36 = vld [vmem:[%s4783_s23 + $0xe0] sm:$0xff]  ;;  %v4953_v37 = vld [vmem:[%s4783_s23 + $0xd8] sm:$0xff] }
  0x21   : > { %v4956_v38 = vld [vmem:[%s4783_s23 + $0xf8] sm:$0xff]  ;;  %278 = vst.msk [vmem:[#allocation3 + $0x98] sm:$0xff] %vm258_vm0, %v4950_v36  ;;  %277 = vst.msk [vmem:[#allocation3 + $0x90] sm:$0xff] %vm258_vm0, %v4953_v37  ;;  %v4965_v39 = vld [vmem:[%s4783_s23 + $0xf0] sm:$0xff] }
  0x22   : > { %373 = vrot.lane.b32.xlu1 %v4820_v8, %s4730_s24  ;;  %371 = vrot.lane.b32.xlu0 %v4823_v9, %s4730_s24  ;;  %280 = vst.msk [vmem:[#allocation3 + $0xa8] sm:$0xff] %vm258_vm0, %v4956_v38  ;;  %v4968_v40 = vld [vmem:[%s4783_s23 + $0x110] sm:$0xff]  ;;  %v4971_v41 = vld [vmem:[%s4783_s23 + $0x108] sm:$0xff]  ;;  %279 = vst.msk [vmem:[#allocation3 + $0xa0] sm:$0xff] %vm258_vm0, %v4965_v39 }
  0x23   : > { %282 = vst.msk [vmem:[#allocation3 + $0xb8] sm:$0xff] %vm258_vm0, %v4968_v40  ;;  %281 = vst.msk [vmem:[#allocation3 + $0xb0] sm:$0xff] %vm258_vm0, %v4971_v41  ;;  %v4984_v42 = vld [vmem:[%s4783_s23 + $0xe1] sm:$0xff]  ;;  %v4987_v43 = vld [vmem:[%s4783_s23 + $0xd9] sm:$0xff] }
  0x24   : > { %v4990_v44 = vld [vmem:[%s4783_s23 + $0x128] sm:$0xff]  ;;  %v4993_v45 = vld [vmem:[%s4783_s23 + $0x120] sm:$0xff]  ;;  %v5007_v47 = vld [vmem:[%s4783_s23 + $0xf1] sm:$0xff] }
  0x25   : > { %284 = vst.msk [vmem:[#allocation3 + $0xc8] sm:$0xff] %vm258_vm0, %v4990_v44  ;;  %283 = vst.msk [vmem:[#allocation3 + $0xc0] sm:$0xff] %vm258_vm0, %v4993_v45  ;;  %v5004_v46 = vld [vmem:[%s4783_s23 + $0xf9] sm:$0xff]  ;;  %v5024_v50 = vld [vmem:[%s4783_s23 + $0x111] sm:$0xff] }
  0x26   : > { %377 = vrot.lane.b32.xlu1 %v4830_v10, %s4730_s24  ;;  %375 = vrot.lane.b32.xlu0 %v4833_v11, %s4730_s24  ;;  %v5010_v48 = vld [vmem:[%s4783_s23 + $0x140] sm:$0xff]  ;;  %v5013_v49 = vld [vmem:[%s4783_s23 + $0x138] sm:$0xff] }
  0x27   : > { %286 = vst.msk [vmem:[#allocation3 + $0xd8] sm:$0xff] %vm258_vm0, %v5010_v48  ;;  %285 = vst.msk [vmem:[#allocation3 + $0xd0] sm:$0xff] %vm258_vm0, %v5013_v49  ;;  %v5027_v51 = vld [vmem:[%s4783_s23 + $0x109] sm:$0xff]  ;;  %v5030_v52 = vld [vmem:[%s4783_s23 + $0x158] sm:$0xff] }
  0x28   : > { %v5033_v53 = vld [vmem:[%s4783_s23 + $0x150] sm:$0xff]  ;;  %288 = vst.msk [vmem:[#allocation3 + $0xe8] sm:$0xff] %vm258_vm0, %v5030_v52  ;;  %v5047_v55 = vld [vmem:[%s4783_s23 + $0x121] sm:$0xff]  ;;  %v5067_v59 = vld [vmem:[%s4783_s23 + $0x139] sm:$0xff] }
  0x29   : > { %287 = vst.msk [vmem:[#allocation3 + $0xe0] sm:$0xff] %vm258_vm0, %v5033_v53  ;;  %v5044_v54 = vld [vmem:[%s4783_s23 + $0x129] sm:$0xff]  ;;  %v5064_v58 = vld [vmem:[%s4783_s23 + $0x141] sm:$0xff]  ;;  %v5074_v60 = vld [vmem:[%s4783_s23 + $0x159] sm:$0xff] }
  0x2a   : > { %381 = vrot.lane.b32.xlu1 %v4844_v14, %s4730_s24  ;;  %379 = vrot.lane.b32.xlu0 %v4847_v15, %s4730_s24  ;;  %v5050_v56 = vld [vmem:[%s4783_s23 + $0x170] sm:$0xff]  ;;  %v5053_v57 = vld [vmem:[%s4783_s23 + $0x168] sm:$0xff]  ;;  %7047 = vst [vmem:[#allocation4_spill] sm:$0xff] %v5074_v60 }
  0x2b   : > { %290 = vst.msk [vmem:[#allocation3 + $0xf8] sm:$0xff] %vm258_vm0, %v5050_v56  ;;  %289 = vst.msk [vmem:[#allocation3 + $0xf0] sm:$0xff] %vm258_vm0, %v5053_v57  ;;  %v5077_v61 = vld [vmem:[%s4783_s23 + $0x151] sm:$0xff]  ;;  %v5087_v63 = vld [vmem:[%s4783_s23 + $0x169] sm:$0xff] }
  0x2c   : > { %7048 = vst [vmem:[#allocation5_spill] sm:$0xff] %v5077_v61  ;;  %v5084_v62 = vld [vmem:[%s4783_s23 + $0x171] sm:$0xff]  ;;  %7050 = vst [vmem:[#allocation7_spill] sm:$0xff] %v5087_v63  ;;  %v484_v3 = vld [vmem:[%s4783_s23 + $0x2] sm:$0xff] }
  0x2d   : > { %7049 = vst [vmem:[#allocation6_spill] sm:$0xff] %v5084_v62  ;;  %v485_v1 = vld [vmem:[%s4783_s23 + $0xa] sm:$0xff]  ;;  %v5098_v13 = vld [vmem:[%s4783_s23 + $0x22] sm:$0xff]  ;;  %v5101_v17 = vld [vmem:[%s4783_s23 + $0x1a] sm:$0xff] }
  0x2e   : > { %385 = vrot.lane.b32.xlu1 %v4859_v18, %s4730_s24  ;;  %383 = vrot.lane.b32.xlu0 %v4873_v21, %s4730_s24  ;;  %7051 = vst [vmem:[#allocation8_spill] sm:$0xff] %v5098_v13  ;;  %7052 = vst [vmem:[#allocation9_spill] sm:$0xff] %v5101_v17 }
  0x32   : > { %389 = vrot.lane.b32.xlu1 %v4909_v29, %s4730_s24  ;;  %387 = vrot.lane.b32.xlu0 %v4912_v30, %s4730_s24 }
  0x36   : > { %393 = vrot.lane.b32.xlu1 %v4984_v42, %s4730_s24  ;;  %391 = vrot.lane.b32.xlu0 %v4987_v43, %s4730_s24 }
  0x3a   : > { %397 = vrot.lane.b32.xlu1 %v5004_v46, %s4730_s24  ;;  %395 = vrot.lane.b32.xlu0 %v5007_v47, %s4730_s24 }
  0x3e   : > { %401 = vrot.lane.b32.xlu1 %v5024_v50, %s4730_s24  ;;  %399 = vrot.lane.b32.xlu0 %v5027_v51, %s4730_s24 }
  0x42   : > { %405 = vrot.lane.b32.xlu1 %v5044_v54, %s4730_s24  ;;  %403 = vrot.lane.b32.xlu0 %v5047_v55, %s4730_s24 }
  0x46   : > { %409 = vrot.lane.b32.xlu1 %v5064_v58, %s4730_s24  ;;  %407 = vrot.lane.b32.xlu0 %v5067_v59, %s4730_s24 }
  0x4a   : > { %413 = vrot.lane.b32.xlu1 %v5074_v60, %s4730_s24  ;;  %411 = vrot.lane.b32.xlu0 %v5077_v61, %s4730_s24 }
  0x4e   : > { %417 = vrot.lane.b32.xlu1 %v5084_v62, %s4730_s24  ;;  %415 = vrot.lane.b32.xlu0 %v5087_v63, %s4730_s24  ;;  %v5108_v63 = vld [vmem:[%s4783_s23 + $0x3a] sm:$0xff]  ;;  %v5111_v62 = vld [vmem:[%s4783_s23 + $0x32] sm:$0xff] }
  0x4f   : > { %7053 = vst [vmem:[#allocation10_spill] sm:$0xff] %v5108_v63  ;;  %7054 = vst [vmem:[#allocation11_spill] sm:$0xff] %v5111_v62 }
  0x52   : > { %550 = vrot.lane.b32.xlu1 %v485_v1, %s4731_s25  ;;  %548 = vrot.lane.b32.xlu0 %v484_v3, %s4731_s25  ;;  %v5118_v1 = vld [vmem:[%s4783_s23 + $0x52] sm:$0xff]  ;;  %v5121_v3 = vld [vmem:[%s4783_s23 + $0x4a] sm:$0xff] }
  0x53   : > { %7055 = vst [vmem:[#allocation12_spill] sm:$0xff] %v5118_v1  ;;  %7056 = vst [vmem:[#allocation13_spill] sm:$0xff] %v5121_v3 }
  0x56   : > { %554 = vrot.lane.b32.xlu1 %v5098_v13, %s4731_s25  ;;  %552 = vrot.lane.b32.xlu0 %v5101_v17, %s4731_s25  ;;  %v5128_v17 = vld [vmem:[%s4783_s23 + $0x6a] sm:$0xff]  ;;  %v5131_v13 = vld [vmem:[%s4783_s23 + $0x62] sm:$0xff] }
  0x57   : > { %7057 = vst [vmem:[#allocation14_spill] sm:$0xff] %v5128_v17  ;;  %7058 = vst [vmem:[#allocation15_spill] sm:$0xff] %v5131_v13 }
  0x5a   : > { %558 = vrot.lane.b32.xlu1 %v5108_v63, %s4731_s25  ;;  %556 = vrot.lane.b32.xlu0 %v5111_v62, %s4731_s25  ;;  %v5138_v62 = vld [vmem:[%s4783_s23 + $0x82] sm:$0xff]  ;;  %v5141_v63 = vld [vmem:[%s4783_s23 + $0x7a] sm:$0xff] }
  0x5b   : > { %7059 = vst [vmem:[#allocation16_spill] sm:$0xff] %v5138_v62  ;;  %7060 = vst [vmem:[#allocation17_spill] sm:$0xff] %v5141_v63 }
  0x5e   : > { %562 = vrot.lane.b32.xlu1 %v5118_v1, %s4731_s25  ;;  %560 = vrot.lane.b32.xlu0 %v5121_v3, %s4731_s25  ;;  %v5148_v3 = vld [vmem:[%s4783_s23 + $0x9a] sm:$0xff]  ;;  %v5151_v1 = vld [vmem:[%s4783_s23 + $0x92] sm:$0xff] }
  0x5f   : > { %7061 = vst [vmem:[#allocation18_spill] sm:$0xff] %v5148_v3  ;;  %7062 = vst [vmem:[#allocation19_spill] sm:$0xff] %v5151_v1 }
  0x62   : > { %566 = vrot.lane.b32.xlu1 %v5128_v17, %s4731_s25  ;;  %564 = vrot.lane.b32.xlu0 %v5131_v13, %s4731_s25  ;;  %v5158_v13 = vld [vmem:[%s4783_s23 + $0xb2] sm:$0xff]  ;;  %v5161_v17 = vld [vmem:[%s4783_s23 + $0xaa] sm:$0xff] }
  0x63   : > { %7063 = vst [vmem:[#allocation20_spill] sm:$0xff] %v5158_v13  ;;  %7064 = vst [vmem:[#allocation21_spill] sm:$0xff] %v5161_v17 }
  0x66   : > { %570 = vrot.lane.b32.xlu1 %v5138_v62, %s4731_s25  ;;  %568 = vrot.lane.b32.xlu0 %v5141_v63, %s4731_s25  ;;  %v5168_v63 = vld [vmem:[%s4783_s23 + $0xca] sm:$0xff]  ;;  %v5171_v62 = vld [vmem:[%s4783_s23 + $0xc2] sm:$0xff] }
  0x67   : > { %7065 = vst [vmem:[#allocation22_spill] sm:$0xff] %v5168_v63  ;;  %7066 = vst [vmem:[#allocation23_spill] sm:$0xff] %v5171_v62 }
  0x6a   : > { %574 = vrot.lane.b32.xlu1 %v5148_v3, %s4731_s25  ;;  %572 = vrot.lane.b32.xlu0 %v5151_v1, %s4731_s25  ;;  %v5178_v1 = vld [vmem:[%s4783_s23 + $0xe2] sm:$0xff]  ;;  %v5181_v3 = vld [vmem:[%s4783_s23 + $0xda] sm:$0xff] }
  0x6b   : > { %7067 = vst [vmem:[#allocation24_spill] sm:$0xff] %v5178_v1  ;;  %7068 = vst [vmem:[#allocation25_spill] sm:$0xff] %v5181_v3 }
  0x6e   : > { %578 = vrot.lane.b32.xlu1 %v5158_v13, %s4731_s25  ;;  %576 = vrot.lane.b32.xlu0 %v5161_v17, %s4731_s25  ;;  %v5188_v17 = vld [vmem:[%s4783_s23 + $0xfa] sm:$0xff]  ;;  %v5191_v13 = vld [vmem:[%s4783_s23 + $0xf2] sm:$0xff] }
  0x6f   : > { %7069 = vst [vmem:[#allocation26_spill] sm:$0xff] %v5188_v17  ;;  %7070 = vst [vmem:[#allocation27_spill] sm:$0xff] %v5191_v13 }
  0x72   : > { %582 = vrot.lane.b32.xlu1 %v5168_v63, %s4731_s25  ;;  %580 = vrot.lane.b32.xlu0 %v5171_v62, %s4731_s25  ;;  %v5198_v62 = vld [vmem:[%s4783_s23 + $0x112] sm:$0xff]  ;;  %v5201_v63 = vld [vmem:[%s4783_s23 + $0x10a] sm:$0xff] }
  0x73   : > { %7071 = vst [vmem:[#allocation28_spill] sm:$0xff] %v5198_v62  ;;  %7072 = vst [vmem:[#allocation29_spill] sm:$0xff] %v5201_v63 }
  0x76   : > { %586 = vrot.lane.b32.xlu1 %v5178_v1, %s4731_s25  ;;  %584 = vrot.lane.b32.xlu0 %v5181_v3, %s4731_s25  ;;  %v5208_v3 = vld [vmem:[%s4783_s23 + $0x12a] sm:$0xff]  ;;  %v5211_v1 = vld [vmem:[%s4783_s23 + $0x122] sm:$0xff] }
  0x77   : > { %7073 = vst [vmem:[#allocation30_spill] sm:$0xff] %v5208_v3  ;;  %7074 = vst [vmem:[#allocation31_spill] sm:$0xff] %v5211_v1 }
  0x7a   : > { %590 = vrot.lane.b32.xlu1 %v5188_v17, %s4731_s25  ;;  %588 = vrot.lane.b32.xlu0 %v5191_v13, %s4731_s25  ;;  %v5218_v13 = vld [vmem:[%s4783_s23 + $0x142] sm:$0xff]  ;;  %v5221_v17 = vld [vmem:[%s4783_s23 + $0x13a] sm:$0xff] }
  0x7b   : > { %7075 = vst [vmem:[#allocation32_spill] sm:$0xff] %v5218_v13  ;;  %7076 = vst [vmem:[#allocation33_spill] sm:$0xff] %v5221_v17 }
  0x7e   : > { %594 = vrot.lane.b32.xlu1 %v5198_v62, %s4731_s25  ;;  %592 = vrot.lane.b32.xlu0 %v5201_v63, %s4731_s25 }
  0x82   : > { %598 = vrot.lane.b32.xlu1 %v5208_v3, %s4731_s25  ;;  %596 = vrot.lane.b32.xlu0 %v5211_v1, %s4731_s25  ;;  %v5230_v1 = vld [vmem:[%s4783_s23 + $0x15a] sm:$0xff]  ;;  %v5233_v3 = vld [vmem:[%s4783_s23 + $0x152] sm:$0xff] }
  0x84   : > { %v360_v62 = vpop.permute.xlu1 %359  ;;  %v356_v61 = vpop.permute.xlu0 %355 }
  0x85   : > { %454 = vst.msk [vmem:[#allocation3 + $0x10] sm:$0xff] %vm451_vm1, %v360_v62  ;;  %452 = vst.msk [vmem:[#allocation3] sm:$0xff] %vm451_vm1, %v356_v61  ;;  %v5242_v61 = vld [vmem:[%s4783_s23 + $0x172] sm:$0xff]  ;;  %v5245_v62 = vld [vmem:[%s4783_s23 + $0x16a] sm:$0xff] }
  0x86   : > { %602 = vrot.lane.b32.xlu1 %v5218_v13, %s4731_s25  ;;  %600 = vrot.lane.b32.xlu0 %v5221_v17, %s4731_s25 }
  0x88   : > { %v362_v63 = vpop.permute.xlu1 %361  ;;  %v358_v60 = vpop.permute.xlu0 %357 }
  0x89   : > { %455 = vst.msk [vmem:[#allocation3 + $0x18] sm:$0xff] %vm451_vm1, %v362_v63  ;;  %453 = vst.msk [vmem:[#allocation3 + $0x8] sm:$0xff] %vm451_vm1, %v358_v60 }
  0x8a   : > { %606 = vrot.lane.b32.xlu1 %v5230_v1, %s4731_s25  ;;  %604 = vrot.lane.b32.xlu0 %v5233_v3, %s4731_s25 }
  0x8c   : > { %v366_v17 = vpop.permute.xlu1 %365  ;;  %v364_v13 = vpop.permute.xlu0 %363 }
  0x8d   : > { %457 = vst.msk [vmem:[#allocation3 + $0x28] sm:$0xff] %vm451_vm1, %v366_v17  ;;  %456 = vst.msk [vmem:[#allocation3 + $0x20] sm:$0xff] %vm451_vm1, %v364_v13 }
  0x8e   : > { %610 = vrot.lane.b32.xlu1 %v5242_v61, %s4731_s25  ;;  %608 = vrot.lane.b32.xlu0 %v5245_v62, %s4731_s25 }
  0x90   : > { %v370_v60 = vpop.permute.xlu1 %369  ;;  %v368_v63 = vpop.permute.xlu0 %367 }
  0x91   : > { %459 = vst.msk [vmem:[#allocation3 + $0x38] sm:$0xff] %vm451_vm1, %v370_v60  ;;  %458 = vst.msk [vmem:[#allocation3 + $0x30] sm:$0xff] %vm451_vm1, %v368_v63 }
  0x92   : > { %744 = vrot.lane.b32.xlu1 %v4853_v16, %s4732_s26  ;;  %742 = vrot.lane.b32.xlu0 %v4840_v12, %s4732_s26 }
  0x94   : > { %v374_v13 = vpop.permute.xlu1 %373  ;;  %v372_v17 = vpop.permute.xlu0 %371 }
  0x95   : > { %461 = vst.msk [vmem:[#allocation3 + $0x48] sm:$0xff] %vm451_vm1, %v374_v13  ;;  %460 = vst.msk [vmem:[#allocation3 + $0x40] sm:$0xff] %vm451_vm1, %v372_v17 }
  0x96   : > { %748 = vrot.lane.b32.xlu1 %v4863_v19, %s4732_s26  ;;  %746 = vrot.lane.b32.xlu0 %v4866_v20, %s4732_s26 }
  0x98   : > { %v378_v60 = vpop.permute.xlu1 %377  ;;  %v376_v63 = vpop.permute.xlu0 %375 }
  0x99   : > { %463 = vst.msk [vmem:[#allocation3 + $0x58] sm:$0xff] %vm451_vm1, %v378_v60  ;;  %462 = vst.msk [vmem:[#allocation3 + $0x50] sm:$0xff] %vm451_vm1, %v376_v63 }
  0x9a   : > { %752 = vrot.lane.b32.xlu1 %v4880_v22, %s4732_s26  ;;  %750 = vrot.lane.b32.xlu0 %v4885_v23, %s4732_s26 }
  0x9c   : > { %v382_v12 = vpop.permute.xlu1 %381  ;;  %v380_v16 = vpop.permute.xlu0 %379 }
  0x9d   : > { %465 = vst.msk [vmem:[#allocation3 + $0x68] sm:$0xff] %vm451_vm1, %v382_v12  ;;  %464 = vst.msk [vmem:[#allocation3 + $0x60] sm:$0xff] %vm451_vm1, %v380_v16 }
  0x9e   : > { %756 = vrot.lane.b32.xlu1 %v4888_v24, %s4732_s26  ;;  %754 = vrot.lane.b32.xlu0 %v4891_v25, %s4732_s26 }
  0xa0   : > { %v386_v13 = vpop.permute.xlu1 %385  ;;  %v384_v17 = vpop.permute.xlu0 %383 }
  0xa1   : > { %467 = vst.msk [vmem:[#allocation3 + $0x78] sm:$0xff] %vm451_vm1, %v386_v13  ;;  %466 = vst.msk [vmem:[#allocation3 + $0x70] sm:$0xff] %vm451_vm1, %v384_v17 }
  0xa2   : > { %760 = vrot.lane.b32.xlu1 %v4900_v26, %s4732_s26  ;;  %758 = vrot.lane.b32.xlu0 %v4903_v27, %s4732_s26 }
  0xa4   : > { %v390_v60 = vpop.permute.xlu1 %389  ;;  %v388_v63 = vpop.permute.xlu0 %387 }
  0xa5   : > { %469 = vst.msk [vmem:[#allocation3 + $0x88] sm:$0xff] %vm451_vm1, %v390_v60  ;;  %468 = vst.msk [vmem:[#allocation3 + $0x80] sm:$0xff] %vm451_vm1, %v388_v63 }
  0xa6   : > { %764 = vrot.lane.b32.xlu1 %v4906_v28, %s4732_s26  ;;  %762 = vrot.lane.b32.xlu0 %v4921_v31, %s4732_s26 }
  0xa8   : > { %v394_v12 = vpop.permute.xlu1 %393  ;;  %v392_v16 = vpop.permute.xlu0 %391 }
  0xa9   : > { %471 = vst.msk [vmem:[#allocation3 + $0x98] sm:$0xff] %vm451_vm1, %v394_v12  ;;  %470 = vst.msk [vmem:[#allocation3 + $0x90] sm:$0xff] %vm451_vm1, %v392_v16 }
  0xaa   : > { %768 = vrot.lane.b32.xlu1 %v4924_v32, %s4732_s26  ;;  %766 = vrot.lane.b32.xlu0 %v4927_v33, %s4732_s26 }
  0xac   : > { %v398_v13 = vpop.permute.xlu1 %397  ;;  %v396_v17 = vpop.permute.xlu0 %395 }
  0xad   : > { %473 = vst.msk [vmem:[#allocation3 + $0xa8] sm:$0xff] %vm451_vm1, %v398_v13  ;;  %472 = vst.msk [vmem:[#allocation3 + $0xa0] sm:$0xff] %vm451_vm1, %v396_v17 }
  0xae   : > { %772 = vrot.lane.b32.xlu1 %v4940_v34, %s4732_s26  ;;  %770 = vrot.lane.b32.xlu0 %v4943_v35, %s4732_s26 }
  0xb0   : > { %v402_v60 = vpop.permute.xlu1 %401  ;;  %v400_v63 = vpop.permute.xlu0 %399 }
  0xb1   : > { %475 = vst.msk [vmem:[#allocation3 + $0xb8] sm:$0xff] %vm451_vm1, %v402_v60  ;;  %474 = vst.msk [vmem:[#allocation3 + $0xb0] sm:$0xff] %vm451_vm1, %v400_v63 }
  0xb2   : > { %776 = vrot.lane.b32.xlu1 %v4950_v36, %s4732_s26  ;;  %774 = vrot.lane.b32.xlu0 %v4953_v37, %s4732_s26 }
  0xb4   : > { %v406_v12 = vpop.permute.xlu1 %405  ;;  %v404_v16 = vpop.permute.xlu0 %403 }
  0xb5   : > { %477 = vst.msk [vmem:[#allocation3 + $0xc8] sm:$0xff] %vm451_vm1, %v406_v12  ;;  %476 = vst.msk [vmem:[#allocation3 + $0xc0] sm:$0xff] %vm451_vm1, %v404_v16 }
  0xb6   : > { %780 = vrot.lane.b32.xlu1 %v4956_v38, %s4732_s26  ;;  %778 = vrot.lane.b32.xlu0 %v4965_v39, %s4732_s26 }
  0xb8   : > { %v410_v13 = vpop.permute.xlu1 %409  ;;  %v408_v17 = vpop.permute.xlu0 %407 }
  0xb9   : > { %479 = vst.msk [vmem:[#allocation3 + $0xd8] sm:$0xff] %vm451_vm1, %v410_v13  ;;  %478 = vst.msk [vmem:[#allocation3 + $0xd0] sm:$0xff] %vm451_vm1, %v408_v17 }
  0xba   : > { %784 = vrot.lane.b32.xlu1 %v4968_v40, %s4732_s26  ;;  %782 = vrot.lane.b32.xlu0 %v4971_v41, %s4732_s26 }
  0xbc   : > { %v414_v60 = vpop.permute.xlu1 %413  ;;  %v412_v63 = vpop.permute.xlu0 %411 }
  0xbd   : > { %481 = vst.msk [vmem:[#allocation3 + $0xe8] sm:$0xff] %vm451_vm1, %v414_v60  ;;  %480 = vst.msk [vmem:[#allocation3 + $0xe0] sm:$0xff] %vm451_vm1, %v412_v63 }
  0xbe   : > { %788 = vrot.lane.b32.xlu1 %v4990_v44, %s4732_s26  ;;  %786 = vrot.lane.b32.xlu0 %v4993_v45, %s4732_s26 }
  0xc0   : > { %v418_v12 = vpop.permute.xlu1 %417  ;;  %v416_v16 = vpop.permute.xlu0 %415 }
  0xc1   : > { %483 = vst.msk [vmem:[#allocation3 + $0xf8] sm:$0xff] %vm451_vm1, %v418_v12  ;;  %482 = vst.msk [vmem:[#allocation3 + $0xf0] sm:$0xff] %vm451_vm1, %v416_v16  ;;  %v5344_v12 = vld [vmem:[%s4783_s23 + $0x188] sm:$0xff]  ;;  %v5347_v16 = vld [vmem:[%s4783_s23 + $0x180] sm:$0xff] }
  0xc2   : > { %792 = vrot.lane.b32.xlu1 %v5010_v48, %s4732_s26  ;;  %790 = vrot.lane.b32.xlu0 %v5013_v49, %s4732_s26 }
  0xc4   : > { %v551_v13 = vpop.permute.xlu1 %550  ;;  %v549_v17 = vpop.permute.xlu0 %548 }
  0xc5   : > { %646 = vst.msk [vmem:[#allocation3 + $0x8] sm:$0xff] %vm644_vm2, %v551_v13  ;;  %645 = vst.msk [vmem:[#allocation3] sm:$0xff] %vm644_vm2, %v549_v17 }
  0xc6   : > { %796 = vrot.lane.b32.xlu1 %v5030_v52, %s4732_s26  ;;  %794 = vrot.lane.b32.xlu0 %v5033_v53, %s4732_s26 }
  0xc8   : > { %v555_v60 = vpop.permute.xlu1 %554  ;;  %v553_v63 = vpop.permute.xlu0 %552 }
  0xc9   : > { %648 = vst.msk [vmem:[#allocation3 + $0x18] sm:$0xff] %vm644_vm2, %v555_v60  ;;  %647 = vst.msk [vmem:[#allocation3 + $0x10] sm:$0xff] %vm644_vm2, %v553_v63 }
  0xca   : > { %800 = vrot.lane.b32.xlu1 %v5050_v56, %s4732_s26  ;;  %798 = vrot.lane.b32.xlu0 %v5053_v57, %s4732_s26 }
  0xcc   : > { %v559_v13 = vpop.permute.xlu1 %558  ;;  %v557_v17 = vpop.permute.xlu0 %556 }
  0xcd   : > { %650 = vst.msk [vmem:[#allocation3 + $0x28] sm:$0xff] %vm644_vm2, %v559_v13  ;;  %649 = vst.msk [vmem:[#allocation3 + $0x20] sm:$0xff] %vm644_vm2, %v557_v17 }
  0xce   : > { %804 = vrot.lane.b32.xlu1 %v5344_v12, %s4732_s26  ;;  %802 = vrot.lane.b32.xlu0 %v5347_v16, %s4732_s26 }
  0xd0   : > { %v563_v60 = vpop.permute.xlu1 %562  ;;  %v561_v63 = vpop.permute.xlu0 %560 }
  0xd1   : > { %652 = vst.msk [vmem:[#allocation3 + $0x38] sm:$0xff] %vm644_vm2, %v563_v60  ;;  %651 = vst.msk [vmem:[#allocation3 + $0x30] sm:$0xff] %vm644_vm2, %v561_v63 }
  0xd2   : > { %937 = vrot.lane.b32.xlu1 %v4793_v2, %s4733_s27  ;;  %935 = vrot.lane.b32.xlu0 %v4786_v0, %s4733_s27 }
  0xd4   : > { %v567_v13 = vpop.permute.xlu1 %566  ;;  %v565_v17 = vpop.permute.xlu0 %564 }
  0xd5   : > { %654 = vst.msk [vmem:[#allocation3 + $0x48] sm:$0xff] %vm644_vm2, %v567_v13  ;;  %653 = vst.msk [vmem:[#allocation3 + $0x40] sm:$0xff] %vm644_vm2, %v565_v17 }
  0xd6   : > { %941 = vrot.lane.b32.xlu1 %v4800_v4, %s4733_s27  ;;  %939 = vrot.lane.b32.xlu0 %v4803_v5, %s4733_s27 }
  0xd8   : > { %v571_v60 = vpop.permute.xlu1 %570  ;;  %v569_v63 = vpop.permute.xlu0 %568 }
  0xd9   : > { %656 = vst.msk [vmem:[#allocation3 + $0x58] sm:$0xff] %vm644_vm2, %v571_v60  ;;  %655 = vst.msk [vmem:[#allocation3 + $0x50] sm:$0xff] %vm644_vm2, %v569_v63  ;;  %v5446_v60 = vld [vmem:[%s4783_s23 + $0x189] sm:$0xff]  ;;  %v5449_v63 = vld [vmem:[%s4783_s23 + $0x181] sm:$0xff] }
  0xda   : > { %945 = vrot.lane.b32.xlu1 %v4810_v6, %s4733_s27  ;;  %943 = vrot.lane.b32.xlu0 %v4813_v7, %s4733_s27 }
  0xdc   : > { %v575_v0 = vpop.permute.xlu1 %574  ;;  %v573_v2 = vpop.permute.xlu0 %572 }
  0xdd   : > { %658 = vst.msk [vmem:[#allocation3 + $0x68] sm:$0xff] %vm644_vm2, %v575_v0  ;;  %657 = vst.msk [vmem:[#allocation3 + $0x60] sm:$0xff] %vm644_vm2, %v573_v2 }
  0xde   : > { %949 = vrot.lane.b32.xlu1 %v4820_v8, %s4733_s27  ;;  %947 = vrot.lane.b32.xlu0 %v4823_v9, %s4733_s27 }
  0xe0   : > { %v579_v4 = vpop.permute.xlu1 %578  ;;  %v577_v5 = vpop.permute.xlu0 %576 }
  0xe1   : > { %660 = vst.msk [vmem:[#allocation3 + $0x78] sm:$0xff] %vm644_vm2, %v579_v4  ;;  %659 = vst.msk [vmem:[#allocation3 + $0x70] sm:$0xff] %vm644_vm2, %v577_v5 }
  0xe2   : > { %953 = vrot.lane.b32.xlu1 %v4830_v10, %s4733_s27  ;;  %951 = vrot.lane.b32.xlu0 %v4833_v11, %s4733_s27 }
  0xe4   : > { %v583_v6 = vpop.permute.xlu1 %582  ;;  %v581_v7 = vpop.permute.xlu0 %580 }
  0xe5   : > { %662 = vst.msk [vmem:[#allocation3 + $0x88] sm:$0xff] %vm644_vm2, %v583_v6  ;;  %661 = vst.msk [vmem:[#allocation3 + $0x80] sm:$0xff] %vm644_vm2, %v581_v7  ;;  %v7081_v6 = vld [vmem:[#allocation8_spill] sm:$0xff]  ;;  %v7082_v7 = vld [vmem:[#allocation9_spill] sm:$0xff] }
  0xe6   : > { %957 = vrot.lane.b32.xlu1 %v4844_v14, %s4733_s27  ;;  %955 = vrot.lane.b32.xlu0 %v4847_v15, %s4733_s27 }
  0xe8   : > { %v587_v8 = vpop.permute.xlu1 %586  ;;  %v585_v9 = vpop.permute.xlu0 %584 }
  0xe9   : > { %664 = vst.msk [vmem:[#allocation3 + $0x98] sm:$0xff] %vm644_vm2, %v587_v8  ;;  %663 = vst.msk [vmem:[#allocation3 + $0x90] sm:$0xff] %vm644_vm2, %v585_v9 }
  0xea   : > { %961 = vrot.lane.b32.xlu1 %v4859_v18, %s4733_s27  ;;  %959 = vrot.lane.b32.xlu0 %v4873_v21, %s4733_s27 }
  0xec   : > { %v591_v10 = vpop.permute.xlu1 %590  ;;  %v589_v11 = vpop.permute.xlu0 %588 }
  0xed   : > { %666 = vst.msk [vmem:[#allocation3 + $0xa8] sm:$0xff] %vm644_vm2, %v591_v10  ;;  %665 = vst.msk [vmem:[#allocation3 + $0xa0] sm:$0xff] %vm644_vm2, %v589_v11  ;;  %v7083_v10 = vld [vmem:[#allocation10_spill] sm:$0xff]  ;;  %v7084_v11 = vld [vmem:[#allocation11_spill] sm:$0xff] }
  0xee   : > { %965 = vrot.lane.b32.xlu1 %v4909_v29, %s4733_s27  ;;  %963 = vrot.lane.b32.xlu0 %v4912_v30, %s4733_s27 }
  0xf0   : > { %v595_v14 = vpop.permute.xlu1 %594  ;;  %v593_v15 = vpop.permute.xlu0 %592 }
  0xf1   : > { %668 = vst.msk [vmem:[#allocation3 + $0xb8] sm:$0xff] %vm644_vm2, %v595_v14  ;;  %667 = vst.msk [vmem:[#allocation3 + $0xb0] sm:$0xff] %vm644_vm2, %v593_v15 }
  0xf2   : > { %969 = vrot.lane.b32.xlu1 %v4984_v42, %s4733_s27  ;;  %967 = vrot.lane.b32.xlu0 %v4987_v43, %s4733_s27 }
  0xf4   : > { %v599_v18 = vpop.permute.xlu1 %598  ;;  %v597_v21 = vpop.permute.xlu0 %596 }
  0xf5   : > { %670 = vst.msk [vmem:[#allocation3 + $0xc8] sm:$0xff] %vm644_vm2, %v599_v18  ;;  %669 = vst.msk [vmem:[#allocation3 + $0xc0] sm:$0xff] %vm644_vm2, %v597_v21  ;;  %v7085_v18 = vld [vmem:[#allocation12_spill] sm:$0xff]  ;;  %v7086_v21 = vld [vmem:[#allocation13_spill] sm:$0xff] }
  0xf6   : > { %973 = vrot.lane.b32.xlu1 %v5004_v46, %s4733_s27  ;;  %971 = vrot.lane.b32.xlu0 %v5007_v47, %s4733_s27 }
  0xf8   : > { %v603_v29 = vpop.permute.xlu1 %602  ;;  %v601_v30 = vpop.permute.xlu0 %600 }
  0xf9   : > { %672 = vst.msk [vmem:[#allocation3 + $0xd8] sm:$0xff] %vm644_vm2, %v603_v29  ;;  %671 = vst.msk [vmem:[#allocation3 + $0xd0] sm:$0xff] %vm644_vm2, %v601_v30 }
  0xfa   : > { %977 = vrot.lane.b32.xlu1 %v5024_v50, %s4733_s27  ;;  %975 = vrot.lane.b32.xlu0 %v5027_v51, %s4733_s27 }
  0xfc   : > { %v607_v42 = vpop.permute.xlu1 %606  ;;  %v605_v43 = vpop.permute.xlu0 %604 }
  0xfd   : > { %674 = vst.msk [vmem:[#allocation3 + $0xe8] sm:$0xff] %vm644_vm2, %v607_v42  ;;  %673 = vst.msk [vmem:[#allocation3 + $0xe0] sm:$0xff] %vm644_vm2, %v605_v43  ;;  %v7087_v42 = vld [vmem:[#allocation14_spill] sm:$0xff]  ;;  %v7088_v43 = vld [vmem:[#allocation15_spill] sm:$0xff] }
  0xfe   : > { %981 = vrot.lane.b32.xlu1 %v5044_v54, %s4733_s27  ;;  %979 = vrot.lane.b32.xlu0 %v5047_v55, %s4733_s27  ;;  %v7077_v54 = vld [vmem:[#allocation4_spill] sm:$0xff]  ;;  %v7078_v55 = vld [vmem:[#allocation5_spill] sm:$0xff] }
 0x100   : > { %v611_v46 = vpop.permute.xlu1 %610  ;;  %v609_v47 = vpop.permute.xlu0 %608 }
 0x101   : > { %676 = vst.msk [vmem:[#allocation3 + $0xf8] sm:$0xff] %vm644_vm2, %v611_v46  ;;  %675 = vst.msk [vmem:[#allocation3 + $0xf0] sm:$0xff] %vm644_vm2, %v609_v47 }
 0x102   : > { %985 = vrot.lane.b32.xlu1 %v5064_v58, %s4733_s27  ;;  %983 = vrot.lane.b32.xlu0 %v5067_v59, %s4733_s27  ;;  %v7079_v58 = vld [vmem:[#allocation6_spill] sm:$0xff]  ;;  %v7080_v59 = vld [vmem:[#allocation7_spill] sm:$0xff] }
 0x104   : > { %v745_v50 = vpop.permute.xlu1 %744  ;;  %v743_v51 = vpop.permute.xlu0 %742 }
 0x105   : > { %840 = vst.msk [vmem:[#allocation3 + $0x8] sm:$0xff] %vm838_vm3, %v745_v50  ;;  %839 = vst.msk [vmem:[#allocation3] sm:$0xff] %vm838_vm3, %v743_v51  ;;  %v7089_v50 = vld [vmem:[#allocation16_spill] sm:$0xff]  ;;  %v7090_v51 = vld [vmem:[#allocation17_spill] sm:$0xff] }
 0x106   : > { %989 = vrot.lane.b32.xlu1 %v7077_v54, %s4733_s27  ;;  %987 = vrot.lane.b32.xlu0 %v7078_v55, %s4733_s27 }
 0x108   : > { %v749_v13 = vpop.permute.xlu1 %748  ;;  %v747_v17 = vpop.permute.xlu0 %746 }
 0x109   : > { %842 = vst.msk [vmem:[#allocation3 + $0x18] sm:$0xff] %vm838_vm3, %v749_v13  ;;  %841 = vst.msk [vmem:[#allocation3 + $0x10] sm:$0xff] %vm838_vm3, %v747_v17  ;;  %v7091_v13 = vld [vmem:[#allocation18_spill] sm:$0xff]  ;;  %v7092_v17 = vld [vmem:[#allocation19_spill] sm:$0xff] }
 0x10a   : > { %993 = vrot.lane.b32.xlu1 %v7079_v58, %s4733_s27  ;;  %991 = vrot.lane.b32.xlu0 %v7080_v59, %s4733_s27 }
 0x10c   : > { %v753_v0 = vpop.permute.xlu1 %752  ;;  %v751_v2 = vpop.permute.xlu0 %750 }
 0x10d   : > { %844 = vst.msk [vmem:[#allocation3 + $0x28] sm:$0xff] %vm838_vm3, %v753_v0  ;;  %843 = vst.msk [vmem:[#allocation3 + $0x20] sm:$0xff] %vm838_vm3, %v751_v2  ;;  %v7093_v0 = vld [vmem:[#allocation20_spill] sm:$0xff]  ;;  %v7094_v2 = vld [vmem:[#allocation21_spill] sm:$0xff] }
 0x10e   : > { %997 = vrot.lane.b32.xlu1 %v5446_v60, %s4733_s27  ;;  %995 = vrot.lane.b32.xlu0 %v5449_v63, %s4733_s27 }
 0x110   : > { %v757_v4 = vpop.permute.xlu1 %756  ;;  %v755_v5 = vpop.permute.xlu0 %754 }
 0x111   : > { %846 = vst.msk [vmem:[#allocation3 + $0x38] sm:$0xff] %vm838_vm3, %v757_v4  ;;  %845 = vst.msk [vmem:[#allocation3 + $0x30] sm:$0xff] %vm838_vm3, %v755_v5 }
 0x112   : > { %1130 = vrot.lane.b32.xlu1 %v7081_v6, %s4734_s28  ;;  %1128 = vrot.lane.b32.xlu0 %v7082_v7, %s4734_s28  ;;  %v7095_v6 = vld [vmem:[#allocation22_spill] sm:$0xff]  ;;  %v7096_v7 = vld [vmem:[#allocation23_spill] sm:$0xff] }
 0x114   : > { %v761_v8 = vpop.permute.xlu1 %760  ;;  %v759_v9 = vpop.permute.xlu0 %758 }
 0x115   : > { %848 = vst.msk [vmem:[#allocation3 + $0x48] sm:$0xff] %vm838_vm3, %v761_v8  ;;  %847 = vst.msk [vmem:[#allocation3 + $0x40] sm:$0xff] %vm838_vm3, %v759_v9 }
 0x116   : > { %1134 = vrot.lane.b32.xlu1 %v7083_v10, %s4734_s28  ;;  %1132 = vrot.lane.b32.xlu0 %v7084_v11, %s4734_s28  ;;  %v7097_v10 = vld [vmem:[#allocation24_spill] sm:$0xff]  ;;  %v7098_v11 = vld [vmem:[#allocation25_spill] sm:$0xff] }
 0x118   : > { %v765_v14 = vpop.permute.xlu1 %764  ;;  %v763_v15 = vpop.permute.xlu0 %762 }
 0x119   : > { %850 = vst.msk [vmem:[#allocation3 + $0x58] sm:$0xff] %vm838_vm3, %v765_v14  ;;  %849 = vst.msk [vmem:[#allocation3 + $0x50] sm:$0xff] %vm838_vm3, %v763_v15 }
 0x11a   : > { %1138 = vrot.lane.b32.xlu1 %v7085_v18, %s4734_s28  ;;  %1136 = vrot.lane.b32.xlu0 %v7086_v21, %s4734_s28  ;;  %v7099_v18 = vld [vmem:[#allocation26_spill] sm:$0xff]  ;;  %v7100_v21 = vld [vmem:[#allocation27_spill] sm:$0xff] }
 0x11c   : > { %v769_v29 = vpop.permute.xlu1 %768  ;;  %v767_v30 = vpop.permute.xlu0 %766 }
 0x11d   : > { %852 = vst.msk [vmem:[#allocation3 + $0x68] sm:$0xff] %vm838_vm3, %v769_v29  ;;  %851 = vst.msk [vmem:[#allocation3 + $0x60] sm:$0xff] %vm838_vm3, %v767_v30 }
 0x11e   : > { %1142 = vrot.lane.b32.xlu1 %v7087_v42, %s4734_s28  ;;  %1140 = vrot.lane.b32.xlu0 %v7088_v43, %s4734_s28  ;;  %v7101_v42 = vld [vmem:[#allocation28_spill] sm:$0xff]  ;;  %v7102_v43 = vld [vmem:[#allocation29_spill] sm:$0xff] }
 0x120   : > { %v773_v46 = vpop.permute.xlu1 %772  ;;  %v771_v47 = vpop.permute.xlu0 %770 }
 0x121   : > { %854 = vst.msk [vmem:[#allocation3 + $0x78] sm:$0xff] %vm838_vm3, %v773_v46  ;;  %853 = vst.msk [vmem:[#allocation3 + $0x70] sm:$0xff] %vm838_vm3, %v771_v47 }
 0x122   : > { %1146 = vrot.lane.b32.xlu1 %v7089_v50, %s4734_s28  ;;  %1144 = vrot.lane.b32.xlu0 %v7090_v51, %s4734_s28  ;;  %v7103_v50 = vld [vmem:[#allocation30_spill] sm:$0xff]  ;;  %v7104_v51 = vld [vmem:[#allocation31_spill] sm:$0xff] }
 0x124   : > { %v777_v54 = vpop.permute.xlu1 %776  ;;  %v775_v55 = vpop.permute.xlu0 %774 }
 0x125   : > { %856 = vst.msk [vmem:[#allocation3 + $0x88] sm:$0xff] %vm838_vm3, %v777_v54  ;;  %855 = vst.msk [vmem:[#allocation3 + $0x80] sm:$0xff] %vm838_vm3, %v775_v55 }
 0x126   : > { %1150 = vrot.lane.b32.xlu1 %v7091_v13, %s4734_s28  ;;  %1148 = vrot.lane.b32.xlu0 %v7092_v17, %s4734_s28  ;;  %v7105_v13 = vld [vmem:[#allocation32_spill] sm:$0xff]  ;;  %v7106_v17 = vld [vmem:[#allocation33_spill] sm:$0xff] }
 0x128   : > { %v781_v58 = vpop.permute.xlu1 %780  ;;  %v779_v59 = vpop.permute.xlu0 %778 }
 0x129   : > { %858 = vst.msk [vmem:[#allocation3 + $0x98] sm:$0xff] %vm838_vm3, %v781_v58  ;;  %857 = vst.msk [vmem:[#allocation3 + $0x90] sm:$0xff] %vm838_vm3, %v779_v59 }
 0x12a   : > { %1154 = vrot.lane.b32.xlu1 %v7093_v0, %s4734_s28  ;;  %1152 = vrot.lane.b32.xlu0 %v7094_v2, %s4734_s28 }
 0x12c   : > { %v785_v4 = vpop.permute.xlu1 %784  ;;  %v783_v5 = vpop.permute.xlu0 %782 }
 0x12d   : > { %860 = vst.msk [vmem:[#allocation3 + $0xa8] sm:$0xff] %vm838_vm3, %v785_v4  ;;  %859 = vst.msk [vmem:[#allocation3 + $0xa0] sm:$0xff] %vm838_vm3, %v783_v5  ;;  %v5548_v4 = vld [vmem:[%s4783_s23 + $0x18a] sm:$0xff]  ;;  %v5551_v5 = vld [vmem:[%s4783_s23 + $0x182] sm:$0xff] }
 0x12e   : > { %1158 = vrot.lane.b32.xlu1 %v7095_v6, %s4734_s28  ;;  %1156 = vrot.lane.b32.xlu0 %v7096_v7, %s4734_s28 }
 0x130   : > { %v789_v8 = vpop.permute.xlu1 %788  ;;  %v787_v9 = vpop.permute.xlu0 %786 }
 0x131   : > { %862 = vst.msk [vmem:[#allocation3 + $0xb8] sm:$0xff] %vm838_vm3, %v789_v8  ;;  %861 = vst.msk [vmem:[#allocation3 + $0xb0] sm:$0xff] %vm838_vm3, %v787_v9 }
 0x132   : > { %1162 = vrot.lane.b32.xlu1 %v7097_v10, %s4734_s28  ;;  %1160 = vrot.lane.b32.xlu0 %v7098_v11, %s4734_s28  ;;  %v4443_v11 = vld [vmem:[%s4783_s23 + $0x31] sm:$0xff] }
 0x134   : > { %v793_v14 = vpop.permute.xlu1 %792  ;;  %v791_v15 = vpop.permute.xlu0 %790 }
 0x135   : > { %864 = vst.msk [vmem:[#allocation3 + $0xc8] sm:$0xff] %vm838_vm3, %v793_v14  ;;  %863 = vst.msk [vmem:[#allocation3 + $0xc0] sm:$0xff] %vm838_vm3, %v791_v15  ;;  %v4446_v14 = vld [vmem:[%s4783_s23 + $0x51] sm:$0xff]  ;;  %v4445_v15 = vld [vmem:[%s4783_s23 + $0x49] sm:$0xff] }
 0x136   : > { %1166 = vrot.lane.b32.xlu1 %v7099_v18, %s4734_s28  ;;  %1164 = vrot.lane.b32.xlu0 %v7100_v21, %s4734_s28 }
 0x138   : > { %v797_v29 = vpop.permute.xlu1 %796  ;;  %v795_v30 = vpop.permute.xlu0 %794 }
 0x139   : > { %866 = vst.msk [vmem:[#allocation3 + $0xd8] sm:$0xff] %vm838_vm3, %v797_v29  ;;  %865 = vst.msk [vmem:[#allocation3 + $0xd0] sm:$0xff] %vm838_vm3, %v795_v30  ;;  %v4448_v29 = vld [vmem:[%s4783_s23 + $0x69] sm:$0xff]  ;;  %v4447_v30 = vld [vmem:[%s4783_s23 + $0x61] sm:$0xff] }
 0x13a   : > { %1170 = vrot.lane.b32.xlu1 %v7101_v42, %s4734_s28  ;;  %1168 = vrot.lane.b32.xlu0 %v7102_v43, %s4734_s28 }
 0x13c   : > { %v801_v46 = vpop.permute.xlu1 %800  ;;  %v799_v47 = vpop.permute.xlu0 %798 }
 0x13d   : > { %868 = vst.msk [vmem:[#allocation3 + $0xe8] sm:$0xff] %vm838_vm3, %v801_v46  ;;  %867 = vst.msk [vmem:[#allocation3 + $0xe0] sm:$0xff] %vm838_vm3, %v799_v47  ;;  %v4450_v46 = vld [vmem:[%s4783_s23 + $0x81] sm:$0xff]  ;;  %v4449_v47 = vld [vmem:[%s4783_s23 + $0x79] sm:$0xff] }
 0x13e   : > { %1174 = vrot.lane.b32.xlu1 %v7103_v50, %s4734_s28  ;;  %1172 = vrot.lane.b32.xlu0 %v7104_v51, %s4734_s28 }
 0x140   : > { %v805_v54 = vpop.permute.xlu1 %804  ;;  %v803_v55 = vpop.permute.xlu0 %802 }
 0x141   : > { %870 = vst.msk [vmem:[#allocation3 + $0xf8] sm:$0xff] %vm838_vm3, %v805_v54  ;;  %869 = vst.msk [vmem:[#allocation3 + $0xf0] sm:$0xff] %vm838_vm3, %v803_v55  ;;  %v4716_v54 = vld [vmem:[%s7012_s1 + $0x10] ss:$0 sps:$4 sm:$0x33]   ;;  %v4452_v55 = vld [vmem:[%s4783_s23 + $0x99] sm:$0xff] }
 0x142   : > { %1178 = vrot.lane.b32.xlu1 %v7105_v13, %s4734_s28  ;;  %1176 = vrot.lane.b32.xlu0 %v7106_v17, %s4734_s28  ;;  %v4451_v13 = vld [vmem:[%s4783_s23 + $0x91] sm:$0xff]  ;;  %v1963_v17 = vsel %vm1961_vm6, %v4716_v54, 0 }
 0x143   : > { %4696 = vmatprep.subr.msk.bf16.mxu0 %vm1961_vm6, %v4716_v54  ;;  %v4492_v54 = vld [vmem:[%s4783_s23 + $0xfa] sm:$0xff] }
 0x144   : > { %v938_v58 = vpop.permute.xlu1 %937  ;;  %v936_v59 = vpop.permute.xlu0 %935  ;;  %4621 = vmatpush3.bf16.msra.mxu0 %v1963_v17 }
 0x145   : > { %1033 = vst.msk [vmem:[#allocation3 + $0x8] sm:$0xff] %vm1031_vm4, %v938_v58  ;;  %1032 = vst.msk [vmem:[#allocation3] sm:$0xff] %vm1031_vm4, %v936_v59 }
 0x146   : > { %1182 = vrot.lane.b32.xlu1 %v5230_v1, %s4734_s28  ;;  %1180 = vrot.lane.b32.xlu0 %v5233_v3, %s4734_s28 }
 0x148   : > { %v942_v0 = vpop.permute.xlu1 %941  ;;  %v940_v2 = vpop.permute.xlu0 %939 }
 0x149   : > { %1035 = vst.msk [vmem:[#allocation3 + $0x18] sm:$0xff] %vm1031_vm4, %v942_v0  ;;  %1034 = vst.msk [vmem:[#allocation3 + $0x10] sm:$0xff] %vm1031_vm4, %v940_v2  ;;  %v4717_v0 = vld [vmem:[%s7012_s1 + $0x8] sm:$0xff]   ;;  %v4475_v2 = vld [vmem:[%s4783_s23 + $0x32] sm:$0xff] }
 0x14a   : > { %1186 = vrot.lane.b32.xlu1 %v5242_v61, %s4734_s28  ;;  %1184 = vrot.lane.b32.xlu0 %v5245_v62, %s4734_s28 }
 0x14b   : > { %4622 = vmatprep.subr.bf16.mxu0 %v4717_v0 }
 0x14c   : > { %v946_v1 = vpop.permute.xlu1 %945  ;;  %v944_v6 = vpop.permute.xlu0 %943  ;;  %4623 = vmatpush3.bf16.msra.mxu0 %v4717_v0 }
 0x14d   : > { %1037 = vst.msk [vmem:[#allocation3 + $0x28] sm:$0xff] %vm1031_vm4, %v946_v1  ;;  %1036 = vst.msk [vmem:[#allocation3 + $0x20] sm:$0xff] %vm1031_vm4, %v944_v6  ;;  %v4453_v1 = vld [vmem:[%s4783_s23 + $0xa9] sm:$0xff] }
 0x14e   : > { %1190 = vrot.lane.b32.xlu1 %v5548_v4, %s4734_s28  ;;  %1188 = vrot.lane.b32.xlu0 %v5551_v5, %s4734_s28 }
 0x150   : > { %v950_v3 = vpop.permute.xlu1 %949  ;;  %v948_v61 = vpop.permute.xlu0 %947 }
 0x151   : > { %1039 = vst.msk [vmem:[#allocation3 + $0x38] sm:$0xff] %vm1031_vm4, %v950_v3  ;;  %1038 = vst.msk [vmem:[#allocation3 + $0x30] sm:$0xff] %vm1031_vm4, %v948_v61  ;;  %v4718_v61 = vld [vmem:[%s7012_s1] sm:$0xff]  }
 0x152   : > { %1324 = vrot.lane.b32.xlu1 %v4863_v19, %s4735_s29  ;;  %1322 = vrot.lane.b32.xlu0 %v4866_v20, %s4735_s29 }
 0x153   : > { %4624 = vmatprep.subr.bf16.mxu0 %v4718_v61 }
 0x154   : > { %v954_v62 = vpop.permute.xlu1 %953  ;;  %v952_v7 = vpop.permute.xlu0 %951  ;;  %4625 = vmatpush3.bf16.msra.mxu0 %v4718_v61 }
 0x155   : > { %1041 = vst.msk [vmem:[#allocation3 + $0x48] sm:$0xff] %vm1031_vm4, %v954_v62  ;;  %1040 = vst.msk [vmem:[#allocation3 + $0x40] sm:$0xff] %vm1031_vm4, %v952_v7  ;;  %v4477_v62 = vld [vmem:[%s4783_s23 + $0x4a] sm:$0xff]  ;;  %v4476_v7 = vld [vmem:[%s4783_s23 + $0x3a] sm:$0xff] }
 0x156   : > { %1328 = vrot.lane.b32.xlu1 %v4880_v22, %s4735_s29  ;;  %1326 = vrot.lane.b32.xlu0 %v4885_v23, %s4735_s29 }
 0x158   : > { %v958_v8 = vpop.permute.xlu1 %957  ;;  %v956_v9 = vpop.permute.xlu0 %955 }
 0x159   : > { %1043 = vst.msk [vmem:[#allocation3 + $0x58] sm:$0xff] %vm1031_vm4, %v958_v8  ;;  %1042 = vst.msk [vmem:[#allocation3 + $0x50] sm:$0xff] %vm1031_vm4, %v956_v9 }
 0x15a   : > { %1332 = vrot.lane.b32.xlu1 %v4888_v24, %s4735_s29  ;;  %1330 = vrot.lane.b32.xlu0 %v4891_v25, %s4735_s29 }
 0x15c   : > { %v962_v19 = vpop.permute.xlu1 %961  ;;  %v960_v20 = vpop.permute.xlu0 %959 }
 0x15d   : > { %1045 = vst.msk [vmem:[#allocation3 + $0x68] sm:$0xff] %vm1031_vm4, %v962_v19  ;;  %1044 = vst.msk [vmem:[#allocation3 + $0x60] sm:$0xff] %vm1031_vm4, %v960_v20  ;;  %v4479_v19 = vld [vmem:[%s4783_s23 + $0x62] sm:$0xff]  ;;  %v4478_v20 = vld [vmem:[%s4783_s23 + $0x52] sm:$0xff] }
 0x15e   : > { %1336 = vrot.lane.b32.xlu1 %v4900_v26, %s4735_s29  ;;  %1334 = vrot.lane.b32.xlu0 %v4903_v27, %s4735_s29 }
 0x160   : > { %v966_v22 = vpop.permute.xlu1 %965  ;;  %v964_v23 = vpop.permute.xlu0 %963 }
 0x161   : > { %1047 = vst.msk [vmem:[#allocation3 + $0x78] sm:$0xff] %vm1031_vm4, %v966_v22  ;;  %1046 = vst.msk [vmem:[#allocation3 + $0x70] sm:$0xff] %vm1031_vm4, %v964_v23 }
 0x162   : > { %1340 = vrot.lane.b32.xlu1 %v4906_v28, %s4735_s29  ;;  %1338 = vrot.lane.b32.xlu0 %v4921_v31, %s4735_s29 }
 0x164   : > { %v970_v24 = vpop.permute.xlu1 %969  ;;  %v968_v25 = vpop.permute.xlu0 %967 }
 0x165   : > { %1049 = vst.msk [vmem:[#allocation3 + $0x88] sm:$0xff] %vm1031_vm4, %v970_v24  ;;  %1048 = vst.msk [vmem:[#allocation3 + $0x80] sm:$0xff] %vm1031_vm4, %v968_v25  ;;  %v4481_v24 = vld [vmem:[%s4783_s23 + $0x7a] sm:$0xff]  ;;  %v4480_v25 = vld [vmem:[%s4783_s23 + $0x6a] sm:$0xff] }
 0x166   : > { %1344 = vrot.lane.b32.xlu1 %v4924_v32, %s4735_s29  ;;  %1342 = vrot.lane.b32.xlu0 %v4927_v33, %s4735_s29 }
 0x168   : > { %v974_v26 = vpop.permute.xlu1 %973  ;;  %v972_v27 = vpop.permute.xlu0 %971 }
 0x169   : > { %1051 = vst.msk [vmem:[#allocation3 + $0x98] sm:$0xff] %vm1031_vm4, %v974_v26  ;;  %1050 = vst.msk [vmem:[#allocation3 + $0x90] sm:$0xff] %vm1031_vm4, %v972_v27 }
 0x16a   : > { %1348 = vrot.lane.b32.xlu1 %v4940_v34, %s4735_s29  ;;  %1346 = vrot.lane.b32.xlu0 %v4943_v35, %s4735_s29 }
 0x16c   : > { %v978_v28 = vpop.permute.xlu1 %977  ;;  %v976_v31 = vpop.permute.xlu0 %975 }
 0x16d   : > { %1053 = vst.msk [vmem:[#allocation3 + $0xa8] sm:$0xff] %vm1031_vm4, %v978_v28  ;;  %1052 = vst.msk [vmem:[#allocation3 + $0xa0] sm:$0xff] %vm1031_vm4, %v976_v31  ;;  %v4454_v28 = vld [vmem:[%s4783_s23 + $0xb1] sm:$0xff]  ;;  %v4482_v31 = vld [vmem:[%s4783_s23 + $0x82] sm:$0xff] }
 0x16e   : > { %1352 = vrot.lane.b32.xlu1 %v4950_v36, %s4735_s29  ;;  %1350 = vrot.lane.b32.xlu0 %v4953_v37, %s4735_s29 }
 0x170   : > { %v982_v32 = vpop.permute.xlu1 %981  ;;  %v980_v33 = vpop.permute.xlu0 %979 }
 0x171   : > { %1055 = vst.msk [vmem:[#allocation3 + $0xb8] sm:$0xff] %vm1031_vm4, %v982_v32  ;;  %1054 = vst.msk [vmem:[#allocation3 + $0xb0] sm:$0xff] %vm1031_vm4, %v980_v33 }
 0x172   : > { %1356 = vrot.lane.b32.xlu1 %v4956_v38, %s4735_s29  ;;  %1354 = vrot.lane.b32.xlu0 %v4965_v39, %s4735_s29 }
 0x174   : > { %v986_v34 = vpop.permute.xlu1 %985  ;;  %v984_v35 = vpop.permute.xlu0 %983 }
 0x175   : > { %1057 = vst.msk [vmem:[#allocation3 + $0xc8] sm:$0xff] %vm1031_vm4, %v986_v34  ;;  %1056 = vst.msk [vmem:[#allocation3 + $0xc0] sm:$0xff] %vm1031_vm4, %v984_v35  ;;  %v4484_v34 = vld [vmem:[%s4783_s23 + $0x9a] sm:$0xff]  ;;  %v4483_v35 = vld [vmem:[%s4783_s23 + $0x92] sm:$0xff] }
 0x176   : > { %1360 = vrot.lane.b32.xlu1 %v4968_v40, %s4735_s29  ;;  %1358 = vrot.lane.b32.xlu0 %v4971_v41, %s4735_s29 }
 0x178   : > { %v990_v36 = vpop.permute.xlu1 %989  ;;  %v988_v37 = vpop.permute.xlu0 %987 }
 0x179   : > { %1059 = vst.msk [vmem:[#allocation3 + $0xd8] sm:$0xff] %vm1031_vm4, %v990_v36  ;;  %1058 = vst.msk [vmem:[#allocation3 + $0xd0] sm:$0xff] %vm1031_vm4, %v988_v37 }
 0x17a   : > { %1364 = vrot.lane.b32.xlu1 %v4990_v44, %s4735_s29  ;;  %1362 = vrot.lane.b32.xlu0 %v4993_v45, %s4735_s29 }
 0x17c   : > { %v994_v38 = vpop.permute.xlu1 %993  ;;  %v992_v39 = vpop.permute.xlu0 %991 }
 0x17d   : > { %1061 = vst.msk [vmem:[#allocation3 + $0xe8] sm:$0xff] %vm1031_vm4, %v994_v38  ;;  %1060 = vst.msk [vmem:[#allocation3 + $0xe0] sm:$0xff] %vm1031_vm4, %v992_v39  ;;  %v4486_v38 = vld [vmem:[%s4783_s23 + $0xb2] sm:$0xff]  ;;  %v4485_v39 = vld [vmem:[%s4783_s23 + $0xaa] sm:$0xff] }
 0x17e   : > { %1368 = vrot.lane.b32.xlu1 %v5010_v48, %s4735_s29  ;;  %1366 = vrot.lane.b32.xlu0 %v5013_v49, %s4735_s29 }
 0x180   : > { %v998_v40 = vpop.permute.xlu1 %997  ;;  %v996_v41 = vpop.permute.xlu0 %995 }
 0x181   : > { %1063 = vst.msk [vmem:[#allocation3 + $0xf8] sm:$0xff] %vm1031_vm4, %v998_v40  ;;  %1062 = vst.msk [vmem:[#allocation3 + $0xf0] sm:$0xff] %vm1031_vm4, %v996_v41 }
 0x182   : > { %1372 = vrot.lane.b32.xlu1 %v5030_v52, %s4735_s29  ;;  %1370 = vrot.lane.b32.xlu0 %v5033_v53, %s4735_s29  ;;  %v4442_v52 = vld [vmem:[%s4783_s23 + $0x1a0] sm:$0xff]  ;;  %v4441_v53 = vld [vmem:[%s4783_s23 + $0x198] sm:$0xff] }
 0x184   : > { %v1131_v44 = vpop.permute.xlu1 %1130  ;;  %v1129_v45 = vpop.permute.xlu0 %1128 }
 0x185   : > { %1226 = vst.msk [vmem:[#allocation3 + $0x8] sm:$0xff] %vm1224_vm5, %v1131_v44  ;;  %1225 = vst.msk [vmem:[#allocation3] sm:$0xff] %vm1224_vm5, %v1129_v45  ;;  %v4456_v44 = vld [vmem:[%s4783_s23 + $0xc9] sm:$0xff]  ;;  %v4455_v45 = vld [vmem:[%s4783_s23 + $0xc1] sm:$0xff] }
 0x186   : > { %1376 = vrot.lane.b32.xlu1 %v5050_v56, %s4735_s29  ;;  %1374 = vrot.lane.b32.xlu0 %v5053_v57, %s4735_s29  ;;  %v4444_v57 = vld [vmem:[%s4783_s23 + $0x39] sm:$0xff] }
 0x188   : > { %v1135_v48 = vpop.permute.xlu1 %1134  ;;  %v1133_v49 = vpop.permute.xlu0 %1132 }
 0x189   : > { %1228 = vst.msk [vmem:[#allocation3 + $0x18] sm:$0xff] %vm1224_vm5, %v1135_v48  ;;  %1227 = vst.msk [vmem:[#allocation3 + $0x10] sm:$0xff] %vm1224_vm5, %v1133_v49 }
 0x18a   : > { %1380 = vrot.lane.b32.xlu1 %v5344_v12, %s4735_s29  ;;  %1378 = vrot.lane.b32.xlu0 %v5347_v16, %s4735_s29 }
 0x18c   : > { %v1139_v56 = vpop.permute.xlu1 %1138  ;;  %v1137_v10 = vpop.permute.xlu0 %1136 }
 0x18d   : > { %1230 = vst.msk [vmem:[#allocation3 + $0x28] sm:$0xff] %vm1224_vm5, %v1139_v56  ;;  %1229 = vst.msk [vmem:[#allocation3 + $0x20] sm:$0xff] %vm1224_vm5, %v1137_v10 }
 0x18e   : > { %1384 = vrot.lane.b32.xlu1 %v4442_v52, %s4735_s29  ;;  %1382 = vrot.lane.b32.xlu0 %v4441_v53, %s4735_s29  ;;  %v4458_v52 = vld [vmem:[%s4783_s23 + $0xe1] sm:$0xff]  ;;  %v4457_v53 = vld [vmem:[%s4783_s23 + $0xd9] sm:$0xff] }
 0x190   : > { %v1143_v12 = vpop.permute.xlu1 %1142  ;;  %v1141_v16 = vpop.permute.xlu0 %1140 }
 0x191   : > { %1232 = vst.msk [vmem:[#allocation3 + $0x38] sm:$0xff] %vm1224_vm5, %v1143_v12  ;;  %1231 = vst.msk [vmem:[#allocation3 + $0x30] sm:$0xff] %vm1224_vm5, %v1141_v16 }
 0x192   : > { %1517 = vrot.lane.b32.xlu1 %v4444_v57, %s4736_s30  ;;  %1515 = vrot.lane.b32.xlu0 %v4443_v11, %s4736_s30  ;;  %v4488_v57 = vld [vmem:[%s4783_s23 + $0xca] sm:$0xff]  ;;  %v4487_v11 = vld [vmem:[%s4783_s23 + $0xc2] sm:$0xff] }
 0x194   : > { %v1147_v18 = vpop.permute.xlu1 %1146  ;;  %v1145_v21 = vpop.permute.xlu0 %1144 }
 0x195   : > { %1234 = vst.msk [vmem:[#allocation3 + $0x48] sm:$0xff] %vm1224_vm5, %v1147_v18  ;;  %1233 = vst.msk [vmem:[#allocation3 + $0x40] sm:$0xff] %vm1224_vm5, %v1145_v21 }
 0x196   : > { %1521 = vrot.lane.b32.xlu1 %v4446_v14, %s4736_s30  ;;  %1519 = vrot.lane.b32.xlu0 %v4445_v15, %s4736_s30  ;;  %v4490_v14 = vld [vmem:[%s4783_s23 + $0xe2] sm:$0xff]  ;;  %v4489_v15 = vld [vmem:[%s4783_s23 + $0xda] sm:$0xff] }
 0x198   : > { %v1151_v42 = vpop.permute.xlu1 %1150  ;;  %v1149_v43 = vpop.permute.xlu0 %1148 }
 0x199   : > { %1236 = vst.msk [vmem:[#allocation3 + $0x58] sm:$0xff] %vm1224_vm5, %v1151_v42  ;;  %1235 = vst.msk [vmem:[#allocation3 + $0x50] sm:$0xff] %vm1224_vm5, %v1149_v43 }
 0x19a   : > { %1525 = vrot.lane.b32.xlu1 %v4448_v29, %s4736_s30  ;;  %1523 = vrot.lane.b32.xlu0 %v4447_v30, %s4736_s30  ;;  %v4460_v29 = vld [vmem:[%s4783_s23 + $0xf9] sm:$0xff]  ;;  %v4459_v30 = vld [vmem:[%s4783_s23 + $0xf1] sm:$0xff] }
 0x19c   : > { %v1155_v50 = vpop.permute.xlu1 %1154  ;;  %v1153_v51 = vpop.permute.xlu0 %1152 }
 0x19d   : > { %1238 = vst.msk [vmem:[#allocation3 + $0x68] sm:$0xff] %vm1224_vm5, %v1155_v50  ;;  %1237 = vst.msk [vmem:[#allocation3 + $0x60] sm:$0xff] %vm1224_vm5, %v1153_v51 }
 0x19e   : > { %1529 = vrot.lane.b32.xlu1 %v4450_v46, %s4736_s30  ;;  %1527 = vrot.lane.b32.xlu0 %v4449_v47, %s4736_s30  ;;  %v4462_v46 = vld [vmem:[%s4783_s23 + $0x111] sm:$0xff]  ;;  %v4461_v47 = vld [vmem:[%s4783_s23 + $0x109] sm:$0xff] }
 0x1a0   : > { %v1159_v58 = vpop.permute.xlu1 %1158  ;;  %v1157_v59 = vpop.permute.xlu0 %1156 }
 0x1a1   : > { %1240 = vst.msk [vmem:[#allocation3 + $0x78] sm:$0xff] %vm1224_vm5, %v1159_v58  ;;  %1239 = vst.msk [vmem:[#allocation3 + $0x70] sm:$0xff] %vm1224_vm5, %v1157_v59  ;;  %v4494_v58 = vld [vmem:[%s4783_s23 + $0x112] sm:$0xff]  ;;  %v4493_v59 = vld [vmem:[%s4783_s23 + $0x10a] sm:$0xff] }
 0x1a2   : > { %1533 = vrot.lane.b32.xlu1 %v4452_v55, %s4736_s30  ;;  %1531 = vrot.lane.b32.xlu0 %v4451_v13, %s4736_s30  ;;  %v4491_v55 = vld [vmem:[%s4783_s23 + $0xf2] sm:$0xff] }
 0x1a4   : > { %v1163_v6 = vpop.permute.xlu1 %1162  ;;  %v1161_v3 = vpop.permute.xlu0 %1160 }
 0x1a5   : > { %1242 = vst.msk [vmem:[#allocation3 + $0x88] sm:$0xff] %vm1224_vm5, %v1163_v6  ;;  %1241 = vst.msk [vmem:[#allocation3 + $0x80] sm:$0xff] %vm1224_vm5, %v1161_v3  ;;  %v4463_v6 = vld [vmem:[%s4783_s23 + $0x121] sm:$0xff] }
 0x1a6   : > { %1708 = vrot.lane.b32.xlu1 %v4475_v2, %s4737_s12  ;;  %1535 = vrot.lane.b32.xlu0 %v4453_v1, %s4736_s30  ;;  %v4464_v1 = vld [vmem:[%s4783_s23 + $0x129] sm:$0xff] }
 0x1a8   : > { %v1167_v8 = vpop.permute.xlu1 %1166  ;;  %v1165_v9 = vpop.permute.xlu0 %1164 }
 0x1a9   : > { %1244 = vst.msk [vmem:[#allocation3 + $0x98] sm:$0xff] %vm1224_vm5, %v1167_v8  ;;  %1243 = vst.msk [vmem:[#allocation3 + $0x90] sm:$0xff] %vm1224_vm5, %v1165_v9 }
 0x1aa   : > { %1712 = vrot.lane.b32.xlu1 %v4477_v62, %s4737_s12  ;;  %1710 = vrot.lane.b32.xlu0 %v4476_v7, %s4737_s12  ;;  %v4466_v62 = vld [vmem:[%s4783_s23 + $0x141] sm:$0xff]  ;;  %v4465_v7 = vld [vmem:[%s4783_s23 + $0x139] sm:$0xff] }
 0x1ac   : > { %v1171_v22 = vpop.permute.xlu1 %1170  ;;  %v1169_v23 = vpop.permute.xlu0 %1168 }
 0x1ad   : > { %1246 = vst.msk [vmem:[#allocation3 + $0xa8] sm:$0xff] %vm1224_vm5, %v1171_v22  ;;  %1245 = vst.msk [vmem:[#allocation3 + $0xa0] sm:$0xff] %vm1224_vm5, %v1169_v23 }
 0x1ae   : > { %1716 = vrot.lane.b32.xlu1 %v4479_v19, %s4737_s12  ;;  %1714 = vrot.lane.b32.xlu0 %v4478_v20, %s4737_s12  ;;  %v4496_v19 = vld [vmem:[%s4783_s23 + $0x12a] sm:$0xff]  ;;  %v4495_v20 = vld [vmem:[%s4783_s23 + $0x122] sm:$0xff] }
 0x1b0   : > { %v1175_v26 = vpop.permute.xlu1 %1174  ;;  %v1173_v27 = vpop.permute.xlu0 %1172 }
 0x1b1   : > { %1248 = vst.msk [vmem:[#allocation3 + $0xb8] sm:$0xff] %vm1224_vm5, %v1175_v26  ;;  %1247 = vst.msk [vmem:[#allocation3 + $0xb0] sm:$0xff] %vm1224_vm5, %v1173_v27 }
 0x1b2   : > { %1720 = vrot.lane.b32.xlu1 %v4481_v24, %s4737_s12  ;;  %1718 = vrot.lane.b32.xlu0 %v4480_v25, %s4737_s12  ;;  %v4498_v24 = vld [vmem:[%s4783_s23 + $0x142] sm:$0xff]  ;;  %v4497_v25 = vld [vmem:[%s4783_s23 + $0x13a] sm:$0xff] }
 0x1b4   : > { %v1179_v32 = vpop.permute.xlu1 %1178  ;;  %v1177_v33 = vpop.permute.xlu0 %1176 }
 0x1b5   : > { %1250 = vst.msk [vmem:[#allocation3 + $0xc8] sm:$0xff] %vm1224_vm5, %v1179_v32  ;;  %1249 = vst.msk [vmem:[#allocation3 + $0xc0] sm:$0xff] %vm1224_vm5, %v1177_v33 }
 0x1b6   : > { %1537 = vrot.lane.b32.xlu1 %v4454_v28, %s4736_s30  ;;  %1722 = vrot.lane.b32.xlu0 %v4482_v31, %s4737_s12  ;;  %v4468_v28 = vld [vmem:[%s4783_s23 + $0x159] sm:$0xff]  ;;  %v4467_v31 = vld [vmem:[%s4783_s23 + $0x151] sm:$0xff] }
 0x1b8   : > { %v1183_v36 = vpop.permute.xlu1 %1182  ;;  %v1181_v37 = vpop.permute.xlu0 %1180 }
 0x1b9   : > { %1252 = vst.msk [vmem:[#allocation3 + $0xd8] sm:$0xff] %vm1224_vm5, %v1183_v36  ;;  %1251 = vst.msk [vmem:[#allocation3 + $0xd0] sm:$0xff] %vm1224_vm5, %v1181_v37 }
 0x1ba   : > { %1726 = vrot.lane.b32.xlu1 %v4484_v34, %s4737_s12  ;;  %1724 = vrot.lane.b32.xlu0 %v4483_v35, %s4737_s12  ;;  %v4470_v34 = vld [vmem:[%s4783_s23 + $0x171] sm:$0xff]  ;;  %v4469_v35 = vld [vmem:[%s4783_s23 + $0x169] sm:$0xff] }
 0x1bc   : > { %v1187_v40 = vpop.permute.xlu1 %1186  ;;  %v1185_v41 = vpop.permute.xlu0 %1184 }
 0x1bd   : > { %1254 = vst.msk [vmem:[#allocation3 + $0xe8] sm:$0xff] %vm1224_vm5, %v1187_v40  ;;  %1253 = vst.msk [vmem:[#allocation3 + $0xe0] sm:$0xff] %vm1224_vm5, %v1185_v41 }
 0x1be   : > { %1730 = vrot.lane.b32.xlu1 %v4486_v38, %s4737_s12  ;;  %1728 = vrot.lane.b32.xlu0 %v4485_v39, %s4737_s12  ;;  %v4500_v38 = vld [vmem:[%s4783_s23 + $0x15a] sm:$0xff]  ;;  %v4499_v39 = vld [vmem:[%s4783_s23 + $0x152] sm:$0xff] }
 0x1c0   : > { %v1191_v48 = vpop.permute.xlu1 %1190  ;;  %v1189_v49 = vpop.permute.xlu0 %1188 }
 0x1c1   : > { %1256 = vst.msk [vmem:[#allocation3 + $0xf8] sm:$0xff] %vm1224_vm5, %v1191_v48  ;;  %1255 = vst.msk [vmem:[#allocation3 + $0xf0] sm:$0xff] %vm1224_vm5, %v1189_v49 }
 0x1c2   : > { %1541 = vrot.lane.b32.xlu1 %v4456_v44, %s4736_s30  ;;  %1539 = vrot.lane.b32.xlu0 %v4455_v45, %s4736_s30  ;;  %v4502_v44 = vld [vmem:[%s4783_s23 + $0x172] sm:$0xff]  ;;  %v4501_v45 = vld [vmem:[%s4783_s23 + $0x16a] sm:$0xff] }
 0x1c4   : > { %v1325_v56 = vpop.permute.xlu1 %1324  ;;  %v1323_v10 = vpop.permute.xlu0 %1322 }
 0x1c5   : > { %1420 = vst.msk [vmem:[#allocation3 + $0x8] sm:$0xff] %vm1418_vm7, %v1325_v56  ;;  %1419 = vst.msk [vmem:[#allocation3] sm:$0xff] %vm1418_vm7, %v1323_v10  ;;  %v4474_v56 = vld [vmem:[%s4783_s23 + $0x1a1] sm:$0xff]  ;;  %v4473_v10 = vld [vmem:[%s4783_s23 + $0x199] sm:$0xff] }
 0x1c6   : > { %1545 = vrot.lane.b32.xlu1 %v4458_v52, %s4736_s30  ;;  %1543 = vrot.lane.b32.xlu0 %v4457_v53, %s4736_s30 }
 0x1c8   : > { %v1329_v12 = vpop.permute.xlu1 %1328  ;;  %v1327_v16 = vpop.permute.xlu0 %1326 }
 0x1c9   : > { %1422 = vst.msk [vmem:[#allocation3 + $0x18] sm:$0xff] %vm1418_vm7, %v1329_v12  ;;  %1421 = vst.msk [vmem:[#allocation3 + $0x10] sm:$0xff] %vm1418_vm7, %v1327_v16  ;;  %v4505_v16 = vld [vmem:[%s4783_s23 + $0x19a] sm:$0xff] }
 0x1ca   : > { %1734 = vrot.lane.b32.xlu1 %v4488_v57, %s4737_s12  ;;  %1732 = vrot.lane.b32.xlu0 %v4487_v11, %s4737_s12 }
 0x1cc   : > { %v1333_v18 = vpop.permute.xlu1 %1332  ;;  %v1331_v21 = vpop.permute.xlu0 %1330 }
 0x1cd   : > { %1424 = vst.msk [vmem:[#allocation3 + $0x28] sm:$0xff] %vm1418_vm7, %v1333_v18  ;;  %1423 = vst.msk [vmem:[#allocation3 + $0x20] sm:$0xff] %vm1418_vm7, %v1331_v21 }
 0x1ce   : > { %1738 = vrot.lane.b32.xlu1 %v4490_v14, %s4737_s12  ;;  %1736 = vrot.lane.b32.xlu0 %v4489_v15, %s4737_s12 }
 0x1d0   : > { %v1337_v42 = vpop.permute.xlu1 %1336  ;;  %v1335_v43 = vpop.permute.xlu0 %1334 }
 0x1d1   : > { %1426 = vst.msk [vmem:[#allocation3 + $0x38] sm:$0xff] %vm1418_vm7, %v1337_v42  ;;  %1425 = vst.msk [vmem:[#allocation3 + $0x30] sm:$0xff] %vm1418_vm7, %v1335_v43 }
 0x1d2   : > { %1549 = vrot.lane.b32.xlu1 %v4460_v29, %s4736_s30  ;;  %1547 = vrot.lane.b32.xlu0 %v4459_v30, %s4736_s30 }
 0x1d4   : > { %v1341_v50 = vpop.permute.xlu1 %1340  ;;  %v1339_v51 = vpop.permute.xlu0 %1338 }
 0x1d5   : > { %1428 = vst.msk [vmem:[#allocation3 + $0x48] sm:$0xff] %vm1418_vm7, %v1341_v50  ;;  %1427 = vst.msk [vmem:[#allocation3 + $0x40] sm:$0xff] %vm1418_vm7, %v1339_v51 }
 0x1d6   : > { %1553 = vrot.lane.b32.xlu1 %v4462_v46, %s4736_s30  ;;  %1551 = vrot.lane.b32.xlu0 %v4461_v47, %s4736_s30 }
 0x1d8   : > { %v1345_v13 = vpop.permute.xlu1 %1344  ;;  %v1343_v17 = vpop.permute.xlu0 %1342 }
 0x1d9   : > { %1430 = vst.msk [vmem:[#allocation3 + $0x58] sm:$0xff] %vm1418_vm7, %v1345_v13  ;;  %1429 = vst.msk [vmem:[#allocation3 + $0x50] sm:$0xff] %vm1418_vm7, %v1343_v17 }
 0x1da   : > { %1742 = vrot.lane.b32.xlu1 %v4492_v54, %s4737_s12  ;;  %1740 = vrot.lane.b32.xlu0 %v4491_v55, %s4737_s12 }
 0x1dc   : > { %v1349_v0 = vpop.permute.xlu1 %1348  ;;  %v1347_v2 = vpop.permute.xlu0 %1346 }
 0x1dd   : > { %1432 = vst.msk [vmem:[#allocation3 + $0x68] sm:$0xff] %vm1418_vm7, %v1349_v0  ;;  %1431 = vst.msk [vmem:[#allocation3 + $0x60] sm:$0xff] %vm1418_vm7, %v1347_v2 }
 0x1de   : > { %1746 = vrot.lane.b32.xlu1 %v4494_v58, %s4737_s12  ;;  %1744 = vrot.lane.b32.xlu0 %v4493_v59, %s4737_s12 }
 0x1e0   : > { %v1353_v3 = vpop.permute.xlu1 %1352  ;;  %v1351_v61 = vpop.permute.xlu0 %1350 }
 0x1e1   : > { %1434 = vst.msk [vmem:[#allocation3 + $0x78] sm:$0xff] %vm1418_vm7, %v1353_v3  ;;  %1433 = vst.msk [vmem:[#allocation3 + $0x70] sm:$0xff] %vm1418_vm7, %v1351_v61 }
 0x1e2   : > { %1557 = vrot.lane.b32.xlu1 %v4464_v1, %s4736_s30  ;;  %1555 = vrot.lane.b32.xlu0 %v4463_v6, %s4736_s30 }
 0x1e4   : > { %v1357_v8 = vpop.permute.xlu1 %1356  ;;  %v1355_v9 = vpop.permute.xlu0 %1354 }
 0x1e5   : > { %1436 = vst.msk [vmem:[#allocation3 + $0x88] sm:$0xff] %vm1418_vm7, %v1357_v8  ;;  %1435 = vst.msk [vmem:[#allocation3 + $0x80] sm:$0xff] %vm1418_vm7, %v1355_v9 }
 0x1e6   : > { %1561 = vrot.lane.b32.xlu1 %v4466_v62, %s4736_s30  ;;  %1559 = vrot.lane.b32.xlu0 %v4465_v7, %s4736_s30 }
 0x1e8   : > { %v1361_v22 = vpop.permute.xlu1 %1360  ;;  %v1359_v23 = vpop.permute.xlu0 %1358 }
 0x1e9   : > { %1438 = vst.msk [vmem:[#allocation3 + $0x98] sm:$0xff] %vm1418_vm7, %v1361_v22  ;;  %1437 = vst.msk [vmem:[#allocation3 + $0x90] sm:$0xff] %vm1418_vm7, %v1359_v23 }
 0x1ea   : > { %1750 = vrot.lane.b32.xlu1 %v4496_v19, %s4737_s12  ;;  %1748 = vrot.lane.b32.xlu0 %v4495_v20, %s4737_s12 }
 0x1ec   : > { %v1365_v26 = vpop.permute.xlu1 %1364  ;;  %v1363_v27 = vpop.permute.xlu0 %1362 }
 0x1ed   : > { %1440 = vst.msk [vmem:[#allocation3 + $0xa8] sm:$0xff] %vm1418_vm7, %v1365_v26  ;;  %1439 = vst.msk [vmem:[#allocation3 + $0xa0] sm:$0xff] %vm1418_vm7, %v1363_v27 }
 0x1ee   : > { %1754 = vrot.lane.b32.xlu1 %v4498_v24, %s4737_s12  ;;  %1752 = vrot.lane.b32.xlu0 %v4497_v25, %s4737_s12 }
 0x1f0   : > { %v1369_v32 = vpop.permute.xlu1 %1368  ;;  %v1367_v33 = vpop.permute.xlu0 %1366 }
 0x1f1   : > { %1442 = vst.msk [vmem:[#allocation3 + $0xb8] sm:$0xff] %vm1418_vm7, %v1369_v32  ;;  %1441 = vst.msk [vmem:[#allocation3 + $0xb0] sm:$0xff] %vm1418_vm7, %v1367_v33 }
 0x1f2   : > { %1565 = vrot.lane.b32.xlu1 %v4468_v28, %s4736_s30  ;;  %1563 = vrot.lane.b32.xlu0 %v4467_v31, %s4736_s30 }
 0x1f4   : > { %v1373_v36 = vpop.permute.xlu1 %1372  ;;  %v1371_v37 = vpop.permute.xlu0 %1370 }
 0x1f5   : > { %1444 = vst.msk [vmem:[#allocation3 + $0xc8] sm:$0xff] %vm1418_vm7, %v1373_v36  ;;  %1443 = vst.msk [vmem:[#allocation3 + $0xc0] sm:$0xff] %vm1418_vm7, %v1371_v37 }
 0x1f6   : > { %1569 = vrot.lane.b32.xlu1 %v4470_v34, %s4736_s30  ;;  %1567 = vrot.lane.b32.xlu0 %v4469_v35, %s4736_s30 }
 0x1f8   : > { %v1377_v40 = vpop.permute.xlu1 %1376  ;;  %v1375_v41 = vpop.permute.xlu0 %1374 }
 0x1f9   : > { %1446 = vst.msk [vmem:[#allocation3 + $0xd8] sm:$0xff] %vm1418_vm7, %v1377_v40  ;;  %1445 = vst.msk [vmem:[#allocation3 + $0xd0] sm:$0xff] %vm1418_vm7, %v1375_v41 }
 0x1fa   : > { %1758 = vrot.lane.b32.xlu1 %v4500_v38, %s4737_s12  ;;  %1756 = vrot.lane.b32.xlu0 %v4499_v39, %s4737_s12 }
 0x1fc   : > { %v1381_v48 = vpop.permute.xlu1 %1380  ;;  %v1379_v49 = vpop.permute.xlu0 %1378 }
 0x1fd   : > { %1448 = vst.msk [vmem:[#allocation3 + $0xe8] sm:$0xff] %vm1418_vm7, %v1381_v48  ;;  %1447 = vst.msk [vmem:[#allocation3 + $0xe0] sm:$0xff] %vm1418_vm7, %v1379_v49 }
 0x1fe   : > { %1762 = vrot.lane.b32.xlu1 %v4502_v44, %s4737_s12  ;;  %1760 = vrot.lane.b32.xlu0 %v4501_v45, %s4737_s12 }
 0x200   : > { %v1385_v52 = vpop.permute.xlu1 %1384  ;;  %v1383_v53 = vpop.permute.xlu0 %1382 }
 0x201   : > { %1450 = vst.msk [vmem:[#allocation3 + $0xf8] sm:$0xff] %vm1418_vm7, %v1385_v52  ;;  %1449 = vst.msk [vmem:[#allocation3 + $0xf0] sm:$0xff] %vm1418_vm7, %v1383_v53 }
 0x202   : > { %1573 = vrot.lane.b32.xlu1 %v5446_v60, %s4736_s30  ;;  %1571 = vrot.lane.b32.xlu0 %v5449_v63, %s4736_s30  ;;  %v4506_v63 = vld [vmem:[%s4783_s23 + $0x1a2] sm:$0xff] }
 0x204   : > { %v1518_v57 = vpop.permute.xlu1 %1517  ;;  %v1516_v11 = vpop.permute.xlu0 %1515 }
 0x205   : > { %1613 = vst.msk [vmem:[#allocation3 + $0x8] sm:$0xff] %vm1611_vm8, %v1518_v57  ;;  %1612 = vst.msk [vmem:[#allocation3] sm:$0xff] %vm1611_vm8, %v1516_v11 }
 0x206   : > { %1577 = vrot.lane.b32.xlu1 %v4474_v56, %s4736_s30  ;;  %1575 = vrot.lane.b32.xlu0 %v4473_v10, %s4736_s30 }
 0x208   : > { %v1522_v12 = vpop.permute.xlu1 %1521  ;;  %v1520_v60 = vpop.permute.xlu0 %1519 }
 0x209   : > { %1615 = vst.msk [vmem:[#allocation3 + $0x18] sm:$0xff] %vm1611_vm8, %v1522_v12  ;;  %1614 = vst.msk [vmem:[#allocation3 + $0x10] sm:$0xff] %vm1611_vm8, %v1520_v60 }
 0x20a   : > { %1766 = vrot.lane.b32.xlu1 %v5548_v4, %s4737_s12  ;;  %1764 = vrot.lane.b32.xlu0 %v5551_v5, %s4737_s12 }
 0x20c   : > { %v1526_v14 = vpop.permute.xlu1 %1525  ;;  %v1524_v15 = vpop.permute.xlu0 %1523 }
 0x20d   : > { %1617 = vst.msk [vmem:[#allocation3 + $0x28] sm:$0xff] %vm1611_vm8, %v1526_v14  ;;  %1616 = vst.msk [vmem:[#allocation3 + $0x20] sm:$0xff] %vm1611_vm8, %v1524_v15 }
 0x20e   : > { %1770 = vrot.lane.b32.xlu1 %v4506_v63, %s4737_s12  ;;  %1768 = vrot.lane.b32.xlu0 %v4505_v16, %s4737_s12 }
 0x210   : > { %v1530_v18 = vpop.permute.xlu1 %1529  ;;  %v1528_v21 = vpop.permute.xlu0 %1527 }
 0x211   : > { %1619 = vst.msk [vmem:[#allocation3 + $0x38] sm:$0xff] %vm1611_vm8, %v1530_v18  ;;  %1618 = vst.msk [vmem:[#allocation3 + $0x30] sm:$0xff] %vm1611_vm8, %v1528_v21 }
 0x214   : > { %v1534_v4 = vpop.permute.xlu1 %1533  ;;  %v1532_v5 = vpop.permute.xlu0 %1531 }
 0x215   : > { %1621 = vst.msk [vmem:[#allocation3 + $0x48] sm:$0xff] %vm1611_vm8, %v1534_v4  ;;  %1620 = vst.msk [vmem:[#allocation3 + $0x40] sm:$0xff] %vm1611_vm8, %v1532_v5 }
 0x218   : > { %v1709_v29 = vpop.permute.xlu1 %1708  ;;  %v1536_v30 = vpop.permute.xlu0 %1535 }
 0x219   : > { %1805 = vst.msk [vmem:[#allocation3] sm:$0xff] %vm1804_vm9, %v1709_v29 }
 0x21a   : > { %1622 = vst.msk [vmem:[#allocation3 + $0x50] sm:$0xff] %vm1611_vm8, %v1536_v30 }
 0x21c   : > { %v1713_v42 = vpop.permute.xlu1 %1712  ;;  %v1711_v43 = vpop.permute.xlu0 %1710 }
 0x21d   : > { %1807 = vst.msk [vmem:[#allocation3 + $0x10] sm:$0xff] %vm1804_vm9, %v1713_v42  ;;  %1806 = vst.msk [vmem:[#allocation3 + $0x8] sm:$0xff] %vm1804_vm9, %v1711_v43 }
 0x220   : > { %v1717_v46 = vpop.permute.xlu1 %1716  ;;  %v1715_v47 = vpop.permute.xlu0 %1714  ;;  %v1837_v54 = vld [vmem:[#allocation3] sm:$0xff] }
 0x221   : > { %1809 = vst.msk [vmem:[#allocation3 + $0x20] sm:$0xff] %vm1804_vm9, %v1717_v46  ;;  %1808 = vst.msk [vmem:[#allocation3 + $0x18] sm:$0xff] %vm1804_vm9, %v1715_v47 }
 0x224   : > { %v1721_v50 = vpop.permute.xlu1 %1720  ;;  %v1719_v51 = vpop.permute.xlu0 %1718  ;;  %v1838_v55 = vld [vmem:[#allocation3 + $0x8] sm:$0xff]  ;;  %v1839_v59 = vld [vmem:[#allocation3 + $0x10] sm:$0xff] }
 0x225   : > { %1811 = vst.msk [vmem:[#allocation3 + $0x30] sm:$0xff] %vm1804_vm9, %v1721_v50  ;;  %1810 = vst.msk [vmem:[#allocation3 + $0x28] sm:$0xff] %vm1804_vm9, %v1719_v51  ;;  %v1869_v13 = vpack.c.bf16 %v1838_v55, %v1837_v54 }
 0x227   : > { %4626 = vmatprep.mubr.msk.bf16.mxu0 %vm1912_vm10, %v1869_v13 }
 0x228   : > { %v1538_v17 = vpop.permute.xlu1 %1537  ;;  %v1723_v58 = vpop.permute.xlu0 %1722  ;;  %v1840_v0 = vld [vmem:[#allocation3 + $0x18] sm:$0xff]  ;;  %v1841_v3 = vld [vmem:[#allocation3 + $0x20] sm:$0xff] }
 0x229   : > { %1623 = vst.msk [vmem:[#allocation3 + $0x58] sm:$0xff] %vm1611_vm8, %v1538_v17  ;;  %v1870_v2 = vpack.c.bf16 %v1840_v0, %v1839_v59 }
 0x22a   : > { %1812 = vst.msk [vmem:[#allocation3 + $0x38] sm:$0xff] %vm1804_vm9, %v1723_v58 }
 0x22b   : > { %4627 = vmatmul.mubr.msk.bf16.vlgmr.msra.gmra.mxu0 %vm1912_vm10, %v1870_v2 }
 0x22c   : > { %v1727_v1 = vpop.permute.xlu1 %1726  ;;  %v1725_v6 = vpop.permute.xlu0 %1724  ;;  %v1842_v61 = vld [vmem:[#allocation3 + $0x28] sm:$0xff]  ;;  %v1843_v9 = vld [vmem:[#allocation3 + $0x30] sm:$0xff] }
 0x22d   : > { %1814 = vst.msk [vmem:[#allocation3 + $0x48] sm:$0xff] %vm1804_vm9, %v1727_v1  ;;  %1813 = vst.msk [vmem:[#allocation3 + $0x40] sm:$0xff] %vm1804_vm9, %v1725_v6  ;;  %v1871_v62 = vpack.c.bf16 %v1842_v61, %v1841_v3  ;;  %v4738_v1 = vmov 0.0  }
 0x22e   : > { %2158 = vst.msk [vmem:[#allocation2] sm:$0xff] %vm258_vm0, %v4738_v1  ;;  %2159 = vst.msk [vmem:[#allocation2 + $0x8] sm:$0xff] %vm258_vm0, %v4738_v1 }
 0x22f   : > { %4630 = vmatprep.mubr.msk.bf16.mxu0 %vm1912_vm10, %v1871_v62  ;;  %2163 = vst.msk [vmem:[#allocation2 + $0x198] sm:$0xff] %vm258_vm0, %v4738_v1  ;;  %2164 = vst.msk [vmem:[#allocation2 + $0x1a0] sm:$0xff] %vm258_vm0, %v4738_v1 }
 0x230   : > { %v1731_v7 = vpop.permute.xlu1 %1730  ;;  %v1729_v8 = vpop.permute.xlu0 %1728  ;;  %2167 = vst.msk [vmem:[#allocation2] sm:$0x1] %vm2166_vm11, %v4738_v1  ;;  %2168 = vst.msk [vmem:[#allocation2 + $0x18] sm:$0x1] %vm2166_vm11, %v4738_v1 }
 0x231   : > { %v1844_v19 = vld [vmem:[#allocation3 + $0x38] sm:$0xff]  ;;  %1816 = vst.msk [vmem:[#allocation3 + $0x58] sm:$0xff] %vm1804_vm9, %v1731_v7  ;;  %1815 = vst.msk [vmem:[#allocation3 + $0x50] sm:$0xff] %vm1804_vm9, %v1729_v8 }
 0x232   : > { %v1872_v20 = vpack.c.bf16 %v1844_v19, %v1843_v9  ;;  %2169 = vst.msk [vmem:[#allocation2 + $0x30] sm:$0x1] %vm2166_vm11, %v4738_v1  ;;  %2170 = vst.msk [vmem:[#allocation2 + $0x48] sm:$0x1] %vm2166_vm11, %v4738_v1 }
 0x233   : > { %2171 = vst.msk [vmem:[#allocation2 + $0x60] sm:$0x1] %vm2166_vm11, %v4738_v1  ;;  %2172 = vst.msk [vmem:[#allocation2 + $0x78] sm:$0x1] %vm2166_vm11, %v4738_v1 }
 0x234   : > { %4631 = vmatmul.mubr.msk.bf16.gmra.mxu0 %vm1912_vm10, %v1872_v20  ;;  %v1542_v22 = vpop.permute.xlu1 %1541  ;;  %v1540_v23 = vpop.permute.xlu0 %1539  ;;  %v1845_v24 = vld [vmem:[#allocation3 + $0x40] sm:$0xff]  ;;  %v1846_v25 = vld [vmem:[#allocation3 + $0x48] sm:$0xff]  ;;  %2173 = vst.msk [vmem:[#allocation2 + $0x90] sm:$0x1] %vm2166_vm11, %v4738_v1  ;;  %2174 = vst.msk [vmem:[#allocation2 + $0xa8] sm:$0x1] %vm2166_vm11, %v4738_v1 }
 0x235   : > { %1625 = vst.msk [vmem:[#allocation3 + $0x68] sm:$0xff] %vm1611_vm8, %v1542_v22  ;;  %1624 = vst.msk [vmem:[#allocation3 + $0x60] sm:$0xff] %vm1611_vm8, %v1540_v23  ;;  %v1873_v26 = vpack.c.bf16 %v1846_v25, %v1845_v24  ;;  %v2300_v19 = vld [vmem:[#allocation2 + $0x1] sm:$0xff] }
 0x236   : > { %2175 = vst.msk [vmem:[#allocation2 + $0xc0] sm:$0x1] %vm2166_vm11, %v4738_v1  ;;  %2176 = vst.msk [vmem:[#allocation2 + $0xd8] sm:$0x1] %vm2166_vm11, %v4738_v1  ;;  %2364 = vrot.lane.b32.xlu0 %v2300_v19, %s4730_s24 }
 0x237   : > { %4634 = vmatprep.mubr.msk.bf16.mxu0 %vm1912_vm10, %v1873_v26  ;;  %2177 = vst.msk [vmem:[#allocation2 + $0xf0] sm:$0x1] %vm2166_vm11, %v4738_v1  ;;  %2178 = vst.msk [vmem:[#allocation2 + $0x108] sm:$0x1] %vm2166_vm11, %v4738_v1 }
 0x238   : > { %v1546_v27 = vpop.permute.xlu1 %1545  ;;  %v1544_v28 = vpop.permute.xlu0 %1543  ;;  %v1847_v31 = vld [vmem:[#allocation3 + $0x50] sm:$0xff]  ;;  %v1848_v32 = vld [vmem:[#allocation3 + $0x58] sm:$0xff]  ;;  %2179 = vst.msk [vmem:[#allocation2 + $0x120] sm:$0x1] %vm2166_vm11, %v4738_v1  ;;  %2180 = vst.msk [vmem:[#allocation2 + $0x138] sm:$0x1] %vm2166_vm11, %v4738_v1 }
 0x239   : > { %1627 = vst.msk [vmem:[#allocation3 + $0x78] sm:$0xff] %vm1611_vm8, %v1546_v27  ;;  %1626 = vst.msk [vmem:[#allocation3 + $0x70] sm:$0xff] %vm1611_vm8, %v1544_v28  ;;  %v1874_v33 = vpack.c.bf16 %v1848_v32, %v1847_v31 }
 0x23a   : > { %2181 = vst.msk [vmem:[#allocation2 + $0x150] sm:$0x1] %vm2166_vm11, %v4738_v1  ;;  %2182 = vst.msk [vmem:[#allocation2 + $0x168] sm:$0x1] %vm2166_vm11, %v4738_v1 }
 0x23b   : > { %2183 = vst.msk [vmem:[#allocation2 + $0x180] sm:$0x1] %vm2166_vm11, %v4738_v1  ;;  %2186 = vst.msk [vmem:[#allocation2 + $0x29] sm:$0x1] %vm2166_vm11, %v4738_v1 }
 0x23c   : > { %4635 = vmatmul.mubr.msk.bf16.gmra.mxu0 %vm1912_vm10, %v1874_v33  ;;  %v1735_v34 = vpop.permute.xlu1 %1734  ;;  %v1733_v35 = vpop.permute.xlu0 %1732  ;;  %2187 = vst.msk [vmem:[#allocation2 + $0x41] sm:$0x1] %vm2166_vm11, %v4738_v1  ;;  %2188 = vst.msk [vmem:[#allocation2 + $0x59] sm:$0x1] %vm2166_vm11, %v4738_v1 }
 0x23d   : > { %1818 = vst.msk [vmem:[#allocation3 + $0x68] sm:$0xff] %vm1804_vm9, %v1735_v34  ;;  %1817 = vst.msk [vmem:[#allocation3 + $0x60] sm:$0xff] %vm1804_vm9, %v1733_v35 }
 0x23e   : > { %2189 = vst.msk [vmem:[#allocation2 + $0x71] sm:$0x1] %vm2166_vm11, %v4738_v1  ;;  %2190 = vst.msk [vmem:[#allocation2 + $0x89] sm:$0x1] %vm2166_vm11, %v4738_v1 }
 0x23f   : > { %2191 = vst.msk [vmem:[#allocation2 + $0xa1] sm:$0x1] %vm2166_vm11, %v4738_v1  ;;  %2192 = vst.msk [vmem:[#allocation2 + $0xb9] sm:$0x1] %vm2166_vm11, %v4738_v1 }
 0x240   : > { %v1739_v36 = vpop.permute.xlu1 %1738  ;;  %v1737_v37 = vpop.permute.xlu0 %1736  ;;  %2193 = vst.msk [vmem:[#allocation2 + $0xd1] sm:$0x1] %vm2166_vm11, %v4738_v1  ;;  %2194 = vst.msk [vmem:[#allocation2 + $0xe9] sm:$0x1] %vm2166_vm11, %v4738_v1 }
 0x241   : > { %1820 = vst.msk [vmem:[#allocation3 + $0x78] sm:$0xff] %vm1804_vm9, %v1739_v36  ;;  %1819 = vst.msk [vmem:[#allocation3 + $0x70] sm:$0xff] %vm1804_vm9, %v1737_v37 }
 0x242   : > { %2195 = vst.msk [vmem:[#allocation2 + $0x101] sm:$0x1] %vm2166_vm11, %v4738_v1  ;;  %2196 = vst.msk [vmem:[#allocation2 + $0x119] sm:$0x1] %vm2166_vm11, %v4738_v1 }
 0x243   : > { %2197 = vst.msk [vmem:[#allocation2 + $0x131] sm:$0x1] %vm2166_vm11, %v4738_v1  ;;  %2198 = vst.msk [vmem:[#allocation2 + $0x149] sm:$0x1] %vm2166_vm11, %v4738_v1 }
 0x244   : > { %v1550_v38 = vpop.permute.xlu1 %1549  ;;  %v1548_v39 = vpop.permute.xlu0 %1547  ;;  %v1849_v40 = vld [vmem:[#allocation3 + $0x60] sm:$0xff]  ;;  %v1850_v41 = vld [vmem:[#allocation3 + $0x68] sm:$0xff]  ;;  %2199 = vst.msk [vmem:[#allocation2 + $0x161] sm:$0x1] %vm2166_vm11, %v4738_v1  ;;  %2200 = vst.msk [vmem:[#allocation2 + $0x179] sm:$0x1] %vm2166_vm11, %v4738_v1 }
 0x245   : > { %1629 = vst.msk [vmem:[#allocation3 + $0x88] sm:$0xff] %vm1611_vm8, %v1550_v38  ;;  %1628 = vst.msk [vmem:[#allocation3 + $0x80] sm:$0xff] %vm1611_vm8, %v1548_v39  ;;  %v1875_v44 = vpack.c.bf16 %v1850_v41, %v1849_v40  ;;  %v2236_v39 = vld [vmem:[#allocation2] sm:$0xff] }
 0x246   : > { %2201 = vst.msk [vmem:[#allocation2 + $0x191] sm:$0x1] %vm2166_vm11, %v4738_v1  ;;  %2184 = vst.msk [vmem:[#allocation2 + $0x198] sm:$0x1] %vm2166_vm11, %v4738_v1  ;;  %v5978_v41 = vld [vmem:[%s7013_s2] ss:$0 sm:$0xff] }
 0x247   : > { %4638 = vmatprep.mubr.msk.bf16.mxu0 %vm1912_vm10, %v1875_v44  ;;  %2161 = vst.msk [vmem:[#allocation2 + $0x10] sm:$0x3] %vm2160_vm12, %v4738_v1  ;;  %2165 = vst.msk [vmem:[#allocation2 + $0x1a8] sm:$0x3] %vm2160_vm12, %v4738_v1  ;;  %v2237_v44 = vld [vmem:[#allocation2 + $0x8] sm:$0xff] }
 0x248   : > { %v1554_v45 = vpop.permute.xlu1 %1553  ;;  %v1552_v48 = vpop.permute.xlu0 %1551  ;;  %v1851_v49 = vld [vmem:[#allocation3 + $0x70] sm:$0xff]  ;;  %v1852_v52 = vld [vmem:[#allocation3 + $0x78] sm:$0xff]  ;;  %2185 = vst.msk [vmem:[#allocation2 + $0x11] sm:$0x1] %vm2166_vm11, %v4738_v1  ;;  %2202 = vst.msk [vmem:[#allocation2 + $0x1a9] sm:$0x1] %vm2166_vm11, %v4738_v1 }
 0x249   : > { %1631 = vst.msk [vmem:[#allocation3 + $0x98] sm:$0xff] %vm1611_vm8, %v1554_v45  ;;  %1630 = vst.msk [vmem:[#allocation3 + $0x90] sm:$0xff] %vm1611_vm8, %v1552_v48  ;;  %v1876_v53 = vpack.c.bf16 %v1852_v52, %v1851_v49 }
 0x24a   : > { %2268 = vst.msk [vmem:[#allocation3] sm:$0xff] %vm258_vm0, %v2236_v39  ;;  %2269 = vst.msk [vmem:[#allocation3 + $0x8] sm:$0xff] %vm258_vm0, %v2237_v44 }
 0x24b   : > { %4639 = vmatmul.mubr.msk.bf16.gmra.mxu0 %vm1912_vm10, %v1876_v53 }
 0x24c   : > { %v1743_v56 = vpop.permute.xlu1 %1742  ;;  %v1741_v10 = vpop.permute.xlu0 %1740 }
 0x24d   : > { %1822 = vst.msk [vmem:[#allocation3 + $0x88] sm:$0xff] %vm1804_vm9, %v1743_v56  ;;  %1821 = vst.msk [vmem:[#allocation3 + $0x80] sm:$0xff] %vm1804_vm9, %v1741_v10 }
 0x24e   : > { %v2301_v26 = vld [vmem:[#allocation2 + $0x9] sm:$0xff] }
 0x24f   : > { %2366 = vrot.lane.b32.xlu1 %v2301_v26, %s4730_s24 }
 0x250   : > { %v1747_v57 = vpop.permute.xlu1 %1746  ;;  %v1745_v11 = vpop.permute.xlu0 %1744 }
 0x251   : > { %1824 = vst.msk [vmem:[#allocation3 + $0x98] sm:$0xff] %vm1804_vm9, %v1747_v57  ;;  %1823 = vst.msk [vmem:[#allocation3 + $0x90] sm:$0xff] %vm1804_vm9, %v1745_v11 }
 0x254   : > { %v1558_v12 = vpop.permute.xlu1 %1557  ;;  %v1556_v60 = vpop.permute.xlu0 %1555  ;;  %v1853_v63 = vld [vmem:[#allocation3 + $0x80] sm:$0xff]  ;;  %v1854_v16 = vld [vmem:[#allocation3 + $0x88] sm:$0xff] }
 0x255   : > { %1633 = vst.msk [vmem:[#allocation3 + $0xa8] sm:$0xff] %vm1611_vm8, %v1558_v12  ;;  %1632 = vst.msk [vmem:[#allocation3 + $0xa0] sm:$0xff] %vm1611_vm8, %v1556_v60  ;;  %v1877_v14 = vpack.c.bf16 %v1854_v16, %v1853_v63 }
 0x257   : > { %4642 = vmatprep.mubr.msk.bf16.mxu0 %vm1912_vm10, %v1877_v14 }
 0x258   : > { %v1562_v15 = vpop.permute.xlu1 %1561  ;;  %v1560_v18 = vpop.permute.xlu0 %1559  ;;  %v1855_v21 = vld [vmem:[#allocation3 + $0x90] sm:$0xff]  ;;  %v1856_v4 = vld [vmem:[#allocation3 + $0x98] sm:$0xff] }
 0x259   : > { %1635 = vst.msk [vmem:[#allocation3 + $0xb8] sm:$0xff] %vm1611_vm8, %v1562_v15  ;;  %1634 = vst.msk [vmem:[#allocation3 + $0xb0] sm:$0xff] %vm1611_vm8, %v1560_v18  ;;  %v1878_v5 = vpack.c.bf16 %v1856_v4, %v1855_v21 }
 0x25b   : > { %4643 = vmatmul.mubr.msk.bf16.gmra.mxu0 %vm1912_vm10, %v1878_v5 }
 0x25c   : > { %v1751_v29 = vpop.permute.xlu1 %1750  ;;  %v1749_v30 = vpop.permute.xlu0 %1748 }
 0x25d   : > { %1826 = vst.msk [vmem:[#allocation3 + $0xa8] sm:$0xff] %vm1804_vm9, %v1751_v29  ;;  %1825 = vst.msk [vmem:[#allocation3 + $0xa0] sm:$0xff] %vm1804_vm9, %v1749_v30 }
 0x260   : > { %v1755_v42 = vpop.permute.xlu1 %1754  ;;  %v1753_v43 = vpop.permute.xlu0 %1752 }
 0x261   : > { %1828 = vst.msk [vmem:[#allocation3 + $0xb8] sm:$0xff] %vm1804_vm9, %v1755_v42  ;;  %1827 = vst.msk [vmem:[#allocation3 + $0xb0] sm:$0xff] %vm1804_vm9, %v1753_v43 }
 0x264   : > { %v1566_v46 = vpop.permute.xlu1 %1565  ;;  %v1564_v47 = vpop.permute.xlu0 %1563  ;;  %v1857_v50 = vld [vmem:[#allocation3 + $0xa0] sm:$0xff]  ;;  %v1858_v51 = vld [vmem:[#allocation3 + $0xa8] sm:$0xff] }
 0x265   : > { %1637 = vst.msk [vmem:[#allocation3 + $0xc8] sm:$0xff] %vm1611_vm8, %v1566_v46  ;;  %1636 = vst.msk [vmem:[#allocation3 + $0xc0] sm:$0xff] %vm1611_vm8, %v1564_v47  ;;  %v1879_v54 = vpack.c.bf16 %v1858_v51, %v1857_v50 }
 0x267   : > { %4646 = vmatprep.mubr.msk.bf16.mxu0 %vm1912_vm10, %v1879_v54 }
 0x268   : > { %v1570_v55 = vpop.permute.xlu1 %1569  ;;  %v1568_v13 = vpop.permute.xlu0 %1567  ;;  %v1859_v17 = vld [vmem:[#allocation3 + $0xb0] sm:$0xff]  ;;  %v1860_v58 = vld [vmem:[#allocation3 + $0xb8] sm:$0xff] }
 0x269   : > { %1639 = vst.msk [vmem:[#allocation3 + $0xd8] sm:$0xff] %vm1611_vm8, %v1570_v55  ;;  %1638 = vst.msk [vmem:[#allocation3 + $0xd0] sm:$0xff] %vm1611_vm8, %v1568_v13  ;;  %v1880_v59 = vpack.c.bf16 %v1860_v58, %v1859_v17 }
 0x26b   : > { %4647 = vmatmul.mubr.msk.bf16.gmra.mxu0 %vm1912_vm10, %v1880_v59 }
 0x26c   : > { %v1759_v0 = vpop.permute.xlu1 %1758  ;;  %v1757_v2 = vpop.permute.xlu0 %1756 }
 0x26d   : > { %1830 = vst.msk [vmem:[#allocation3 + $0xc8] sm:$0xff] %vm1804_vm9, %v1759_v0  ;;  %1829 = vst.msk [vmem:[#allocation3 + $0xc0] sm:$0xff] %vm1804_vm9, %v1757_v2 }
 0x270   : > { %v1763_v6 = vpop.permute.xlu1 %1762  ;;  %v1761_v3 = vpop.permute.xlu0 %1760 }
 0x271   : > { %1832 = vst.msk [vmem:[#allocation3 + $0xd8] sm:$0xff] %vm1804_vm9, %v1763_v6  ;;  %1831 = vst.msk [vmem:[#allocation3 + $0xd0] sm:$0xff] %vm1804_vm9, %v1761_v3 }
 0x274   : > { %v1574_v61 = vpop.permute.xlu1 %1573  ;;  %v1572_v62 = vpop.permute.xlu0 %1571  ;;  %v1861_v7 = vld [vmem:[#allocation3 + $0xc0] sm:$0xff]  ;;  %v1862_v8 = vld [vmem:[#allocation3 + $0xc8] sm:$0xff] }
 0x275   : > { %1641 = vst.msk [vmem:[#allocation3 + $0xe8] sm:$0xff] %vm1611_vm8, %v1574_v61  ;;  %1640 = vst.msk [vmem:[#allocation3 + $0xe0] sm:$0xff] %vm1611_vm8, %v1572_v62  ;;  %v1881_v9 = vpack.c.bf16 %v1862_v8, %v1861_v7 }
 0x277   : > { %4650 = vmatprep.mubr.msk.bf16.mxu0 %vm1912_vm10, %v1881_v9 }
 0x278   : > { %v1578_v20 = vpop.permute.xlu1 %1577  ;;  %v1576_v22 = vpop.permute.xlu0 %1575  ;;  %v1863_v23 = vld [vmem:[#allocation3 + $0xd0] sm:$0xff]  ;;  %v1864_v24 = vld [vmem:[#allocation3 + $0xd8] sm:$0xff] }
 0x279   : > { %1643 = vst.msk [vmem:[#allocation3 + $0xf8] sm:$0xff] %vm1611_vm8, %v1578_v20  ;;  %1642 = vst.msk [vmem:[#allocation3 + $0xf0] sm:$0xff] %vm1611_vm8, %v1576_v22  ;;  %v1882_v25 = vpack.c.bf16 %v1864_v24, %v1863_v23 }
 0x27b   : > { %4651 = vmatmul.mubr.msk.bf16.gmra.mxu0 %vm1912_vm10, %v1882_v25 }
 0x27c   : > { %v1767_v27 = vpop.permute.xlu1 %1766  ;;  %v1765_v28 = vpop.permute.xlu0 %1764 }
 0x27d   : > { %1834 = vst.msk [vmem:[#allocation3 + $0xe8] sm:$0xff] %vm1804_vm9, %v1767_v27  ;;  %1833 = vst.msk [vmem:[#allocation3 + $0xe0] sm:$0xff] %vm1804_vm9, %v1765_v28 }
 0x280   : > { %v1771_v31 = vpop.permute.xlu1 %1770  ;;  %v1769_v32 = vpop.permute.xlu0 %1768 }
 0x281   : > { %1836 = vst.msk [vmem:[#allocation3 + $0xf8] sm:$0xff] %vm1804_vm9, %v1771_v31  ;;  %1835 = vst.msk [vmem:[#allocation3 + $0xf0] sm:$0xff] %vm1804_vm9, %v1769_v32 }
 0x284   : > { %v1865_v33 = vld [vmem:[#allocation3 + $0xe0] sm:$0xff]  ;;  %v1866_v34 = vld [vmem:[#allocation3 + $0xe8] sm:$0xff] }
 0x285   : > { %v1883_v35 = vpack.c.bf16 %v1866_v34, %v1865_v33 }
 0x287   : > { %4654 = vmatprep.mubr.msk.bf16.mxu0 %vm1912_vm10, %v1883_v35 }
 0x288   : > { %v1867_v36 = vld [vmem:[#allocation3 + $0xf0] sm:$0xff]  ;;  %v1868_v37 = vld [vmem:[#allocation3 + $0xf8] sm:$0xff] }
 0x289   : > { %v1884_v38 = vpack.c.bf16 %v1868_v37, %v1867_v36 }
 0x28b   : > { %4655 = vmatmul.mubr.msk.bf16.gmra.mxu0 %vm1912_vm10, %v1884_v38 }
 0x2a8   : > { %v2365_v40 = vpop.permute.xlu0 %2364 }
 0x2a9   : > { %2460 = vst.msk [vmem:[#allocation3] sm:$0xff] %vm451_vm1, %v2365_v40 }
 0x2c1   : > { %v2367_v49 = vpop.permute.xlu1 %2366 }
 0x2c2   : > { %2461 = vst.msk [vmem:[#allocation3 + $0x8] sm:$0xff] %vm451_vm1, %v2367_v49 }
 0x2eb   : > { %v4628_v45 = vpop.f32.mrf.mxu0 }
 0x2ec   : > { %v2008_v48 = vadd.f32 %v4628_v45, %v5978_v41 }
 0x2ed   : > { %v1999_v52 = vpop.f32.mrf.mxu0 }
 0x2ee   : > { %v2128_v53 = vmax.f32 %v2008_v48, 0.0  ;;  %v2000_v56 = vadd.f32 %v5978_v41, %v1999_v52 }
 0x2ef   : > { %v4629_v10 = vpop.f32.mrf.mxu0 }
 0x2f0   : > { %2206 = vst.msk [vmem:[#allocation2 + $0x31] sm:$0xff] %vm258_vm0, %v2128_v53  ;;  %v2126_v57 = vmax.f32 %v2000_v56, 0.0  ;;  %v2011_v11 = vadd.f32 %v4629_v10, %v5978_v41 }
 0x2f1   : > { %v2002_v12 = vpop.f32.mrf.mxu0 }
 0x2f2   : > { %2204 = vst.msk [vmem:[#allocation2 + $0x19] sm:$0xff] %vm258_vm0, %v2126_v57  ;;  %v2129_v60 = vmax.f32 %v2011_v11, 0.0  ;;  %v2003_v63 = vadd.f32 %v5978_v41, %v2002_v12 }
 0x2f4   : > { %v4632_v16 = vpop.f32.mrf.mxu0  ;;  %2207 = vst.msk [vmem:[#allocation2 + $0x39] sm:$0xff] %vm258_vm0, %v2129_v60  ;;  %v2127_v14 = vmax.f32 %v2003_v63, 0.0 }
 0x2f5   : > { %v2024_v15 = vadd.f32 %v4632_v16, %v5978_v41 }
 0x2f6   : > { %v2015_v18 = vpop.f32.mrf.mxu0  ;;  %2205 = vst.msk [vmem:[#allocation2 + $0x21] sm:$0xff] %vm258_vm0, %v2127_v14 }
 0x2f7   : > { %v2132_v21 = vmax.f32 %v2024_v15, 0.0  ;;  %v2016_v4 = vadd.f32 %v5978_v41, %v2015_v18  ;;  %v5993_v29 = vld [vmem:[#allocation2 + $0x30] sm:$0xff] }
 0x2f8   : > { %v4633_v5 = vpop.f32.mrf.mxu0  ;;  %2272 = vst.msk [vmem:[#allocation3 + $0x20] sm:$0xff] %vm258_vm0, %v5993_v29  ;;  %v6015_v0 = vld [vmem:[#allocation2 + $0x31] sm:$0xff] }
 0x2f9   : > { %2210 = vst.msk [vmem:[#allocation2 + $0x61] sm:$0xff] %vm258_vm0, %v2132_v21  ;;  %v2130_v30 = vmax.f32 %v2016_v4, 0.0  ;;  %v2027_v42 = vadd.f32 %v4633_v5, %v5978_v41  ;;  %v5999_v46 = vld [vmem:[#allocation2 + $0x19] sm:$0xff] }
 0x2fa   : > { %v2018_v43 = vpop.f32.mrf.mxu0  ;;  %v6001_v47 = vld [vmem:[#allocation2 + $0x18] sm:$0xff]  ;;  %2368 = vrot.lane.b32.xlu0 %v5999_v46, %s4730_s24 }
 0x2fb   : > { %2208 = vst.msk [vmem:[#allocation2 + $0x49] sm:$0xff] %vm258_vm0, %v2130_v30  ;;  %v2133_v50 = vmax.f32 %v2027_v42, 0.0  ;;  %v2019_v51 = vadd.f32 %v5978_v41, %v2018_v43  ;;  %2270 = vst.msk [vmem:[#allocation3 + $0x10] sm:$0xff] %vm258_vm0, %v6001_v47  ;;  %v6011_v17 = vld [vmem:[#allocation2 + $0x38] sm:$0xff] }
 0x2fc   : > { %v4636_v54 = vpop.f32.mrf.mxu0  ;;  %2273 = vst.msk [vmem:[#allocation3 + $0x28] sm:$0xff] %vm258_vm0, %v6011_v17  ;;  %v6035_v9 = vld [vmem:[#allocation2 + $0x39] sm:$0xff] }
 0x2fd   : > { %2211 = vst.msk [vmem:[#allocation2 + $0x69] sm:$0xff] %vm258_vm0, %v2133_v50  ;;  %v2131_v55 = vmax.f32 %v2019_v51, 0.0  ;;  %v2040_v13 = vadd.f32 %v4636_v54, %v5978_v41  ;;  %v6013_v59 = vld [vmem:[#allocation2 + $0x21] sm:$0xff] }
 0x2fe   : > { %v2031_v58 = vpop.f32.mrf.mxu0  ;;  %2370 = vrot.lane.b32.xlu1 %v6013_v59, %s4730_s24  ;;  %2372 = vrot.lane.b32.xlu0 %v6015_v0, %s4730_s24  ;;  %v6025_v6 = vld [vmem:[#allocation2 + $0x20] sm:$0xff] }
 0x2ff   : > { %2209 = vst.msk [vmem:[#allocation2 + $0x51] sm:$0xff] %vm258_vm0, %v2131_v55  ;;  %v2136_v2 = vmax.f32 %v2040_v13, 0.0  ;;  %v2032_v1 = vadd.f32 %v5978_v41, %v2031_v58  ;;  %2271 = vst.msk [vmem:[#allocation3 + $0x18] sm:$0xff] %vm258_vm0, %v6025_v6 }
 0x300   : > { %v4637_v3 = vpop.f32.mrf.mxu0  ;;  %v6029_v61 = vld [vmem:[#allocation2 + $0x60] sm:$0xff] }
 0x301   : > { %2214 = vst.msk [vmem:[#allocation2 + $0x91] sm:$0xff] %vm258_vm0, %v2136_v2  ;;  %v2134_v62 = vmax.f32 %v2032_v1, 0.0  ;;  %v2043_v7 = vadd.f32 %v4637_v3, %v5978_v41  ;;  %2276 = vst.msk [vmem:[#allocation3 + $0x40] sm:$0xff] %vm258_vm0, %v6029_v61  ;;  %v6054_v27 = vld [vmem:[#allocation2 + $0x61] sm:$0xff] }
 0x302   : > { %v2034_v8 = vpop.f32.mrf.mxu0  ;;  %v6037_v19 = vld [vmem:[#allocation2 + $0x49] sm:$0xff]  ;;  %2374 = vrot.lane.b32.xlu1 %v6035_v9, %s4730_s24 }
 0x303   : > { %v6039_v20 = vld [vmem:[#allocation2 + $0x48] sm:$0xff]  ;;  %2212 = vst.msk [vmem:[#allocation2 + $0x79] sm:$0xff] %vm258_vm0, %v2134_v62  ;;  %v2137_v22 = vmax.f32 %v2043_v7, 0.0  ;;  %v2035_v23 = vadd.f32 %v5978_v41, %v2034_v8  ;;  %2376 = vrot.lane.b32.xlu0 %v6037_v19, %s4730_s24 }
 0x304   : > { %2274 = vst.msk [vmem:[#allocation3 + $0x30] sm:$0xff] %vm258_vm0, %v6039_v20  ;;  %v6050_v25 = vld [vmem:[#allocation2 + $0x68] sm:$0xff] }
 0x305   : > { %2215 = vst.msk [vmem:[#allocation2 + $0x99] sm:$0xff] %vm258_vm0, %v2137_v22  ;;  %v2135_v24 = vmax.f32 %v2035_v23, 0.0  ;;  %2277 = vst.msk [vmem:[#allocation3 + $0x48] sm:$0xff] %vm258_vm0, %v6050_v25  ;;  %v6071_v32 = vld [vmem:[#allocation2 + $0x69] sm:$0xff] }
 0x306   : > { %v6052_v26 = vld [vmem:[#allocation2 + $0x51] sm:$0xff] }
 0x307   : > { %2213 = vst.msk [vmem:[#allocation2 + $0x81] sm:$0xff] %vm258_vm0, %v2135_v24  ;;  %2378 = vrot.lane.b32.xlu1 %v6052_v26, %s4730_s24  ;;  %2380 = vrot.lane.b32.xlu0 %v6054_v27, %s4730_s24  ;;  %v6063_v28 = vld [vmem:[#allocation2 + $0x50] sm:$0xff] }
 0x308   : > { %2275 = vst.msk [vmem:[#allocation3 + $0x38] sm:$0xff] %vm258_vm0, %v6063_v28  ;;  %v6067_v31 = vld [vmem:[#allocation2 + $0x90] sm:$0xff] }
 0x309   : > { %2280 = vst.msk [vmem:[#allocation3 + $0x60] sm:$0xff] %vm258_vm0, %v6067_v31  ;;  %v2312_v40 = vld [vmem:[#allocation2 + $0x91] sm:$0xff] }
 0x30a   : > { %v6073_v33 = vld [vmem:[#allocation2 + $0x79] sm:$0xff] }
 0x30b   : > { %v6075_v34 = vld [vmem:[#allocation2 + $0x78] sm:$0xff]  ;;  %2382 = vrot.lane.b32.xlu1 %v6071_v32, %s4730_s24  ;;  %2384 = vrot.lane.b32.xlu0 %v6073_v33, %s4730_s24  ;;  %v4640_v35 = vpop.f32.mrf.mxu0 }
 0x30c   : > { %2278 = vst.msk [vmem:[#allocation3 + $0x50] sm:$0xff] %vm258_vm0, %v6075_v34  ;;  %v2056_v36 = vadd.f32 %v4640_v35, %v5978_v41  ;;  %v6084_v37 = vld [vmem:[#allocation2 + $0x98] sm:$0xff] }
 0x30d   : > { %v2047_v38 = vpop.f32.mrf.mxu0  ;;  %2281 = vst.msk [vmem:[#allocation3 + $0x68] sm:$0xff] %vm258_vm0, %v6084_v37  ;;  %v2313_v10 = vld [vmem:[#allocation2 + $0x99] sm:$0xff] }
 0x30e   : > { %v6086_v39 = vld [vmem:[#allocation2 + $0x81] sm:$0xff]  ;;  %v2140_v44 = vmax.f32 %v2056_v36, 0.0  ;;  %v2048_v45 = vadd.f32 %v5978_v41, %v2047_v38 }
 0x30f   : > { %2386 = vrot.lane.b32.xlu1 %v6086_v39, %s4730_s24  ;;  %2388 = vrot.lane.b32.xlu0 %v2312_v40, %s4730_s24  ;;  %v6094_v48 = vld [vmem:[#allocation2 + $0x80] sm:$0xff]  ;;  %v4641_v49 = vpop.f32.mrf.mxu0 }
 0x310   : > { %2279 = vst.msk [vmem:[#allocation3 + $0x58] sm:$0xff] %vm258_vm0, %v6094_v48  ;;  %2218 = vst.msk [vmem:[#allocation2 + $0xc1] sm:$0xff] %vm258_vm0, %v2140_v44  ;;  %v2138_v52 = vmax.f32 %v2048_v45, 0.0  ;;  %v2059_v53 = vadd.f32 %v4641_v49, %v5978_v41 }
 0x311   : > { %v2050_v56 = vpop.f32.mrf.mxu0 }
 0x312   : > { %2216 = vst.msk [vmem:[#allocation2 + $0xa9] sm:$0xff] %vm258_vm0, %v2138_v52  ;;  %v2141_v57 = vmax.f32 %v2059_v53, 0.0  ;;  %v2051_v11 = vadd.f32 %v5978_v41, %v2050_v56 }
 0x313   : > { %2390 = vrot.lane.b32.xlu1 %v2313_v10, %s4730_s24 }
 0x314   : > { %2219 = vst.msk [vmem:[#allocation2 + $0xc9] sm:$0xff] %vm258_vm0, %v2141_v57  ;;  %v2139_v12 = vmax.f32 %v2051_v11, 0.0 }
 0x316   : > { %2217 = vst.msk [vmem:[#allocation2 + $0xb1] sm:$0xff] %vm258_vm0, %v2139_v12 }
 0x317   : > { %v6105_v60 = vld [vmem:[#allocation2 + $0xc0] sm:$0xff] }
 0x318   : > { %2284 = vst.msk [vmem:[#allocation3 + $0x80] sm:$0xff] %vm258_vm0, %v6105_v60  ;;  %v2316_v5 = vld [vmem:[#allocation2 + $0xc1] sm:$0xff] }
 0x319   : > { %v2314_v63 = vld [vmem:[#allocation2 + $0xa9] sm:$0xff] }
 0x31a   : > { %v6109_v16 = vld [vmem:[#allocation2 + $0xa8] sm:$0xff]  ;;  %2392 = vrot.lane.b32.xlu0 %v2314_v63, %s4730_s24 }
 0x31b   : > { %2282 = vst.msk [vmem:[#allocation3 + $0x70] sm:$0xff] %vm258_vm0, %v6109_v16  ;;  %v4644_v14 = vpop.f32.mrf.mxu0  ;;  %v6115_v18 = vld [vmem:[#allocation2 + $0xc8] sm:$0xff] }
 0x31c   : > { %v2072_v15 = vadd.f32 %v4644_v14, %v5978_v41  ;;  %2285 = vst.msk [vmem:[#allocation3 + $0x88] sm:$0xff] %vm258_vm0, %v6115_v18  ;;  %v2317_v13 = vld [vmem:[#allocation2 + $0xc9] sm:$0xff] }
 0x31d   : > { %v2063_v21 = vpop.f32.mrf.mxu0  ;;  %v2315_v4 = vld [vmem:[#allocation2 + $0xb1] sm:$0xff] }
 0x31e   : > { %v2144_v30 = vmax.f32 %v2072_v15, 0.0  ;;  %v2064_v42 = vadd.f32 %v5978_v41, %v2063_v21  ;;  %2394 = vrot.lane.b32.xlu1 %v2315_v4, %s4730_s24  ;;  %2396 = vrot.lane.b32.xlu0 %v2316_v5, %s4730_s24  ;;  %v6122_v43 = vld [vmem:[#allocation2 + $0xb0] sm:$0xff] }
 0x31f   : > { %v4645_v50 = vpop.f32.mrf.mxu0  ;;  %2283 = vst.msk [vmem:[#allocation3 + $0x78] sm:$0xff] %vm258_vm0, %v6122_v43 }
 0x320   : > { %2222 = vst.msk [vmem:[#allocation2 + $0xf1] sm:$0xff] %vm258_vm0, %v2144_v30  ;;  %v2142_v51 = vmax.f32 %v2064_v42, 0.0  ;;  %v2075_v54 = vadd.f32 %v4645_v50, %v5978_v41 }
 0x321   : > { %v2066_v55 = vpop.f32.mrf.mxu0 }
 0x322   : > { %2220 = vst.msk [vmem:[#allocation2 + $0xd9] sm:$0xff] %vm258_vm0, %v2142_v51  ;;  %v2145_v58 = vmax.f32 %v2075_v54, 0.0  ;;  %v2067_v2 = vadd.f32 %v5978_v41, %v2066_v55  ;;  %2398 = vrot.lane.b32.xlu1 %v2317_v13, %s4730_s24 }
 0x324   : > { %2223 = vst.msk [vmem:[#allocation2 + $0xf9] sm:$0xff] %vm258_vm0, %v2145_v58  ;;  %v2143_v1 = vmax.f32 %v2067_v2, 0.0 }
 0x326   : > { %2221 = vst.msk [vmem:[#allocation2 + $0xe1] sm:$0xff] %vm258_vm0, %v2143_v1 }
 0x327   : > { %v6133_v3 = vld [vmem:[#allocation2 + $0xf0] sm:$0xff] }
 0x328   : > { %2288 = vst.msk [vmem:[#allocation3 + $0xa0] sm:$0xff] %vm258_vm0, %v6133_v3  ;;  %v2320_v36 = vld [vmem:[#allocation2 + $0xf1] sm:$0xff] }
 0x329   : > { %v2318_v62 = vld [vmem:[#allocation2 + $0xd9] sm:$0xff] }
 0x32a   : > { %v6137_v7 = vld [vmem:[#allocation2 + $0xd8] sm:$0xff]  ;;  %2400 = vrot.lane.b32.xlu0 %v2318_v62, %s4730_s24 }
 0x32b   : > { %2286 = vst.msk [vmem:[#allocation3 + $0x90] sm:$0xff] %vm258_vm0, %v6137_v7  ;;  %v4648_v8 = vpop.f32.mrf.mxu0  ;;  %v6143_v23 = vld [vmem:[#allocation2 + $0xf8] sm:$0xff] }
 0x32c   : > { %v2088_v22 = vadd.f32 %v4648_v8, %v5978_v41  ;;  %2289 = vst.msk [vmem:[#allocation3 + $0xa8] sm:$0xff] %vm258_vm0, %v6143_v23  ;;  %v2321_v56 = vld [vmem:[#allocation2 + $0xf9] sm:$0xff] }
 0x32d   : > { %v2079_v24 = vpop.f32.mrf.mxu0  ;;  %v2319_v35 = vld [vmem:[#allocation2 + $0xe1] sm:$0xff] }
 0x32e   : > { %v2148_v38 = vmax.f32 %v2088_v22, 0.0  ;;  %v2080_v40 = vadd.f32 %v5978_v41, %v2079_v24  ;;  %2402 = vrot.lane.b32.xlu1 %v2319_v35, %s4730_s24  ;;  %2404 = vrot.lane.b32.xlu0 %v2320_v36, %s4730_s24  ;;  %v6150_v44 = vld [vmem:[#allocation2 + $0xe0] sm:$0xff] }
 0x32f   : > { %v4649_v45 = vpop.f32.mrf.mxu0  ;;  %2287 = vst.msk [vmem:[#allocation3 + $0x98] sm:$0xff] %vm258_vm0, %v6150_v44 }
 0x330   : > { %2226 = vst.msk [vmem:[#allocation2 + $0x121] sm:$0xff] %vm258_vm0, %v2148_v38  ;;  %v2146_v49 = vmax.f32 %v2080_v40, 0.0  ;;  %v2091_v52 = vadd.f32 %v4649_v45, %v5978_v41 }
 0x331   : > { %v2082_v53 = vpop.f32.mrf.mxu0 }
 0x332   : > { %2224 = vst.msk [vmem:[#allocation2 + $0x109] sm:$0xff] %vm258_vm0, %v2146_v49  ;;  %v2149_v10 = vmax.f32 %v2091_v52, 0.0  ;;  %v2083_v57 = vadd.f32 %v5978_v41, %v2082_v53  ;;  %2406 = vrot.lane.b32.xlu1 %v2321_v56, %s4730_s24 }
 0x334   : > { %2227 = vst.msk [vmem:[#allocation2 + $0x129] sm:$0xff] %vm258_vm0, %v2149_v10  ;;  %v2147_v11 = vmax.f32 %v2083_v57, 0.0 }
 0x336   : > { %2225 = vst.msk [vmem:[#allocation2 + $0x111] sm:$0xff] %vm258_vm0, %v2147_v11 }
 0x337   : > { %v6161_v12 = vld [vmem:[#allocation2 + $0x120] sm:$0xff] }
 0x338   : > { %2292 = vst.msk [vmem:[#allocation3 + $0xc0] sm:$0xff] %vm258_vm0, %v6161_v12  ;;  %v2324_v42 = vld [vmem:[#allocation2 + $0x121] sm:$0xff] }
 0x339   : > { %v2322_v63 = vld [vmem:[#allocation2 + $0x109] sm:$0xff] }
 0x33a   : > { %v6165_v14 = vld [vmem:[#allocation2 + $0x108] sm:$0xff]  ;;  %2408 = vrot.lane.b32.xlu0 %v2322_v63, %s4730_s24 }
 0x33b   : > { %2290 = vst.msk [vmem:[#allocation3 + $0xb0] sm:$0xff] %vm258_vm0, %v6165_v14  ;;  %v4652_v15 = vpop.f32.mrf.mxu0  ;;  %v6171_v4 = vld [vmem:[#allocation2 + $0x128] sm:$0xff] }
 0x33c   : > { %v2104_v21 = vadd.f32 %v4652_v15, %v5978_v41  ;;  %2293 = vst.msk [vmem:[#allocation3 + $0xc8] sm:$0xff] %vm258_vm0, %v6171_v4  ;;  %v2325_v1 = vld [vmem:[#allocation2 + $0x129] sm:$0xff] }
 0x33d   : > { %v2095_v5 = vpop.f32.mrf.mxu0  ;;  %v2323_v30 = vld [vmem:[#allocation2 + $0x111] sm:$0xff] }
 0x33e   : > { %v2152_v50 = vmax.f32 %v2104_v21, 0.0  ;;  %v2096_v51 = vadd.f32 %v5978_v41, %v2095_v5  ;;  %2410 = vrot.lane.b32.xlu1 %v2323_v30, %s4730_s24  ;;  %2412 = vrot.lane.b32.xlu0 %v2324_v42, %s4730_s24  ;;  %v6178_v54 = vld [vmem:[#allocation2 + $0x110] sm:$0xff] }
 0x33f   : > { %v4653_v55 = vpop.f32.mrf.mxu0  ;;  %2291 = vst.msk [vmem:[#allocation3 + $0xb8] sm:$0xff] %vm258_vm0, %v6178_v54 }
 0x340   : > { %2230 = vst.msk [vmem:[#allocation2 + $0x151] sm:$0xff] %vm258_vm0, %v2152_v50  ;;  %v2150_v13 = vmax.f32 %v2096_v51, 0.0  ;;  %v2107_v58 = vadd.f32 %v4653_v55, %v5978_v41 }
 0x341   : > { %v2098_v2 = vpop.f32.mrf.mxu0 }
 0x342   : > { %2228 = vst.msk [vmem:[#allocation2 + $0x139] sm:$0xff] %vm258_vm0, %v2150_v13  ;;  %v2153_v62 = vmax.f32 %v2107_v58, 0.0  ;;  %v2099_v8 = vadd.f32 %v5978_v41, %v2098_v2  ;;  %2414 = vrot.lane.b32.xlu1 %v2325_v1, %s4730_s24  ;;  %v2492_v13 = vld [vmem:[#allocation2 + $0x2] sm:$0xff]  ;;  %v2493_v2 = vld [vmem:[#allocation2 + $0xa] sm:$0xff]  ;;  %v6216_v1 = vld [vmem:[#allocation2 + $0x1a] sm:$0xff] }
 0x344   : > { %2231 = vst.msk [vmem:[#allocation2 + $0x159] sm:$0xff] %vm258_vm0, %v2153_v62  ;;  %v2151_v22 = vmax.f32 %v2099_v8, 0.0  ;;  %v6221_v62 = vld [vmem:[#allocation2 + $0x22] sm:$0xff]  ;;  %v6223_v8 = vld [vmem:[#allocation2 + $0x32] sm:$0xff] }
 0x346   : > { %2229 = vst.msk [vmem:[#allocation2 + $0x141] sm:$0xff] %vm258_vm0, %v2151_v22  ;;  %v6229_v22 = vld [vmem:[#allocation2 + $0x3a] sm:$0xff] }
 0x347   : > { %v2264_v24 = vld [vmem:[#allocation2 + $0x150] sm:$0xff] }
 0x348   : > { %2296 = vst.msk [vmem:[#allocation3 + $0xe0] sm:$0xff] %vm258_vm0, %v2264_v24  ;;  %v2328_v53 = vld [vmem:[#allocation2 + $0x151] sm:$0xff] }
 0x349   : > { %v2326_v35 = vld [vmem:[#allocation2 + $0x139] sm:$0xff]  ;;  %v6231_v24 = vld [vmem:[#allocation2 + $0x4a] sm:$0xff] }
 0x34a   : > { %v6190_v36 = vld [vmem:[#allocation2 + $0x138] sm:$0xff]  ;;  %2416 = vrot.lane.b32.xlu0 %v2326_v35, %s4730_s24 }
 0x34b   : > { %2294 = vst.msk [vmem:[#allocation3 + $0xd0] sm:$0xff] %vm258_vm0, %v6190_v36  ;;  %v4656_v38 = vpop.f32.mrf.mxu0  ;;  %v2265_v45 = vld [vmem:[#allocation2 + $0x158] sm:$0xff] }
 0x34c   : > { %v2120_v40 = vadd.f32 %v4656_v38, %v5978_v41  ;;  %2297 = vst.msk [vmem:[#allocation3 + $0xe8] sm:$0xff] %vm258_vm0, %v2265_v45  ;;  %v2329_v5 = vld [vmem:[#allocation2 + $0x159] sm:$0xff] }
 0x34d   : > { %v2111_v49 = vpop.f32.mrf.mxu0  ;;  %v2327_v52 = vld [vmem:[#allocation2 + $0x141] sm:$0xff]  ;;  %v6238_v38 = vld [vmem:[#allocation2 + $0x52] sm:$0xff] }
 0x34e   : > { %v2156_v56 = vmax.f32 %v2120_v40, 0.0  ;;  %v2112_v10 = vadd.f32 %v5978_v41, %v2111_v49  ;;  %2418 = vrot.lane.b32.xlu1 %v2327_v52, %s4730_s24  ;;  %2420 = vrot.lane.b32.xlu0 %v2328_v53, %s4730_s24  ;;  %v6200_v57 = vld [vmem:[#allocation2 + $0x140] sm:$0xff]  ;;  %v6248_v52 = vld [vmem:[#allocation2 + $0x6a] sm:$0xff] }
 0x34f   : > { %v4657_v11 = vpop.f32.mrf.mxu0  ;;  %2295 = vst.msk [vmem:[#allocation3 + $0xd8] sm:$0xff] %vm258_vm0, %v6200_v57  ;;  %v6240_v40 = vld [vmem:[#allocation2 + $0x62] sm:$0xff]  ;;  %v6250_v53 = vld [vmem:[#allocation2 + $0x7a] sm:$0xff] }
 0x350   : > { %2234 = vst.msk [vmem:[#allocation2 + $0x181] sm:$0xff] %vm258_vm0, %v2156_v56  ;;  %v2154_v63 = vmax.f32 %v2112_v10, 0.0  ;;  %v2123_v15 = vadd.f32 %v4657_v11, %v5978_v41  ;;  %v6258_v11 = vld [vmem:[#allocation2 + $0x82] sm:$0xff] }
 0x351   : > { %v2114_v21 = vpop.f32.mrf.mxu0 }
 0x352   : > { %2232 = vst.msk [vmem:[#allocation2 + $0x169] sm:$0xff] %vm258_vm0, %v2154_v63  ;;  %v2157_v30 = vmax.f32 %v2123_v15, 0.0  ;;  %v2115_v42 = vadd.f32 %v5978_v41, %v2114_v21  ;;  %2422 = vrot.lane.b32.xlu1 %v2329_v5, %s4730_s24  ;;  %v6260_v63 = vld [vmem:[#allocation2 + $0x92] sm:$0xff]  ;;  %v6268_v5 = vld [vmem:[#allocation2 + $0x9a] sm:$0xff] }
 0x354   : > { %2235 = vst.msk [vmem:[#allocation2 + $0x189] sm:$0xff] %vm258_vm0, %v2157_v30  ;;  %v2155_v50 = vmax.f32 %v2115_v42, 0.0  ;;  %v6270_v30 = vld [vmem:[#allocation2 + $0xaa] sm:$0xff] }
 0x356   : > { %2233 = vst.msk [vmem:[#allocation2 + $0x171] sm:$0xff] %vm258_vm0, %v2155_v50 }
 0x359   : > { %v2330_v51 = vld [vmem:[#allocation2 + $0x169] sm:$0xff] }
 0x35a   : > { %v2266_v55 = vld [vmem:[#allocation2 + $0x168] sm:$0xff]  ;;  %2424 = vrot.lane.b32.xlu0 %v2330_v51, %s4730_s24  ;;  %v6278_v51 = vld [vmem:[#allocation2 + $0xb2] sm:$0xff] }
 0x35b   : > { %2298 = vst.msk [vmem:[#allocation3 + $0xf0] sm:$0xff] %vm258_vm0, %v2266_v55  ;;  %v6280_v55 = vld [vmem:[#allocation2 + $0xc2] sm:$0xff] }
 0x35d   : > { %v2331_v58 = vld [vmem:[#allocation2 + $0x171] sm:$0xff] }
 0x35e   : > { %2426 = vrot.lane.b32.xlu1 %v2331_v58, %s4730_s24  ;;  %2556 = vrot.lane.b32.xlu0 %v2492_v13, %s4731_s25  ;;  %v2267_v41 = vld [vmem:[#allocation2 + $0x170] sm:$0xff] }
 0x35f   : > { %2299 = vst.msk [vmem:[#allocation3 + $0xf8] sm:$0xff] %vm258_vm0, %v2267_v41  ;;  %v6288_v41 = vld [vmem:[#allocation2 + $0xca] sm:$0xff] }
 0x362   : > { %2558 = vrot.lane.b32.xlu1 %v2493_v2, %s4731_s25  ;;  %2560 = vrot.lane.b32.xlu0 %v6216_v1, %s4731_s25  ;;  %v6290_v2 = vld [vmem:[#allocation2 + $0xda] sm:$0xff] }
 0x366   : > { %2562 = vrot.lane.b32.xlu1 %v6221_v62, %s4731_s25  ;;  %2564 = vrot.lane.b32.xlu0 %v6223_v8, %s4731_s25 }
 0x36a   : > { %2566 = vrot.lane.b32.xlu1 %v6229_v22, %s4731_s25  ;;  %2568 = vrot.lane.b32.xlu0 %v6231_v24, %s4731_s25 }
 0x36c   : > { %v2369_v35 = vpop.permute.xlu0 %2368 }
 0x36d   : > { %2462 = vst.msk [vmem:[#allocation3 + $0x10] sm:$0xff] %vm451_vm1, %v2369_v35 }
 0x36e   : > { %2570 = vrot.lane.b32.xlu1 %v6238_v38, %s4731_s25  ;;  %2572 = vrot.lane.b32.xlu0 %v6240_v40, %s4731_s25 }
 0x370   : > { %v2371_v45 = vpop.permute.xlu1 %2370  ;;  %v2373_v49 = vpop.permute.xlu0 %2372 }
 0x371   : > { %2463 = vst.msk [vmem:[#allocation3 + $0x18] sm:$0xff] %vm451_vm1, %v2371_v45  ;;  %2464 = vst.msk [vmem:[#allocation3 + $0x20] sm:$0xff] %vm451_vm1, %v2373_v49  ;;  %v6297_v45 = vld [vmem:[#allocation2 + $0xe2] sm:$0xff]  ;;  %v2512_v49 = vld [vmem:[#allocation2 + $0xf2] sm:$0xff] }
 0x372   : > { %2574 = vrot.lane.b32.xlu1 %v6248_v52, %s4731_s25  ;;  %2576 = vrot.lane.b32.xlu0 %v6250_v53, %s4731_s25 }
 0x374   : > { %v2375_v56 = vpop.permute.xlu1 %2374 }
 0x375   : > { %v2377_v10 = vpop.permute.xlu0 %2376  ;;  %2465 = vst.msk [vmem:[#allocation3 + $0x28] sm:$0xff] %vm451_vm1, %v2375_v56  ;;  %v2513_v56 = vld [vmem:[#allocation2 + $0xfa] sm:$0xff] }
 0x376   : > { %2466 = vst.msk [vmem:[#allocation3 + $0x30] sm:$0xff] %vm451_vm1, %v2377_v10  ;;  %2578 = vrot.lane.b32.xlu1 %v6258_v11, %s4731_s25  ;;  %2580 = vrot.lane.b32.xlu0 %v6260_v63, %s4731_s25  ;;  %v2514_v10 = vld [vmem:[#allocation2 + $0x10a] sm:$0xff] }
 0x379   : > { %v2379_v15 = vpop.permute.xlu1 %2378  ;;  %v2381_v21 = vpop.permute.xlu0 %2380 }
 0x37a   : > { %2467 = vst.msk [vmem:[#allocation3 + $0x38] sm:$0xff] %vm451_vm1, %v2379_v15  ;;  %2468 = vst.msk [vmem:[#allocation3 + $0x40] sm:$0xff] %vm451_vm1, %v2381_v21  ;;  %2582 = vrot.lane.b32.xlu1 %v6268_v5, %s4731_s25  ;;  %2584 = vrot.lane.b32.xlu0 %v6270_v30, %s4731_s25  ;;  %v2515_v21 = vld [vmem:[#allocation2 + $0x112] sm:$0xff] }
 0x37d   : > { %v2383_v42 = vpop.permute.xlu1 %2382  ;;  %v2385_v50 = vpop.permute.xlu0 %2384 }
 0x37e   : > { %2469 = vst.msk [vmem:[#allocation3 + $0x48] sm:$0xff] %vm451_vm1, %v2383_v42  ;;  %2470 = vst.msk [vmem:[#allocation3 + $0x50] sm:$0xff] %vm451_vm1, %v2385_v50  ;;  %2586 = vrot.lane.b32.xlu1 %v6278_v51, %s4731_s25  ;;  %2588 = vrot.lane.b32.xlu0 %v6280_v55, %s4731_s25  ;;  %v2516_v42 = vld [vmem:[#allocation2 + $0x122] sm:$0xff] }
 0x381   : > { %v2387_v13 = vpop.permute.xlu1 %2386  ;;  %v2389_v58 = vpop.permute.xlu0 %2388 }
 0x382   : > { %2471 = vst.msk [vmem:[#allocation3 + $0x58] sm:$0xff] %vm451_vm1, %v2387_v13  ;;  %2472 = vst.msk [vmem:[#allocation3 + $0x60] sm:$0xff] %vm451_vm1, %v2389_v58  ;;  %2590 = vrot.lane.b32.xlu1 %v6288_v41, %s4731_s25  ;;  %2592 = vrot.lane.b32.xlu0 %v6290_v2, %s4731_s25  ;;  %v2517_v58 = vld [vmem:[#allocation2 + $0x12a] sm:$0xff] }
 0x385   : > { %v2391_v35 = vpop.permute.xlu1 %2390 }
 0x386   : > { %2473 = vst.msk [vmem:[#allocation3 + $0x68] sm:$0xff] %vm451_vm1, %v2391_v35  ;;  %2594 = vrot.lane.b32.xlu1 %v6297_v45, %s4731_s25  ;;  %2596 = vrot.lane.b32.xlu0 %v2512_v49, %s4731_s25  ;;  %v2518_v35 = vld [vmem:[#allocation2 + $0x13a] sm:$0xff] }
 0x38a   : > { %2598 = vrot.lane.b32.xlu1 %v2513_v56, %s4731_s25  ;;  %2600 = vrot.lane.b32.xlu0 %v2514_v10, %s4731_s25  ;;  %v2519_v56 = vld [vmem:[#allocation2 + $0x142] sm:$0xff]  ;;  %v2520_v10 = vld [vmem:[#allocation2 + $0x152] sm:$0xff] }
 0x38c   : > { %v2393_v15 = vpop.permute.xlu0 %2392 }
 0x38d   : > { %2474 = vst.msk [vmem:[#allocation3 + $0x70] sm:$0xff] %vm451_vm1, %v2393_v15  ;;  %v2521_v15 = vld [vmem:[#allocation2 + $0x15a] sm:$0xff] }
 0x38e   : > { %2602 = vrot.lane.b32.xlu1 %v2515_v21, %s4731_s25  ;;  %2604 = vrot.lane.b32.xlu0 %v2516_v42, %s4731_s25  ;;  %v2522_v21 = vld [vmem:[#allocation2 + $0x16a] sm:$0xff] }
 0x390   : > { %v2395_v50 = vpop.permute.xlu1 %2394  ;;  %v2397_v13 = vpop.permute.xlu0 %2396 }
 0x391   : > { %2475 = vst.msk [vmem:[#allocation3 + $0x78] sm:$0xff] %vm451_vm1, %v2395_v50  ;;  %2476 = vst.msk [vmem:[#allocation3 + $0x80] sm:$0xff] %vm451_vm1, %v2397_v13  ;;  %v2523_v50 = vld [vmem:[#allocation2 + $0x172] sm:$0xff] }
 0x392   : > { %2606 = vrot.lane.b32.xlu1 %v2517_v58, %s4731_s25  ;;  %2608 = vrot.lane.b32.xlu0 %v2518_v35, %s4731_s25 }
 0x394   : > { %v2399_v49 = vpop.permute.xlu1 %2398 }
 0x395   : > { %2477 = vst.msk [vmem:[#allocation3 + $0x88] sm:$0xff] %vm451_vm1, %v2399_v49 }
 0x396   : > { %2610 = vrot.lane.b32.xlu1 %v2519_v56, %s4731_s25  ;;  %2612 = vrot.lane.b32.xlu0 %v2520_v10, %s4731_s25 }
 0x39a   : > { %2614 = vrot.lane.b32.xlu1 %v2521_v15, %s4731_s25  ;;  %2616 = vrot.lane.b32.xlu0 %v2522_v21, %s4731_s25 }
 0x39c   : > { %v2401_v42 = vpop.permute.xlu0 %2400 }
 0x39d   : > { %2478 = vst.msk [vmem:[#allocation3 + $0x90] sm:$0xff] %vm451_vm1, %v2401_v42 }
 0x39e   : > { %2618 = vrot.lane.b32.xlu1 %v2523_v50, %s4731_s25  ;;  %2748 = vrot.lane.b32.xlu0 %v6001_v47, %s4732_s26 }
 0x3a0   : > { %v2403_v13 = vpop.permute.xlu1 %2402  ;;  %v2405_v58 = vpop.permute.xlu0 %2404 }
 0x3a1   : > { %2479 = vst.msk [vmem:[#allocation3 + $0x98] sm:$0xff] %vm451_vm1, %v2403_v13  ;;  %2480 = vst.msk [vmem:[#allocation3 + $0xa0] sm:$0xff] %vm451_vm1, %v2405_v58 }
 0x3a2   : > { %2750 = vrot.lane.b32.xlu1 %v6025_v6, %s4732_s26  ;;  %2752 = vrot.lane.b32.xlu0 %v5993_v29, %s4732_s26 }
 0x3a4   : > { %v2407_v35 = vpop.permute.xlu1 %2406 }
 0x3a5   : > { %2481 = vst.msk [vmem:[#allocation3 + $0xa8] sm:$0xff] %vm451_vm1, %v2407_v35 }
 0x3a6   : > { %2754 = vrot.lane.b32.xlu1 %v6011_v17, %s4732_s26  ;;  %2756 = vrot.lane.b32.xlu0 %v6039_v20, %s4732_s26 }
 0x3aa   : > { %2758 = vrot.lane.b32.xlu1 %v6063_v28, %s4732_s26  ;;  %2760 = vrot.lane.b32.xlu0 %v6029_v61, %s4732_s26 }
 0x3ac   : > { %v2409_v47 = vpop.permute.xlu0 %2408 }
 0x3ad   : > { %2482 = vst.msk [vmem:[#allocation3 + $0xb0] sm:$0xff] %vm451_vm1, %v2409_v47 }
 0x3ae   : > { %2762 = vrot.lane.b32.xlu1 %v6050_v25, %s4732_s26  ;;  %2764 = vrot.lane.b32.xlu0 %v6075_v34, %s4732_s26 }
 0x3b0   : > { %v2411_v6 = vpop.permute.xlu1 %2410  ;;  %v2413_v49 = vpop.permute.xlu0 %2412 }
 0x3b1   : > { %2483 = vst.msk [vmem:[#allocation3 + $0xb8] sm:$0xff] %vm451_vm1, %v2411_v6  ;;  %2484 = vst.msk [vmem:[#allocation3 + $0xc0] sm:$0xff] %vm451_vm1, %v2413_v49  ;;  %v4719_v49 = vld [vmem:[%s7014_s3 + $0x10] ss:$0 sps:$4 sm:$0x33]  }
 0x3b2   : > { %2766 = vrot.lane.b32.xlu1 %v6094_v48, %s4732_s26  ;;  %2768 = vrot.lane.b32.xlu0 %v6067_v31, %s4732_s26 }
 0x3b3   : > { %4697 = vmatprep.subr.msk.bf16.mxu1 %vm1961_vm6, %v4719_v49 }
 0x3b4   : > { %v2415_v56 = vpop.permute.xlu1 %2414 }
 0x3b5   : > { %2485 = vst.msk [vmem:[#allocation3 + $0xc8] sm:$0xff] %vm451_vm1, %v2415_v56 }
 0x3b6   : > { %2770 = vrot.lane.b32.xlu1 %v6084_v37, %s4732_s26  ;;  %2772 = vrot.lane.b32.xlu0 %v6109_v16, %s4732_s26 }
 0x3ba   : > { %2774 = vrot.lane.b32.xlu1 %v6122_v43, %s4732_s26  ;;  %2776 = vrot.lane.b32.xlu0 %v6105_v60, %s4732_s26 }
 0x3bc   : > { %v2417_v10 = vpop.permute.xlu0 %2416 }
 0x3bd   : > { %2486 = vst.msk [vmem:[#allocation3 + $0xd0] sm:$0xff] %vm451_vm1, %v2417_v10 }
 0x3be   : > { %2778 = vrot.lane.b32.xlu1 %v6115_v18, %s4732_s26  ;;  %2780 = vrot.lane.b32.xlu0 %v6137_v7, %s4732_s26 }
 0x3c0   : > { %v2419_v15 = vpop.permute.xlu1 %2418  ;;  %v2421_v21 = vpop.permute.xlu0 %2420 }
 0x3c1   : > { %2487 = vst.msk [vmem:[#allocation3 + $0xd8] sm:$0xff] %vm451_vm1, %v2419_v15  ;;  %2488 = vst.msk [vmem:[#allocation3 + $0xe0] sm:$0xff] %vm451_vm1, %v2421_v21 }
 0x3c2   : > { %2782 = vrot.lane.b32.xlu1 %v6150_v44, %s4732_s26  ;;  %2784 = vrot.lane.b32.xlu0 %v6133_v3, %s4732_s26 }
 0x3c4   : > { %v2423_v42 = vpop.permute.xlu1 %2422 }
 0x3c5   : > { %2489 = vst.msk [vmem:[#allocation3 + $0xe8] sm:$0xff] %vm451_vm1, %v2423_v42 }
 0x3c6   : > { %2786 = vrot.lane.b32.xlu1 %v6143_v23, %s4732_s26  ;;  %2788 = vrot.lane.b32.xlu0 %v6165_v14, %s4732_s26 }
 0x3ca   : > { %2790 = vrot.lane.b32.xlu1 %v6178_v54, %s4732_s26  ;;  %2792 = vrot.lane.b32.xlu0 %v6161_v12, %s4732_s26 }
 0x3cc   : > { %v2425_v50 = vpop.permute.xlu0 %2424 }
 0x3cd   : > { %2490 = vst.msk [vmem:[#allocation3 + $0xf0] sm:$0xff] %vm451_vm1, %v2425_v50 }
 0x3ce   : > { %2794 = vrot.lane.b32.xlu1 %v6171_v4, %s4732_s26  ;;  %2796 = vrot.lane.b32.xlu0 %v6190_v36, %s4732_s26 }
 0x3d0   : > { %v2427_v13 = vpop.permute.xlu1 %2426  ;;  %v2557_v58 = vpop.permute.xlu0 %2556 }
 0x3d1   : > { %2491 = vst.msk [vmem:[#allocation3 + $0xf8] sm:$0xff] %vm451_vm1, %v2427_v13 }
 0x3d2   : > { %2652 = vst.msk [vmem:[#allocation3] sm:$0xff] %vm644_vm2, %v2557_v58  ;;  %2940 = vrot.lane.b32.xlu1 %v5999_v46, %s4733_s27  ;;  %2942 = vrot.lane.b32.xlu0 %v6013_v59, %s4733_s27 }
 0x3d4   : > { %v2559_v12 = vpop.permute.xlu1 %2558  ;;  %v2561_v35 = vpop.permute.xlu0 %2560 }
 0x3d5   : > { %2653 = vst.msk [vmem:[#allocation3 + $0x8] sm:$0xff] %vm644_vm2, %v2559_v12  ;;  %2654 = vst.msk [vmem:[#allocation3 + $0x10] sm:$0xff] %vm644_vm2, %v2561_v35 }
 0x3d6   : > { %2944 = vrot.lane.b32.xlu1 %v6015_v0, %s4733_s27  ;;  %2946 = vrot.lane.b32.xlu0 %v6035_v9, %s4733_s27 }
 0x3d8   : > { %v2563_v4 = vpop.permute.xlu1 %2562  ;;  %v2565_v36 = vpop.permute.xlu0 %2564 }
 0x3d9   : > { %2655 = vst.msk [vmem:[#allocation3 + $0x18] sm:$0xff] %vm644_vm2, %v2563_v4  ;;  %2656 = vst.msk [vmem:[#allocation3 + $0x20] sm:$0xff] %vm644_vm2, %v2565_v36 }
 0x3da   : > { %3132 = vrot.lane.b32.xlu1 %v6216_v1, %s4734_s28  ;;  %3134 = vrot.lane.b32.xlu0 %v6221_v62, %s4734_s28 }
 0x3dc   : > { %v2567_v46 = vpop.permute.xlu1 %2566  ;;  %v2569_v59 = vpop.permute.xlu0 %2568 }
 0x3dd   : > { %2657 = vst.msk [vmem:[#allocation3 + $0x28] sm:$0xff] %vm644_vm2, %v2567_v46  ;;  %2658 = vst.msk [vmem:[#allocation3 + $0x30] sm:$0xff] %vm644_vm2, %v2569_v59 }
 0x3de   : > { %3136 = vrot.lane.b32.xlu1 %v6223_v8, %s4734_s28  ;;  %3138 = vrot.lane.b32.xlu0 %v6229_v22, %s4734_s28 }
 0x3e0   : > { %v2571_v47 = vpop.permute.xlu1 %2570  ;;  %v2573_v6 = vpop.permute.xlu0 %2572 }
 0x3e1   : > { %2659 = vst.msk [vmem:[#allocation3 + $0x38] sm:$0xff] %vm644_vm2, %v2571_v47  ;;  %2660 = vst.msk [vmem:[#allocation3 + $0x40] sm:$0xff] %vm644_vm2, %v2573_v6  ;;  %v2886_v6 = vld [vmem:[#allocation2 + $0x91] sm:$0xff] }
 0x3e2   : > { %3325 = vrot.lane.b32.xlu1 %v5993_v29, %s4735_s29  ;;  %3327 = vrot.lane.b32.xlu0 %v6011_v17, %s4735_s29  ;;  %v3993_v17 = vsel %vm1961_vm6, %v4719_v49, 0 }
 0x3e3   : > { %4659 = vmatpush3.bf16.msra.mxu1 %v3993_v17 }
 0x3e4   : > { %v2575_v1 = vpop.permute.xlu1 %2574  ;;  %v2577_v62 = vpop.permute.xlu0 %2576 }
 0x3e5   : > { %2661 = vst.msk [vmem:[#allocation3 + $0x48] sm:$0xff] %vm644_vm2, %v2575_v1  ;;  %2662 = vst.msk [vmem:[#allocation3 + $0x50] sm:$0xff] %vm644_vm2, %v2577_v62  ;;  %v2887_v1 = vld [vmem:[#allocation2 + $0x99] sm:$0xff] }
 0x3e6   : > { %3329 = vrot.lane.b32.xlu1 %v6039_v20, %s4735_s29  ;;  %3331 = vrot.lane.b32.xlu0 %v6063_v28, %s4735_s29  ;;  %v4720_v20 = vld [vmem:[%s7014_s3 + $0x8] sm:$0xff]  }
 0x3e7   : > { %4660 = vmatprep.subr.bf16.mxu1 %v4720_v20 }
 0x3e8   : > { %v2579_v29 = vpop.permute.xlu1 %2578  ;;  %v2581_v56 = vpop.permute.xlu0 %2580  ;;  %4661 = vmatpush3.bf16.msra.mxu1 %v4720_v20 }
 0x3e9   : > { %2663 = vst.msk [vmem:[#allocation3 + $0x58] sm:$0xff] %vm644_vm2, %v2579_v29  ;;  %2664 = vst.msk [vmem:[#allocation3 + $0x60] sm:$0xff] %vm644_vm2, %v2581_v56 }
 0x3ea   : > { %3517 = vrot.lane.b32.xlu1 %v6015_v0, %s4736_s30  ;;  %3519 = vrot.lane.b32.xlu0 %v6035_v9, %s4736_s30  ;;  %v4721_v0 = vld [vmem:[%s7014_s3] sm:$0xff]  }
 0x3eb   : > { %4662 = vmatprep.subr.bf16.mxu1 %v4721_v0 }
 0x3ec   : > { %v2583_v28 = vpop.permute.xlu1 %2582  ;;  %v2585_v10 = vpop.permute.xlu0 %2584  ;;  %4663 = vmatpush3.bf16.msra.mxu1 %v4721_v0  ;;  %v3464_v0 = vld [vmem:[#allocation2 + $0xb1] sm:$0xff] }
 0x3ed   : > { %2665 = vst.msk [vmem:[#allocation3 + $0x68] sm:$0xff] %vm644_vm2, %v2583_v28  ;;  %2666 = vst.msk [vmem:[#allocation3 + $0x70] sm:$0xff] %vm644_vm2, %v2585_v10 }
 0x3ee   : > { %3521 = vrot.lane.b32.xlu1 %v6037_v19, %s4736_s30  ;;  %3523 = vrot.lane.b32.xlu0 %v6052_v26, %s4736_s30 }
 0x3f0   : > { %v2587_v9 = vpop.permute.xlu1 %2586  ;;  %v2589_v15 = vpop.permute.xlu0 %2588 }
 0x3f1   : > { %2667 = vst.msk [vmem:[#allocation3 + $0x78] sm:$0xff] %vm644_vm2, %v2587_v9  ;;  %2668 = vst.msk [vmem:[#allocation3 + $0x80] sm:$0xff] %vm644_vm2, %v2589_v15 }
 0x3f2   : > { %3709 = vrot.lane.b32.xlu1 %v6223_v8, %s4737_s12  ;;  %3711 = vrot.lane.b32.xlu0 %v6229_v22, %s4737_s12 }
 0x3f4   : > { %v2591_v21 = vpop.permute.xlu1 %2590  ;;  %v2593_v42 = vpop.permute.xlu0 %2592 }
 0x3f5   : > { %2669 = vst.msk [vmem:[#allocation3 + $0x88] sm:$0xff] %vm644_vm2, %v2591_v21  ;;  %2670 = vst.msk [vmem:[#allocation3 + $0x90] sm:$0xff] %vm644_vm2, %v2593_v42 }
 0x3f6   : > { %3713 = vrot.lane.b32.xlu1 %v6231_v24, %s4737_s12  ;;  %3715 = vrot.lane.b32.xlu0 %v6238_v38, %s4737_s12 }
 0x3f8   : > { %v2595_v50 = vpop.permute.xlu1 %2594  ;;  %v2597_v13 = vpop.permute.xlu0 %2596 }
 0x3f9   : > { %2671 = vst.msk [vmem:[#allocation3 + $0x98] sm:$0xff] %vm644_vm2, %v2595_v50  ;;  %2672 = vst.msk [vmem:[#allocation3 + $0xa0] sm:$0xff] %vm644_vm2, %v2597_v13  ;;  %v2890_v13 = vld [vmem:[#allocation2 + $0xc1] sm:$0xff] }
 0x3fa   : > { %2948 = vrot.lane.b32.xlu1 %v6037_v19, %s4733_s27  ;;  %2950 = vrot.lane.b32.xlu0 %v6052_v26, %s4733_s27 }
 0x3fc   : > { %v2599_v8 = vpop.permute.xlu1 %2598  ;;  %v2601_v22 = vpop.permute.xlu0 %2600 }
 0x3fd   : > { %2673 = vst.msk [vmem:[#allocation3 + $0xa8] sm:$0xff] %vm644_vm2, %v2599_v8  ;;  %2674 = vst.msk [vmem:[#allocation3 + $0xb0] sm:$0xff] %vm644_vm2, %v2601_v22  ;;  %v2891_v8 = vld [vmem:[#allocation2 + $0xc9] sm:$0xff] }
 0x3fe   : > { %2952 = vrot.lane.b32.xlu1 %v6054_v27, %s4733_s27  ;;  %2954 = vrot.lane.b32.xlu0 %v6071_v32, %s4733_s27 }
 0x400   : > { %v2603_v58 = vpop.permute.xlu1 %2602  ;;  %v2605_v12 = vpop.permute.xlu0 %2604 }
 0x401   : > { %2675 = vst.msk [vmem:[#allocation3 + $0xb8] sm:$0xff] %vm644_vm2, %v2603_v58  ;;  %2676 = vst.msk [vmem:[#allocation3 + $0xc0] sm:$0xff] %vm644_vm2, %v2605_v12 }
 0x402   : > { %3140 = vrot.lane.b32.xlu1 %v6231_v24, %s4734_s28  ;;  %3142 = vrot.lane.b32.xlu0 %v6238_v38, %s4734_s28 }
 0x404   : > { %v2607_v19 = vpop.permute.xlu1 %2606  ;;  %v2609_v26 = vpop.permute.xlu0 %2608 }
 0x405   : > { %2677 = vst.msk [vmem:[#allocation3 + $0xc8] sm:$0xff] %vm644_vm2, %v2607_v19  ;;  %2678 = vst.msk [vmem:[#allocation3 + $0xd0] sm:$0xff] %vm644_vm2, %v2609_v26 }
 0x406   : > { %3144 = vrot.lane.b32.xlu1 %v6240_v40, %s4734_s28  ;;  %3146 = vrot.lane.b32.xlu0 %v6248_v52, %s4734_s28 }
 0x408   : > { %v2611_v35 = vpop.permute.xlu1 %2610  ;;  %v2613_v4 = vpop.permute.xlu0 %2612 }
 0x409   : > { %2679 = vst.msk [vmem:[#allocation3 + $0xd8] sm:$0xff] %vm644_vm2, %v2611_v35  ;;  %2680 = vst.msk [vmem:[#allocation3 + $0xe0] sm:$0xff] %vm644_vm2, %v2613_v4 }
 0x40a   : > { %3333 = vrot.lane.b32.xlu1 %v6029_v61, %s4735_s29  ;;  %3335 = vrot.lane.b32.xlu0 %v6050_v25, %s4735_s29 }
 0x40c   : > { %v2615_v24 = vpop.permute.xlu1 %2614  ;;  %v2617_v38 = vpop.permute.xlu0 %2616 }
 0x40d   : > { %2681 = vst.msk [vmem:[#allocation3 + $0xe8] sm:$0xff] %vm644_vm2, %v2615_v24  ;;  %2682 = vst.msk [vmem:[#allocation3 + $0xf0] sm:$0xff] %vm644_vm2, %v2617_v38  ;;  %v3468_v38 = vld [vmem:[#allocation2 + $0xe1] sm:$0xff] }
 0x40e   : > { %3337 = vrot.lane.b32.xlu1 %v6075_v34, %s4735_s29  ;;  %3339 = vrot.lane.b32.xlu0 %v6094_v48, %s4735_s29 }
 0x410   : > { %v2619_v36 = vpop.permute.xlu1 %2618  ;;  %v2749_v46 = vpop.permute.xlu0 %2748 }
 0x411   : > { %2683 = vst.msk [vmem:[#allocation3 + $0xf8] sm:$0xff] %vm644_vm2, %v2619_v36 }
 0x412   : > { %2844 = vst.msk [vmem:[#allocation3] sm:$0xff] %vm838_vm3, %v2749_v46  ;;  %3525 = vrot.lane.b32.xlu1 %v6054_v27, %s4736_s30  ;;  %3527 = vrot.lane.b32.xlu0 %v6071_v32, %s4736_s30 }
 0x414   : > { %v2751_v61 = vpop.permute.xlu1 %2750  ;;  %v2753_v25 = vpop.permute.xlu0 %2752 }
 0x415   : > { %2845 = vst.msk [vmem:[#allocation3 + $0x8] sm:$0xff] %vm838_vm3, %v2751_v61  ;;  %2846 = vst.msk [vmem:[#allocation3 + $0x10] sm:$0xff] %vm838_vm3, %v2753_v25 }
 0x416   : > { %3529 = vrot.lane.b32.xlu1 %v6073_v33, %s4736_s30  ;;  %3531 = vrot.lane.b32.xlu0 %v6086_v39, %s4736_s30 }
 0x418   : > { %v2755_v34 = vpop.permute.xlu1 %2754  ;;  %v2757_v48 = vpop.permute.xlu0 %2756 }
 0x419   : > { %2847 = vst.msk [vmem:[#allocation3 + $0x18] sm:$0xff] %vm838_vm3, %v2755_v34  ;;  %2848 = vst.msk [vmem:[#allocation3 + $0x20] sm:$0xff] %vm838_vm3, %v2757_v48 }
 0x41a   : > { %3717 = vrot.lane.b32.xlu1 %v6240_v40, %s4737_s12  ;;  %3719 = vrot.lane.b32.xlu0 %v6248_v52, %s4737_s12  ;;  %v2884_v40 = vld [vmem:[#allocation2 + $0x79] sm:$0xff]  ;;  %v2885_v52 = vld [vmem:[#allocation2 + $0x81] sm:$0xff] }
 0x41c   : > { %v2759_v27 = vpop.permute.xlu1 %2758  ;;  %v2761_v32 = vpop.permute.xlu0 %2760 }
 0x41d   : > { %2849 = vst.msk [vmem:[#allocation3 + $0x28] sm:$0xff] %vm838_vm3, %v2759_v27  ;;  %2850 = vst.msk [vmem:[#allocation3 + $0x30] sm:$0xff] %vm838_vm3, %v2761_v32 }
 0x41e   : > { %3721 = vrot.lane.b32.xlu1 %v6250_v53, %s4737_s12  ;;  %3723 = vrot.lane.b32.xlu0 %v6258_v11, %s4737_s12 }
 0x420   : > { %v2763_v33 = vpop.permute.xlu1 %2762  ;;  %v2765_v39 = vpop.permute.xlu0 %2764 }
 0x421   : > { %2851 = vst.msk [vmem:[#allocation3 + $0x38] sm:$0xff] %vm838_vm3, %v2763_v33  ;;  %2852 = vst.msk [vmem:[#allocation3 + $0x40] sm:$0xff] %vm838_vm3, %v2765_v39 }
 0x422   : > { %2956 = vrot.lane.b32.xlu1 %v2884_v40, %s4733_s27  ;;  %2958 = vrot.lane.b32.xlu0 %v2885_v52, %s4733_s27  ;;  %v2894_v40 = vld [vmem:[#allocation2 + $0xf1] sm:$0xff]  ;;  %v2895_v52 = vld [vmem:[#allocation2 + $0xf9] sm:$0xff] }
 0x424   : > { %v2767_v59 = vpop.permute.xlu1 %2766  ;;  %v2769_v47 = vpop.permute.xlu0 %2768 }
 0x425   : > { %2853 = vst.msk [vmem:[#allocation3 + $0x48] sm:$0xff] %vm838_vm3, %v2767_v59  ;;  %2854 = vst.msk [vmem:[#allocation3 + $0x50] sm:$0xff] %vm838_vm3, %v2769_v47 }
 0x426   : > { %2960 = vrot.lane.b32.xlu1 %v2886_v6, %s4733_s27  ;;  %2962 = vrot.lane.b32.xlu0 %v2887_v1, %s4733_s27 }
 0x428   : > { %v2771_v62 = vpop.permute.xlu1 %2770  ;;  %v2773_v49 = vpop.permute.xlu0 %2772 }
 0x429   : > { %2855 = vst.msk [vmem:[#allocation3 + $0x58] sm:$0xff] %vm838_vm3, %v2771_v62  ;;  %2856 = vst.msk [vmem:[#allocation3 + $0x60] sm:$0xff] %vm838_vm3, %v2773_v49  ;;  %v3086_v49 = vld [vmem:[#allocation2 + $0xf2] sm:$0xff] }
 0x42a   : > { %3148 = vrot.lane.b32.xlu1 %v6250_v53, %s4734_s28  ;;  %3150 = vrot.lane.b32.xlu0 %v6258_v11, %s4734_s28 }
 0x42c   : > { %v2775_v29 = vpop.permute.xlu1 %2774  ;;  %v2777_v56 = vpop.permute.xlu0 %2776 }
 0x42d   : > { %2857 = vst.msk [vmem:[#allocation3 + $0x68] sm:$0xff] %vm838_vm3, %v2775_v29  ;;  %2858 = vst.msk [vmem:[#allocation3 + $0x70] sm:$0xff] %vm838_vm3, %v2777_v56  ;;  %v3087_v29 = vld [vmem:[#allocation2 + $0xfa] sm:$0xff] }
 0x42e   : > { %3152 = vrot.lane.b32.xlu1 %v6260_v63, %s4734_s28  ;;  %3154 = vrot.lane.b32.xlu0 %v6268_v5, %s4734_s28 }
 0x430   : > { %v2779_v17 = vpop.permute.xlu1 %2778  ;;  %v2781_v20 = vpop.permute.xlu0 %2780 }
 0x431   : > { %2859 = vst.msk [vmem:[#allocation3 + $0x78] sm:$0xff] %vm838_vm3, %v2779_v17  ;;  %2860 = vst.msk [vmem:[#allocation3 + $0x80] sm:$0xff] %vm838_vm3, %v2781_v20 }
 0x432   : > { %3341 = vrot.lane.b32.xlu1 %v6067_v31, %s4735_s29  ;;  %3343 = vrot.lane.b32.xlu0 %v6084_v37, %s4735_s29 }
 0x434   : > { %v2783_v53 = vpop.permute.xlu1 %2782  ;;  %v2785_v11 = vpop.permute.xlu0 %2784 }
 0x435   : > { %2861 = vst.msk [vmem:[#allocation3 + $0x88] sm:$0xff] %vm838_vm3, %v2783_v53  ;;  %2862 = vst.msk [vmem:[#allocation3 + $0x90] sm:$0xff] %vm838_vm3, %v2785_v11 }
 0x436   : > { %3345 = vrot.lane.b32.xlu1 %v6109_v16, %s4735_s29  ;;  %3347 = vrot.lane.b32.xlu0 %v6122_v43, %s4735_s29  ;;  %v3463_v16 = vld [vmem:[#allocation2 + $0xa9] sm:$0xff] }
 0x438   : > { %v2787_v28 = vpop.permute.xlu1 %2786  ;;  %v2789_v10 = vpop.permute.xlu0 %2788 }
 0x439   : > { %2863 = vst.msk [vmem:[#allocation3 + $0x98] sm:$0xff] %vm838_vm3, %v2787_v28  ;;  %2864 = vst.msk [vmem:[#allocation3 + $0xa0] sm:$0xff] %vm838_vm3, %v2789_v10  ;;  %v3472_v28 = vld [vmem:[#allocation2 + $0x111] sm:$0xff] }
 0x43a   : > { %3533 = vrot.lane.b32.xlu1 %v2886_v6, %s4736_s30  ;;  %3535 = vrot.lane.b32.xlu0 %v2887_v1, %s4736_s30  ;;  %v3084_v6 = vld [vmem:[#allocation2 + $0xda] sm:$0xff] }
 0x43c   : > { %v2791_v31 = vpop.permute.xlu1 %2790  ;;  %v2793_v37 = vpop.permute.xlu0 %2792 }
 0x43d   : > { %2865 = vst.msk [vmem:[#allocation3 + $0xa8] sm:$0xff] %vm838_vm3, %v2791_v31  ;;  %2866 = vst.msk [vmem:[#allocation3 + $0xb0] sm:$0xff] %vm838_vm3, %v2793_v37 }
 0x43e   : > { %3537 = vrot.lane.b32.xlu1 %v3463_v16, %s4736_s30  ;;  %3539 = vrot.lane.b32.xlu0 %v3464_v0, %s4736_s30 }
 0x440   : > { %v2795_v43 = vpop.permute.xlu1 %2794  ;;  %v2797_v9 = vpop.permute.xlu0 %2796 }
 0x441   : > { %2867 = vst.msk [vmem:[#allocation3 + $0xb8] sm:$0xff] %vm838_vm3, %v2795_v43  ;;  %2868 = vst.msk [vmem:[#allocation3 + $0xc0] sm:$0xff] %vm838_vm3, %v2797_v9  ;;  %v3663_v43 = vld [vmem:[#allocation2 + $0x10a] sm:$0xff]  ;;  %v3664_v9 = vld [vmem:[#allocation2 + $0x112] sm:$0xff] }
 0x442   : > { %3725 = vrot.lane.b32.xlu1 %v6260_v63, %s4737_s12  ;;  %3727 = vrot.lane.b32.xlu0 %v6268_v5, %s4737_s12 }
 0x444   : > { %v2941_v15 = vpop.permute.xlu1 %2940  ;;  %v2943_v21 = vpop.permute.xlu0 %2942 }
 0x445   : > { %3036 = vst.msk [vmem:[#allocation3] sm:$0xff] %vm1031_vm4, %v2941_v15  ;;  %3037 = vst.msk [vmem:[#allocation3 + $0x8] sm:$0xff] %vm1031_vm4, %v2943_v21 }
 0x446   : > { %3729 = vrot.lane.b32.xlu1 %v6270_v30, %s4737_s12  ;;  %3731 = vrot.lane.b32.xlu0 %v6278_v51, %s4737_s12 }
 0x448   : > { %v2945_v42 = vpop.permute.xlu1 %2944  ;;  %v2947_v50 = vpop.permute.xlu0 %2946 }
 0x449   : > { %3038 = vst.msk [vmem:[#allocation3 + $0x10] sm:$0xff] %vm1031_vm4, %v2945_v42  ;;  %3039 = vst.msk [vmem:[#allocation3 + $0x18] sm:$0xff] %vm1031_vm4, %v2947_v50 }
 0x44a   : > { %2964 = vrot.lane.b32.xlu1 %v3463_v16, %s4733_s27  ;;  %2966 = vrot.lane.b32.xlu0 %v3464_v0, %s4733_s27 }
 0x44c   : > { %v3133_v63 = vpop.permute.xlu1 %3132  ;;  %v3135_v5 = vpop.permute.xlu0 %3134 }
 0x44d   : > { %3228 = vst.msk [vmem:[#allocation3] sm:$0xff] %vm1224_vm5, %v3133_v63  ;;  %3229 = vst.msk [vmem:[#allocation3 + $0x8] sm:$0xff] %vm1224_vm5, %v3135_v5 }
 0x44e   : > { %2968 = vrot.lane.b32.xlu1 %v2890_v13, %s4733_s27  ;;  %2970 = vrot.lane.b32.xlu0 %v2891_v8, %s4733_s27 }
 0x450   : > { %v3137_v22 = vpop.permute.xlu1 %3136  ;;  %v3139_v58 = vpop.permute.xlu0 %3138 }
 0x451   : > { %3230 = vst.msk [vmem:[#allocation3 + $0x10] sm:$0xff] %vm1224_vm5, %v3137_v22  ;;  %3231 = vst.msk [vmem:[#allocation3 + $0x18] sm:$0xff] %vm1224_vm5, %v3139_v58  ;;  %v2898_v22 = vld [vmem:[#allocation2 + $0x121] sm:$0xff]  ;;  %v2899_v58 = vld [vmem:[#allocation2 + $0x129] sm:$0xff] }
 0x452   : > { %3156 = vrot.lane.b32.xlu1 %v6270_v30, %s4734_s28  ;;  %3158 = vrot.lane.b32.xlu0 %v6278_v51, %s4734_s28 }
 0x454   : > { %v3326_v12 = vpop.permute.xlu1 %3325  ;;  %v3328_v19 = vpop.permute.xlu0 %3327 }
 0x455   : > { %3421 = vst.msk [vmem:[#allocation3] sm:$0xff] %vm1418_vm7, %v3326_v12  ;;  %3422 = vst.msk [vmem:[#allocation3 + $0x8] sm:$0xff] %vm1418_vm7, %v3328_v19 }
 0x456   : > { %3160 = vrot.lane.b32.xlu1 %v6280_v55, %s4734_s28  ;;  %3162 = vrot.lane.b32.xlu0 %v6288_v41, %s4734_s28 }
 0x458   : > { %v3330_v26 = vpop.permute.xlu1 %3329  ;;  %v3332_v35 = vpop.permute.xlu0 %3331 }
 0x459   : > { %3423 = vst.msk [vmem:[#allocation3 + $0x10] sm:$0xff] %vm1418_vm7, %v3330_v26  ;;  %3424 = vst.msk [vmem:[#allocation3 + $0x18] sm:$0xff] %vm1418_vm7, %v3332_v35 }
 0x45a   : > { %3349 = vrot.lane.b32.xlu1 %v6105_v60, %s4735_s29  ;;  %3351 = vrot.lane.b32.xlu0 %v6115_v18, %s4735_s29 }
 0x45c   : > { %v3518_v30 = vpop.permute.xlu1 %3517  ;;  %v3520_v51 = vpop.permute.xlu0 %3519 }
 0x45d   : > { %3613 = vst.msk [vmem:[#allocation3] sm:$0xff] %vm1611_vm8, %v3518_v30  ;;  %3614 = vst.msk [vmem:[#allocation3 + $0x8] sm:$0xff] %vm1611_vm8, %v3520_v51  ;;  %v3090_v30 = vld [vmem:[#allocation2 + $0x122] sm:$0xff]  ;;  %v3091_v51 = vld [vmem:[#allocation2 + $0x12a] sm:$0xff] }
 0x45e   : > { %3353 = vrot.lane.b32.xlu1 %v6137_v7, %s4735_s29  ;;  %3355 = vrot.lane.b32.xlu0 %v6150_v44, %s4735_s29  ;;  %v3467_v7 = vld [vmem:[#allocation2 + $0xd9] sm:$0xff] }
 0x460   : > { %v3522_v4 = vpop.permute.xlu1 %3521  ;;  %v3524_v24 = vpop.permute.xlu0 %3523 }
 0x461   : > { %3615 = vst.msk [vmem:[#allocation3 + $0x10] sm:$0xff] %vm1611_vm8, %v3522_v4  ;;  %3616 = vst.msk [vmem:[#allocation3 + $0x18] sm:$0xff] %vm1611_vm8, %v3524_v24 }
 0x462   : > { %3541 = vrot.lane.b32.xlu1 %v2890_v13, %s4736_s30  ;;  %3543 = vrot.lane.b32.xlu0 %v2891_v8, %s4736_s30 }
 0x464   : > { %v3710_v60 = vpop.permute.xlu1 %3709  ;;  %v3712_v18 = vpop.permute.xlu0 %3711 }
 0x465   : > { %3805 = vst.msk [vmem:[#allocation3] sm:$0xff] %vm1804_vm9, %v3710_v60  ;;  %3806 = vst.msk [vmem:[#allocation3 + $0x8] sm:$0xff] %vm1804_vm9, %v3712_v18  ;;  %v3281_v60 = vld [vmem:[#allocation2 + $0x120] sm:$0xff]  ;;  %v3282_v18 = vld [vmem:[#allocation2 + $0x128] sm:$0xff] }
 0x466   : > { %3545 = vrot.lane.b32.xlu1 %v3467_v7, %s4736_s30  ;;  %3547 = vrot.lane.b32.xlu0 %v3468_v38, %s4736_s30 }
 0x468   : > { %v3714_v44 = vpop.permute.xlu1 %3713  ;;  %v3716_v36 = vpop.permute.xlu0 %3715 }
 0x469   : > { %3807 = vst.msk [vmem:[#allocation3 + $0x10] sm:$0xff] %vm1804_vm9, %v3714_v44  ;;  %3808 = vst.msk [vmem:[#allocation3 + $0x18] sm:$0xff] %vm1804_vm9, %v3716_v36  ;;  %v3283_v44 = vld [vmem:[#allocation2 + $0x138] sm:$0xff] }
 0x46a   : > { %3733 = vrot.lane.b32.xlu1 %v6280_v55, %s4737_s12  ;;  %3735 = vrot.lane.b32.xlu0 %v6288_v41, %s4737_s12 }
 0x46c   : > { %v2949_v46 = vpop.permute.xlu1 %2948  ;;  %v2951_v61 = vpop.permute.xlu0 %2950  ;;  %v3837_v25 = vld [vmem:[#allocation3] sm:$0xff]  ;;  %v3838_v34 = vld [vmem:[#allocation3 + $0x8] sm:$0xff] }
 0x46d   : > { %3040 = vst.msk [vmem:[#allocation3 + $0x20] sm:$0xff] %vm1031_vm4, %v2949_v46  ;;  %3041 = vst.msk [vmem:[#allocation3 + $0x28] sm:$0xff] %vm1031_vm4, %v2951_v61  ;;  %v3869_v48 = vpack.c.bf16 %v3838_v34, %v3837_v25  ;;  %v3475_v34 = vld [vmem:[#allocation2 + $0x139] sm:$0xff] }
 0x46e   : > { %3737 = vrot.lane.b32.xlu1 %v6290_v2, %s4737_s12  ;;  %3739 = vrot.lane.b32.xlu0 %v6297_v45, %s4737_s12 }
 0x46f   : > { %4664 = vmatprep.mubr.msk.bf16.mxu1 %vm1912_vm10, %v3869_v48  ;;  %v3476_v48 = vld [vmem:[#allocation2 + $0x141] sm:$0xff] }
 0x470   : > { %v2953_v55 = vpop.permute.xlu1 %2952  ;;  %v2955_v27 = vpop.permute.xlu0 %2954  ;;  %v3839_v41 = vld [vmem:[#allocation3 + $0x10] sm:$0xff]  ;;  %v3840_v32 = vld [vmem:[#allocation3 + $0x18] sm:$0xff] }
 0x471   : > { %3042 = vst.msk [vmem:[#allocation3 + $0x30] sm:$0xff] %vm1031_vm4, %v2953_v55  ;;  %3043 = vst.msk [vmem:[#allocation3 + $0x38] sm:$0xff] %vm1031_vm4, %v2955_v27  ;;  %v3870_v33 = vpack.c.bf16 %v3840_v32, %v3839_v41 }
 0x472   : > { %2972 = vrot.lane.b32.xlu1 %v3467_v7, %s4733_s27  ;;  %2974 = vrot.lane.b32.xlu0 %v3468_v38, %s4733_s27 }
 0x473   : > { %4665 = vmatmul.mubr.msk.bf16.vlgmr.msra.gmra.mxu1 %vm1912_vm10, %v3870_v33 }
 0x474   : > { %v3141_v2 = vpop.permute.xlu1 %3140  ;;  %v3143_v39 = vpop.permute.xlu0 %3142 }
 0x475   : > { %3232 = vst.msk [vmem:[#allocation3 + $0x20] sm:$0xff] %vm1224_vm5, %v3141_v2  ;;  %3233 = vst.msk [vmem:[#allocation3 + $0x28] sm:$0xff] %vm1224_vm5, %v3143_v39  ;;  %v3667_v2 = vld [vmem:[#allocation2 + $0x13a] sm:$0xff]  ;;  %v3668_v39 = vld [vmem:[#allocation2 + $0x142] sm:$0xff] }
 0x476   : > { %2976 = vrot.lane.b32.xlu1 %v2894_v40, %s4733_s27  ;;  %2978 = vrot.lane.b32.xlu0 %v2895_v52, %s4733_s27 }
 0x478   : > { %v3145_v59 = vpop.permute.xlu1 %3144  ;;  %v3147_v47 = vpop.permute.xlu0 %3146 }
 0x479   : > { %3234 = vst.msk [vmem:[#allocation3 + $0x30] sm:$0xff] %vm1224_vm5, %v3145_v59  ;;  %3235 = vst.msk [vmem:[#allocation3 + $0x38] sm:$0xff] %vm1224_vm5, %v3147_v47 }
 0x47a   : > { %3164 = vrot.lane.b32.xlu1 %v3084_v6, %s4734_s28  ;;  %3166 = vrot.lane.b32.xlu0 %v6297_v45, %s4734_s28 }
 0x47c   : > { %v3334_v1 = vpop.permute.xlu1 %3333  ;;  %v3336_v62 = vpop.permute.xlu0 %3335 }
 0x47d   : > { %3425 = vst.msk [vmem:[#allocation3 + $0x20] sm:$0xff] %vm1418_vm7, %v3334_v1  ;;  %3426 = vst.msk [vmem:[#allocation3 + $0x28] sm:$0xff] %vm1418_vm7, %v3336_v62  ;;  %v2709_v1 = vld [vmem:[#allocation2 + $0x140] sm:$0xff]  ;;  %v2710_v62 = vld [vmem:[#allocation2 + $0x150] sm:$0xff] }
 0x47e   : > { %3168 = vrot.lane.b32.xlu1 %v3086_v49, %s4734_s28  ;;  %3170 = vrot.lane.b32.xlu0 %v3087_v29, %s4734_s28 }
 0x480   : > { %v3338_v56 = vpop.permute.xlu1 %3337  ;;  %v3340_v17 = vpop.permute.xlu0 %3339 }
 0x481   : > { %3427 = vst.msk [vmem:[#allocation3 + $0x30] sm:$0xff] %vm1418_vm7, %v3338_v56  ;;  %3428 = vst.msk [vmem:[#allocation3 + $0x38] sm:$0xff] %vm1418_vm7, %v3340_v17  ;;  %v2711_v17 = vld [vmem:[#allocation2 + $0x158] sm:$0xff] }
 0x482   : > { %3357 = vrot.lane.b32.xlu1 %v6133_v3, %s4735_s29  ;;  %3359 = vrot.lane.b32.xlu0 %v6143_v23, %s4735_s29 }
 0x484   : > { %v3526_v45 = vpop.permute.xlu1 %3525  ;;  %v3528_v20 = vpop.permute.xlu0 %3527 }
 0x485   : > { %3617 = vst.msk [vmem:[#allocation3 + $0x20] sm:$0xff] %vm1611_vm8, %v3526_v45  ;;  %3618 = vst.msk [vmem:[#allocation3 + $0x28] sm:$0xff] %vm1611_vm8, %v3528_v20 }
 0x486   : > { %3361 = vrot.lane.b32.xlu1 %v6165_v14, %s4735_s29  ;;  %3363 = vrot.lane.b32.xlu0 %v6178_v54, %s4735_s29  ;;  %v3471_v14 = vld [vmem:[#allocation2 + $0x109] sm:$0xff] }
 0x488   : > { %v3530_v53 = vpop.permute.xlu1 %3529  ;;  %v3532_v11 = vpop.permute.xlu0 %3531 }
 0x489   : > { %3619 = vst.msk [vmem:[#allocation3 + $0x30] sm:$0xff] %vm1611_vm8, %v3530_v53  ;;  %3620 = vst.msk [vmem:[#allocation3 + $0x38] sm:$0xff] %vm1611_vm8, %v3532_v11  ;;  %v2902_v53 = vld [vmem:[#allocation2 + $0x151] sm:$0xff] }
 0x48a   : > { %3549 = vrot.lane.b32.xlu1 %v2894_v40, %s4736_s30  ;;  %3551 = vrot.lane.b32.xlu0 %v2895_v52, %s4736_s30 }
 0x48c   : > { %v3718_v3 = vpop.permute.xlu1 %3717  ;;  %v3720_v23 = vpop.permute.xlu0 %3719 }
 0x48d   : > { %3809 = vst.msk [vmem:[#allocation3 + $0x20] sm:$0xff] %vm1804_vm9, %v3718_v3  ;;  %3810 = vst.msk [vmem:[#allocation3 + $0x28] sm:$0xff] %vm1804_vm9, %v3720_v23  ;;  %v2903_v23 = vld [vmem:[#allocation2 + $0x159] sm:$0xff] }
 0x48e   : > { %3553 = vrot.lane.b32.xlu1 %v3471_v14, %s4736_s30  ;;  %3555 = vrot.lane.b32.xlu0 %v3472_v28, %s4736_s30 }
 0x490   : > { %v3722_v54 = vpop.permute.xlu1 %3721  ;;  %v3724_v10 = vpop.permute.xlu0 %3723 }
 0x491   : > { %3811 = vst.msk [vmem:[#allocation3 + $0x30] sm:$0xff] %vm1804_vm9, %v3722_v54  ;;  %3812 = vst.msk [vmem:[#allocation3 + $0x38] sm:$0xff] %vm1804_vm9, %v3724_v10  ;;  %v3094_v54 = vld [vmem:[#allocation2 + $0x152] sm:$0xff] }
 0x492   : > { %3741 = vrot.lane.b32.xlu1 %v3086_v49, %s4737_s12  ;;  %3743 = vrot.lane.b32.xlu0 %v3087_v29, %s4737_s12 }
 0x494   : > { %v2957_v31 = vpop.permute.xlu1 %2956  ;;  %v2959_v37 = vpop.permute.xlu0 %2958  ;;  %v3841_v16 = vld [vmem:[#allocation3 + $0x20] sm:$0xff]  ;;  %v3842_v0 = vld [vmem:[#allocation3 + $0x28] sm:$0xff] }
 0x495   : > { %3044 = vst.msk [vmem:[#allocation3 + $0x40] sm:$0xff] %vm1031_vm4, %v2957_v31  ;;  %3045 = vst.msk [vmem:[#allocation3 + $0x48] sm:$0xff] %vm1031_vm4, %v2959_v37  ;;  %v3871_v15 = vpack.c.bf16 %v3842_v0, %v3841_v16  ;;  %v3095_v37 = vld [vmem:[#allocation2 + $0x15a] sm:$0xff] }
 0x496   : > { %3745 = vrot.lane.b32.xlu1 %v3663_v43, %s4737_s12  ;;  %3747 = vrot.lane.b32.xlu0 %v3664_v9, %s4737_s12 }
 0x497   : > { %4668 = vmatprep.mubr.msk.bf16.mxu1 %vm1912_vm10, %v3871_v15 }
 0x498   : > { %v2961_v21 = vpop.permute.xlu1 %2960  ;;  %v2963_v42 = vpop.permute.xlu0 %2962  ;;  %v3843_v50 = vld [vmem:[#allocation3 + $0x30] sm:$0xff]  ;;  %v3844_v63 = vld [vmem:[#allocation3 + $0x38] sm:$0xff] }
 0x499   : > { %3046 = vst.msk [vmem:[#allocation3 + $0x50] sm:$0xff] %vm1031_vm4, %v2961_v21  ;;  %3047 = vst.msk [vmem:[#allocation3 + $0x58] sm:$0xff] %vm1031_vm4, %v2963_v42  ;;  %v3872_v5 = vpack.c.bf16 %v3844_v63, %v3843_v50  ;;  %v3288_v21 = vld [vmem:[#allocation2 + $0x170] sm:$0xff] }
 0x49a   : > { %2980 = vrot.lane.b32.xlu1 %v3471_v14, %s4733_s27  ;;  %2982 = vrot.lane.b32.xlu0 %v3472_v28, %s4733_s27  ;;  %v3479_v63 = vld [vmem:[#allocation2 + $0x169] sm:$0xff] }
 0x49b   : > { %4669 = vmatmul.mubr.msk.bf16.gmra.mxu1 %vm1912_vm10, %v3872_v5 }
 0x49c   : > { %v3149_v13 = vpop.permute.xlu1 %3148  ;;  %v3151_v8 = vpop.permute.xlu0 %3150 }
 0x49d   : > { %3236 = vst.msk [vmem:[#allocation3 + $0x40] sm:$0xff] %vm1224_vm5, %v3149_v13  ;;  %3237 = vst.msk [vmem:[#allocation3 + $0x48] sm:$0xff] %vm1224_vm5, %v3151_v8 }
 0x49e   : > { %2984 = vrot.lane.b32.xlu1 %v2898_v22, %s4733_s27  ;;  %2986 = vrot.lane.b32.xlu0 %v2899_v58, %s4733_s27 }
 0x4a0   : > { %v3153_v12 = vpop.permute.xlu1 %3152  ;;  %v3155_v19 = vpop.permute.xlu0 %3154 }
 0x4a1   : > { %3238 = vst.msk [vmem:[#allocation3 + $0x50] sm:$0xff] %vm1224_vm5, %v3153_v12  ;;  %3239 = vst.msk [vmem:[#allocation3 + $0x58] sm:$0xff] %vm1224_vm5, %v3155_v19 }
 0x4a2   : > { %3172 = vrot.lane.b32.xlu1 %v3663_v43, %s4734_s28  ;;  %3174 = vrot.lane.b32.xlu0 %v3664_v9, %s4734_s28  ;;  %v3287_v43 = vld [vmem:[#allocation2 + $0x168] sm:$0xff] }
 0x4a4   : > { %v3342_v26 = vpop.permute.xlu1 %3341  ;;  %v3344_v35 = vpop.permute.xlu0 %3343 }
 0x4a5   : > { %3429 = vst.msk [vmem:[#allocation3 + $0x40] sm:$0xff] %vm1418_vm7, %v3342_v26  ;;  %3430 = vst.msk [vmem:[#allocation3 + $0x48] sm:$0xff] %vm1418_vm7, %v3344_v35 }
 0x4a6   : > { %3176 = vrot.lane.b32.xlu1 %v3090_v30, %s4734_s28  ;;  %3178 = vrot.lane.b32.xlu0 %v3091_v51, %s4734_s28 }
 0x4a8   : > { %v3346_v4 = vpop.permute.xlu1 %3345  ;;  %v3348_v24 = vpop.permute.xlu0 %3347 }
 0x4a9   : > { %3431 = vst.msk [vmem:[#allocation3 + $0x50] sm:$0xff] %vm1418_vm7, %v3346_v4  ;;  %3432 = vst.msk [vmem:[#allocation3 + $0x58] sm:$0xff] %vm1418_vm7, %v3348_v24 }
 0x4aa   : > { %3365 = vrot.lane.b32.xlu1 %v3281_v60, %s4735_s29  ;;  %3367 = vrot.lane.b32.xlu0 %v3282_v18, %s4735_s29  ;;  %v3672_v18 = vld [vmem:[#allocation2 + $0x172] sm:$0xff] }
 0x4ac   : > { %v3534_v7 = vpop.permute.xlu1 %3533  ;;  %v3536_v38 = vpop.permute.xlu0 %3535 }
 0x4ad   : > { %3621 = vst.msk [vmem:[#allocation3 + $0x40] sm:$0xff] %vm1611_vm8, %v3534_v7  ;;  %3622 = vst.msk [vmem:[#allocation3 + $0x48] sm:$0xff] %vm1611_vm8, %v3536_v38 }
 0x4ae   : > { %3369 = vrot.lane.b32.xlu1 %v3283_v44, %s4735_s29  ;;  %3371 = vrot.lane.b32.xlu0 %v6200_v57, %s4735_s29  ;;  %v2714_v44 = vld [vmem:[#allocation2 + $0x180] sm:$0xff] }
 0x4b0   : > { %v3538_v36 = vpop.permute.xlu1 %3537  ;;  %v3540_v46 = vpop.permute.xlu0 %3539 }
 0x4b1   : > { %3623 = vst.msk [vmem:[#allocation3 + $0x50] sm:$0xff] %vm1611_vm8, %v3538_v36  ;;  %3624 = vst.msk [vmem:[#allocation3 + $0x58] sm:$0xff] %vm1611_vm8, %v3540_v46 }
 0x4b2   : > { %3557 = vrot.lane.b32.xlu1 %v2898_v22, %s4736_s30  ;;  %3559 = vrot.lane.b32.xlu0 %v2899_v58, %s4736_s30  ;;  %v3480_v58 = vld [vmem:[#allocation2 + $0x171] sm:$0xff] }
 0x4b4   : > { %v3726_v61 = vpop.permute.xlu1 %3725  ;;  %v3728_v25 = vpop.permute.xlu0 %3727 }
 0x4b5   : > { %3813 = vst.msk [vmem:[#allocation3 + $0x40] sm:$0xff] %vm1804_vm9, %v3726_v61  ;;  %3814 = vst.msk [vmem:[#allocation3 + $0x48] sm:$0xff] %vm1804_vm9, %v3728_v25  ;;  %v2715_v61 = vld [vmem:[#allocation2 + $0x188] sm:$0xff] }
 0x4b6   : > { %3561 = vrot.lane.b32.xlu1 %v3475_v34, %s4736_s30  ;;  %3563 = vrot.lane.b32.xlu0 %v3476_v48, %s4736_s30 }
 0x4b8   : > { %v3730_v57 = vpop.permute.xlu1 %3729  ;;  %v3732_v55 = vpop.permute.xlu0 %3731 }
 0x4b9   : > { %3815 = vst.msk [vmem:[#allocation3 + $0x50] sm:$0xff] %vm1804_vm9, %v3730_v57  ;;  %3816 = vst.msk [vmem:[#allocation3 + $0x58] sm:$0xff] %vm1804_vm9, %v3732_v55 }
 0x4ba   : > { %3749 = vrot.lane.b32.xlu1 %v3090_v30, %s4737_s12  ;;  %3751 = vrot.lane.b32.xlu0 %v3091_v51, %s4737_s12  ;;  %v3671_v51 = vld [vmem:[#allocation2 + $0x16a] sm:$0xff] }
 0x4bc   : > { %v2965_v27 = vpop.permute.xlu1 %2964  ;;  %v2967_v41 = vpop.permute.xlu0 %2966  ;;  %v3845_v32 = vld [vmem:[#allocation3 + $0x40] sm:$0xff]  ;;  %v3846_v33 = vld [vmem:[#allocation3 + $0x48] sm:$0xff] }
 0x4bd   : > { %3048 = vst.msk [vmem:[#allocation3 + $0x60] sm:$0xff] %vm1031_vm4, %v2965_v27  ;;  %3049 = vst.msk [vmem:[#allocation3 + $0x68] sm:$0xff] %vm1031_vm4, %v2967_v41  ;;  %v3873_v40 = vpack.c.bf16 %v3846_v33, %v3845_v32  ;;  %v2907_v27 = vld [vmem:[#allocation2 + $0x189] sm:$0xff] }
 0x4be   : > { %3753 = vrot.lane.b32.xlu1 %v3667_v2, %s4737_s12  ;;  %3755 = vrot.lane.b32.xlu0 %v3668_v39, %s4737_s12  ;;  %v3098_v33 = vld [vmem:[#allocation2 + $0x182] sm:$0xff] }
 0x4bf   : > { %4672 = vmatprep.mubr.msk.bf16.mxu1 %vm1912_vm10, %v3873_v40  ;;  %v3099_v40 = vld [vmem:[#allocation2 + $0x18a] sm:$0xff] }
 0x4c0   : > { %v2969_v52 = vpop.permute.xlu1 %2968  ;;  %v2971_v59 = vpop.permute.xlu0 %2970  ;;  %v3847_v47 = vld [vmem:[#allocation3 + $0x50] sm:$0xff]  ;;  %v3848_v6 = vld [vmem:[#allocation3 + $0x58] sm:$0xff] }
 0x4c1   : > { %3050 = vst.msk [vmem:[#allocation3 + $0x70] sm:$0xff] %vm1031_vm4, %v2969_v52  ;;  %3051 = vst.msk [vmem:[#allocation3 + $0x78] sm:$0xff] %vm1031_vm4, %v2971_v59  ;;  %v3874_v49 = vpack.c.bf16 %v3848_v6, %v3847_v47  ;;  %v3291_v52 = vld [vmem:[#allocation2 + $0x198] sm:$0xff]  ;;  %v3292_v6 = vld [vmem:[#allocation2 + $0x1a0] sm:$0xff] }
 0x4c2   : > { %2798 = vrot.lane.b32.xlu1 %v2709_v1, %s4732_s26  ;;  %2800 = vrot.lane.b32.xlu0 %v2710_v62, %s4732_s26 }
 0x4c3   : > { %4673 = vmatmul.mubr.msk.bf16.gmra.mxu1 %vm1912_vm10, %v3874_v49 }
 0x4c4   : > { %v3157_v29 = vpop.permute.xlu1 %3156  ;;  %v3159_v56 = vpop.permute.xlu0 %3158 }
 0x4c5   : > { %3240 = vst.msk [vmem:[#allocation3 + $0x60] sm:$0xff] %vm1224_vm5, %v3157_v29  ;;  %3241 = vst.msk [vmem:[#allocation3 + $0x68] sm:$0xff] %vm1224_vm5, %v3159_v56 }
 0x4c6   : > { %2802 = vrot.lane.b32.xlu1 %v2711_v17, %s4732_s26  ;;  %2988 = vrot.lane.b32.xlu0 %v3475_v34, %s4733_s27 }
 0x4c8   : > { %v3161_v45 = vpop.permute.xlu1 %3160  ;;  %v3163_v20 = vpop.permute.xlu0 %3162 }
 0x4c9   : > { %3242 = vst.msk [vmem:[#allocation3 + $0x70] sm:$0xff] %vm1224_vm5, %v3161_v45  ;;  %3243 = vst.msk [vmem:[#allocation3 + $0x78] sm:$0xff] %vm1224_vm5, %v3163_v20 }
 0x4ca   : > { %2990 = vrot.lane.b32.xlu1 %v3476_v48, %s4733_s27  ;;  %2992 = vrot.lane.b32.xlu0 %v2902_v53, %s4733_s27  ;;  %v2906_v48 = vld [vmem:[#allocation2 + $0x181] sm:$0xff] }
 0x4cc   : > { %v3350_v11 = vpop.permute.xlu1 %3349  ;;  %v3352_v3 = vpop.permute.xlu0 %3351 }
 0x4cd   : > { %3433 = vst.msk [vmem:[#allocation3 + $0x60] sm:$0xff] %vm1418_vm7, %v3350_v11  ;;  %3434 = vst.msk [vmem:[#allocation3 + $0x68] sm:$0xff] %vm1418_vm7, %v3352_v3 }
 0x4ce   : > { %2994 = vrot.lane.b32.xlu1 %v2903_v23, %s4733_s27  ;;  %3180 = vrot.lane.b32.xlu0 %v3667_v2, %s4734_s28 }
 0x4d0   : > { %v3354_v14 = vpop.permute.xlu1 %3353  ;;  %v3356_v28 = vpop.permute.xlu0 %3355 }
 0x4d1   : > { %3435 = vst.msk [vmem:[#allocation3 + $0x70] sm:$0xff] %vm1418_vm7, %v3354_v14  ;;  %3436 = vst.msk [vmem:[#allocation3 + $0x78] sm:$0xff] %vm1418_vm7, %v3356_v28 }
 0x4d2   : > { %3182 = vrot.lane.b32.xlu1 %v3668_v39, %s4734_s28  ;;  %3184 = vrot.lane.b32.xlu0 %v3094_v54, %s4734_s28 }
 0x4d4   : > { %v3542_v10 = vpop.permute.xlu1 %3541  ;;  %v3544_v31 = vpop.permute.xlu0 %3543 }
 0x4d5   : > { %3625 = vst.msk [vmem:[#allocation3 + $0x60] sm:$0xff] %vm1611_vm8, %v3542_v10  ;;  %3626 = vst.msk [vmem:[#allocation3 + $0x68] sm:$0xff] %vm1611_vm8, %v3544_v31 }
 0x4d6   : > { %3186 = vrot.lane.b32.xlu1 %v3095_v37, %s4734_s28  ;;  %3373 = vrot.lane.b32.xlu0 %v2710_v62, %s4735_s29 }
 0x4d8   : > { %v3546_v16 = vpop.permute.xlu1 %3545  ;;  %v3548_v0 = vpop.permute.xlu0 %3547 }
 0x4d9   : > { %3627 = vst.msk [vmem:[#allocation3 + $0x70] sm:$0xff] %vm1611_vm8, %v3546_v16  ;;  %3628 = vst.msk [vmem:[#allocation3 + $0x78] sm:$0xff] %vm1611_vm8, %v3548_v0 }
 0x4da   : > { %3375 = vrot.lane.b32.xlu1 %v2711_v17, %s4735_s29  ;;  %3377 = vrot.lane.b32.xlu0 %v3287_v43, %s4735_s29  ;;  %v3483_v17 = vld [vmem:[#allocation2 + $0x199] sm:$0xff] }
 0x4dc   : > { %v3734_v9 = vpop.permute.xlu1 %3733  ;;  %v3736_v15 = vpop.permute.xlu0 %3735 }
 0x4dd   : > { %3817 = vst.msk [vmem:[#allocation3 + $0x60] sm:$0xff] %vm1804_vm9, %v3734_v9  ;;  %3818 = vst.msk [vmem:[#allocation3 + $0x68] sm:$0xff] %vm1804_vm9, %v3736_v15 }
 0x4de   : > { %3379 = vrot.lane.b32.xlu1 %v3288_v21, %s4735_s29  ;;  %3565 = vrot.lane.b32.xlu0 %v2902_v53, %s4736_s30 }
 0x4e0   : > { %v3738_v42 = vpop.permute.xlu1 %3737  ;;  %v3740_v50 = vpop.permute.xlu0 %3739 }
 0x4e1   : > { %3819 = vst.msk [vmem:[#allocation3 + $0x70] sm:$0xff] %vm1804_vm9, %v3738_v42  ;;  %3820 = vst.msk [vmem:[#allocation3 + $0x78] sm:$0xff] %vm1804_vm9, %v3740_v50 }
 0x4e2   : > { %3567 = vrot.lane.b32.xlu1 %v2903_v23, %s4736_s30  ;;  %3569 = vrot.lane.b32.xlu0 %v3479_v63, %s4736_s30  ;;  %v3484_v23 = vld [vmem:[#allocation2 + $0x1a1] sm:$0xff] }
 0x4e4   : > { %v2973_v5 = vpop.permute.xlu1 %2972  ;;  %v2975_v13 = vpop.permute.xlu0 %2974  ;;  %v3849_v8 = vld [vmem:[#allocation3 + $0x60] sm:$0xff]  ;;  %v3850_v22 = vld [vmem:[#allocation3 + $0x68] sm:$0xff] }
 0x4e5   : > { %3052 = vst.msk [vmem:[#allocation3 + $0x80] sm:$0xff] %vm1031_vm4, %v2973_v5  ;;  %3053 = vst.msk [vmem:[#allocation3 + $0x88] sm:$0xff] %vm1031_vm4, %v2975_v13  ;;  %v3875_v12 = vpack.c.bf16 %v3850_v22, %v3849_v8  ;;  %v6819_v22 = vld [vmem:[%s7015_s4] ss:$0 sm:$0xff] }
 0x4e6   : > { %3571 = vrot.lane.b32.xlu1 %v3480_v58, %s4736_s30  ;;  %3757 = vrot.lane.b32.xlu0 %v3094_v54, %s4737_s12  ;;  %v3675_v54 = vld [vmem:[#allocation2 + $0x19a] sm:$0xff] }
 0x4e7   : > { %4676 = vmatprep.mubr.msk.bf16.mxu1 %vm1912_vm10, %v3875_v12 }
 0x4e8   : > { %v2977_v19 = vpop.permute.xlu1 %2976  ;;  %v2979_v26 = vpop.permute.xlu0 %2978  ;;  %v3851_v35 = vld [vmem:[#allocation3 + $0x70] sm:$0xff]  ;;  %v3852_v30 = vld [vmem:[#allocation3 + $0x78] sm:$0xff] }
 0x4e9   : > { %3054 = vst.msk [vmem:[#allocation3 + $0x90] sm:$0xff] %vm1031_vm4, %v2977_v19  ;;  %3055 = vst.msk [vmem:[#allocation3 + $0x98] sm:$0xff] %vm1031_vm4, %v2979_v26  ;;  %v3876_v4 = vpack.c.bf16 %v3852_v30, %v3851_v35 }
 0x4ea   : > { %3759 = vrot.lane.b32.xlu1 %v3095_v37, %s4737_s12  ;;  %3761 = vrot.lane.b32.xlu0 %v3671_v51, %s4737_s12  ;;  %v3676_v37 = vld [vmem:[#allocation2 + $0x1a2] sm:$0xff] }
 0x4eb   : > { %4677 = vmatmul.mubr.msk.bf16.gmra.mxu1 %vm1912_vm10, %v3876_v4  ;;  %v4527_v4 = vld [vmem:[%s4783_s23 + $0x19] sm:$0xff] }
 0x4ec   : > { %v3165_v24 = vpop.permute.xlu1 %3164  ;;  %v3167_v60 = vpop.permute.xlu0 %3166 }
 0x4ed   : > { %3244 = vst.msk [vmem:[#allocation3 + $0x80] sm:$0xff] %vm1224_vm5, %v3165_v24  ;;  %3245 = vst.msk [vmem:[#allocation3 + $0x88] sm:$0xff] %vm1224_vm5, %v3167_v60 }
 0x4ee   : > { %3763 = vrot.lane.b32.xlu1 %v3672_v18, %s4737_s12  ;;  %2804 = vrot.lane.b32.xlu0 %v3287_v43, %s4732_s26 }
 0x4f0   : > { %v3169_v7 = vpop.permute.xlu1 %3168  ;;  %v3171_v38 = vpop.permute.xlu0 %3170 }
 0x4f1   : > { %3246 = vst.msk [vmem:[#allocation3 + $0x90] sm:$0xff] %vm1224_vm5, %v3169_v7  ;;  %3247 = vst.msk [vmem:[#allocation3 + $0x98] sm:$0xff] %vm1224_vm5, %v3171_v38  ;;  %v4530_v38 = vld [vmem:[%s4783_s23 + $0x39] sm:$0xff] }
 0x4f2   : > { %2806 = vrot.lane.b32.xlu1 %v3288_v21, %s4732_s26  ;;  %2808 = vrot.lane.b32.xlu0 %v2714_v44, %s4732_s26 }
 0x4f4   : > { %v3358_v36 = vpop.permute.xlu1 %3357  ;;  %v3360_v46 = vpop.permute.xlu0 %3359 }
 0x4f5   : > { %3437 = vst.msk [vmem:[#allocation3 + $0x80] sm:$0xff] %vm1418_vm7, %v3358_v36  ;;  %3438 = vst.msk [vmem:[#allocation3 + $0x88] sm:$0xff] %vm1418_vm7, %v3360_v46 }
 0x4f6   : > { %2810 = vrot.lane.b32.xlu1 %v2715_v61, %s4732_s26  ;;  %2996 = vrot.lane.b32.xlu0 %v3479_v63, %s4733_s27  ;;  %s4581_s26 = sshll.u32 %s7108_s19, 8 }
 0x4f7   : > { %s6831_s19 = scalar_lea.vmem %s7016_s5, %s4581_s26 }
 0x4f8   : > { %v3362_v25 = vpop.permute.xlu1 %3361  ;;  %v3364_v34 = vpop.permute.xlu0 %3363 }
 0x4f9   : > { %3439 = vst.msk [vmem:[#allocation3 + $0x90] sm:$0xff] %vm1418_vm7, %v3362_v25  ;;  %3440 = vst.msk [vmem:[#allocation3 + $0x98] sm:$0xff] %vm1418_vm7, %v3364_v34 }
 0x4fa   : > { %2998 = vrot.lane.b32.xlu1 %v3480_v58, %s4733_s27  ;;  %3000 = vrot.lane.b32.xlu0 %v2906_v48, %s4733_s27  ;;  %v4529_v58 = vld [vmem:[%s4783_s23 + $0x31] sm:$0xff] }
 0x4fc   : > { %v3550_v57 = vpop.permute.xlu1 %3549  ;;  %v3552_v55 = vpop.permute.xlu0 %3551 }
 0x4fd   : > { %3629 = vst.msk [vmem:[#allocation3 + $0x80] sm:$0xff] %vm1611_vm8, %v3550_v57  ;;  %3630 = vst.msk [vmem:[#allocation3 + $0x88] sm:$0xff] %vm1611_vm8, %v3552_v55  ;;  %v4528_v55 = vld [vmem:[%s4783_s23 + $0x21] sm:$0xff] }
 0x4fe   : > { %3002 = vrot.lane.b32.xlu1 %v2907_v27, %s4733_s27  ;;  %3188 = vrot.lane.b32.xlu0 %v3671_v51, %s4734_s28 }
 0x500   : > { %v3554_v41 = vpop.permute.xlu1 %3553  ;;  %v3556_v32 = vpop.permute.xlu0 %3555 }
 0x501   : > { %3631 = vst.msk [vmem:[#allocation3 + $0x90] sm:$0xff] %vm1611_vm8, %v3554_v41  ;;  %3632 = vst.msk [vmem:[#allocation3 + $0x98] sm:$0xff] %vm1611_vm8, %v3556_v32 }
 0x502   : > { %3190 = vrot.lane.b32.xlu1 %v3672_v18, %s4734_s28  ;;  %3192 = vrot.lane.b32.xlu0 %v3098_v33, %s4734_s28 }
 0x504   : > { %v3742_v2 = vpop.permute.xlu1 %3741  ;;  %v3744_v39 = vpop.permute.xlu0 %3743 }
 0x505   : > { %3821 = vst.msk [vmem:[#allocation3 + $0x80] sm:$0xff] %vm1804_vm9, %v3742_v2  ;;  %3822 = vst.msk [vmem:[#allocation3 + $0x88] sm:$0xff] %vm1804_vm9, %v3744_v39 }
 0x506   : > { %3194 = vrot.lane.b32.xlu1 %v3099_v40, %s4734_s28  ;;  %3381 = vrot.lane.b32.xlu0 %v2714_v44, %s4735_s29 }
 0x508   : > { %v3746_v59 = vpop.permute.xlu1 %3745  ;;  %v3748_v47 = vpop.permute.xlu0 %3747 }
 0x509   : > { %3823 = vst.msk [vmem:[#allocation3 + $0x90] sm:$0xff] %vm1804_vm9, %v3746_v59  ;;  %3824 = vst.msk [vmem:[#allocation3 + $0x98] sm:$0xff] %vm1804_vm9, %v3748_v47 }
 0x50a   : > { %3383 = vrot.lane.b32.xlu1 %v2715_v61, %s4735_s29  ;;  %3385 = vrot.lane.b32.xlu0 %v3291_v52, %s4735_s29 }
 0x50c   : > { %v2981_v1 = vpop.permute.xlu1 %2980  ;;  %v2983_v62 = vpop.permute.xlu0 %2982  ;;  %v3853_v49 = vld [vmem:[#allocation3 + $0x80] sm:$0xff]  ;;  %v3854_v29 = vld [vmem:[#allocation3 + $0x88] sm:$0xff] }
 0x50d   : > { %3056 = vst.msk [vmem:[#allocation3 + $0xa0] sm:$0xff] %vm1031_vm4, %v2981_v1  ;;  %3057 = vst.msk [vmem:[#allocation3 + $0xa8] sm:$0xff] %vm1031_vm4, %v2983_v62  ;;  %v3877_v56 = vpack.c.bf16 %v3854_v29, %v3853_v49 }
 0x50e   : > { %3387 = vrot.lane.b32.xlu1 %v3292_v6, %s4735_s29  ;;  %3573 = vrot.lane.b32.xlu0 %v2906_v48, %s4736_s30 }
 0x50f   : > { %4680 = vmatprep.mubr.msk.bf16.mxu1 %vm1912_vm10, %v3877_v56 }
 0x510   : > { %v2985_v45 = vpop.permute.xlu1 %2984  ;;  %v2987_v20 = vpop.permute.xlu0 %2986  ;;  %v3855_v53 = vld [vmem:[#allocation3 + $0x90] sm:$0xff]  ;;  %v3856_v11 = vld [vmem:[#allocation3 + $0x98] sm:$0xff] }
 0x511   : > { %3058 = vst.msk [vmem:[#allocation3 + $0xb0] sm:$0xff] %vm1031_vm4, %v2985_v45  ;;  %3059 = vst.msk [vmem:[#allocation3 + $0xb8] sm:$0xff] %vm1031_vm4, %v2987_v20  ;;  %v3878_v3 = vpack.c.bf16 %v3856_v11, %v3855_v53 }
 0x512   : > { %3575 = vrot.lane.b32.xlu1 %v2907_v27, %s4736_s30  ;;  %3577 = vrot.lane.b32.xlu0 %v3483_v17, %s4736_s30 }
 0x513   : > { %4681 = vmatmul.mubr.msk.bf16.gmra.mxu1 %vm1912_vm10, %v3878_v3 }
 0x514   : > { %v3173_v14 = vpop.permute.xlu1 %3172  ;;  %v3175_v28 = vpop.permute.xlu0 %3174 }
 0x515   : > { %3248 = vst.msk [vmem:[#allocation3 + $0xa0] sm:$0xff] %vm1224_vm5, %v3173_v14  ;;  %3249 = vst.msk [vmem:[#allocation3 + $0xa8] sm:$0xff] %vm1224_vm5, %v3175_v28  ;;  %v4533_v28 = vld [vmem:[%s4783_s23 + $0x61] sm:$0xff] }
 0x516   : > { %3579 = vrot.lane.b32.xlu1 %v3484_v23, %s4736_s30  ;;  %3765 = vrot.lane.b32.xlu0 %v3098_v33, %s4737_s12 }
 0x518   : > { %v3177_v10 = vpop.permute.xlu1 %3176  ;;  %v3179_v31 = vpop.permute.xlu0 %3178 }
 0x519   : > { %3250 = vst.msk [vmem:[#allocation3 + $0xb0] sm:$0xff] %vm1224_vm5, %v3177_v10  ;;  %3251 = vst.msk [vmem:[#allocation3 + $0xb8] sm:$0xff] %vm1224_vm5, %v3179_v31 }
 0x51a   : > { %3767 = vrot.lane.b32.xlu1 %v3099_v40, %s4737_s12  ;;  %3769 = vrot.lane.b32.xlu0 %v3675_v54, %s4737_s12 }
 0x51c   : > { %v3366_v16 = vpop.permute.xlu1 %3365  ;;  %v3368_v0 = vpop.permute.xlu0 %3367 }
 0x51d   : > { %3441 = vst.msk [vmem:[#allocation3 + $0xa0] sm:$0xff] %vm1418_vm7, %v3366_v16  ;;  %3442 = vst.msk [vmem:[#allocation3 + $0xa8] sm:$0xff] %vm1418_vm7, %v3368_v0  ;;  %v4531_v16 = vld [vmem:[%s4783_s23 + $0x49] sm:$0xff] }
 0x51e   : > { %3771 = vrot.lane.b32.xlu1 %v3676_v37, %s4737_s12 }
 0x520   : > { %v3370_v43 = vpop.permute.xlu1 %3369  ;;  %v3372_v9 = vpop.permute.xlu0 %3371 }
 0x521   : > { %3443 = vst.msk [vmem:[#allocation3 + $0xb0] sm:$0xff] %vm1418_vm7, %v3370_v43  ;;  %3444 = vst.msk [vmem:[#allocation3 + $0xb8] sm:$0xff] %vm1418_vm7, %v3372_v9 }
 0x524   : > { %v3558_v15 = vpop.permute.xlu1 %3557  ;;  %v3560_v21 = vpop.permute.xlu0 %3559 }
 0x525   : > { %3633 = vst.msk [vmem:[#allocation3 + $0xa0] sm:$0xff] %vm1611_vm8, %v3558_v15  ;;  %3634 = vst.msk [vmem:[#allocation3 + $0xa8] sm:$0xff] %vm1611_vm8, %v3560_v21  ;;  %v4534_v15 = vld [vmem:[%s4783_s23 + $0x69] sm:$0xff] }
 0x528   : > { %v3562_v42 = vpop.permute.xlu1 %3561  ;;  %v3564_v50 = vpop.permute.xlu0 %3563 }
 0x529   : > { %3635 = vst.msk [vmem:[#allocation3 + $0xb0] sm:$0xff] %vm1611_vm8, %v3562_v42  ;;  %3636 = vst.msk [vmem:[#allocation3 + $0xb8] sm:$0xff] %vm1611_vm8, %v3564_v50 }
 0x52c   : > { %v3750_v63 = vpop.permute.xlu1 %3749  ;;  %v3752_v5 = vpop.permute.xlu0 %3751 }
 0x52d   : > { %3825 = vst.msk [vmem:[#allocation3 + $0xa0] sm:$0xff] %vm1804_vm9, %v3750_v63  ;;  %3826 = vst.msk [vmem:[#allocation3 + $0xa8] sm:$0xff] %vm1804_vm9, %v3752_v5 }
 0x530   : > { %v3754_v13 = vpop.permute.xlu1 %3753  ;;  %v3756_v8 = vpop.permute.xlu0 %3755 }
 0x531   : > { %3827 = vst.msk [vmem:[#allocation3 + $0xb0] sm:$0xff] %vm1804_vm9, %v3754_v13  ;;  %3828 = vst.msk [vmem:[#allocation3 + $0xb8] sm:$0xff] %vm1804_vm9, %v3756_v8  ;;  %v4532_v8 = vld [vmem:[%s4783_s23 + $0x51] sm:$0xff] }
 0x533   : > { %v4666_v12 = vpop.f32.mrf.mxu1 }
 0x534   : > { %v4038_v19 = vadd.f32 %v4666_v12, %v6819_v22  ;;  %v2799_v26 = vpop.permute.xlu1 %2798  ;;  %v2801_v35 = vpop.permute.xlu0 %2800  ;;  %v3857_v30 = vld [vmem:[#allocation3 + $0xa0] sm:$0xff]  ;;  %v3858_v51 = vld [vmem:[#allocation3 + $0xa8] sm:$0xff] }
 0x535   : > { %2869 = vst.msk [vmem:[#allocation3 + $0xc8] sm:$0xff] %vm838_vm3, %v2799_v26  ;;  %2870 = vst.msk [vmem:[#allocation3 + $0xd0] sm:$0xff] %vm838_vm3, %v2801_v35  ;;  %v4029_v24 = vpop.f32.mrf.mxu1  ;;  %v3879_v60 = vpack.c.bf16 %v3858_v51, %v3857_v30 }
 0x536   : > { %v4158_v18 = vadd.f32 %v4529_v58, %v4038_v19  ;;  %v4030_v7 = vadd.f32 %v6819_v22, %v4029_v24 }
 0x537   : > { %v4667_v44 = vpop.f32.mrf.mxu1  ;;  %4684 = vmatprep.mubr.msk.bf16.mxu1 %vm1912_vm10, %v3879_v60 }
 0x538   : > { %v4190_v36 = vmax.f32 %v4158_v18, 0.0  ;;  %v4156_v46 = vadd.f32 %v4527_v4, %v4030_v7  ;;  %v4041_v61 = vadd.f32 %v4667_v44, %v6819_v22  ;;  %v2803_v25 = vpop.permute.xlu1 %2802  ;;  %v2989_v34 = vpop.permute.xlu0 %2988  ;;  %v3859_v48 = vld [vmem:[#allocation3 + $0xb0] sm:$0xff]  ;;  %v3860_v57 = vld [vmem:[#allocation3 + $0xb8] sm:$0xff] }
 0x539   : > { %2871 = vst.msk [vmem:[#allocation3 + $0xd8] sm:$0xff] %vm838_vm3, %v2803_v25  ;;  %v4032_v27 = vpop.f32.mrf.mxu1  ;;  %v3880_v41 = vpack.c.bf16 %v3860_v57, %v3859_v48 }
 0x53a   : > { %3060 = vst.msk [vmem:[#allocation3 + $0xc0] sm:$0xff] %vm1031_vm4, %v2989_v34  ;;  %v4188_v32 = vmax.f32 %v4156_v46, 0.0  ;;  %v4159_v33 = vadd.f32 %v4530_v38, %v4041_v61  ;;  %v4033_v2 = vadd.f32 %v6819_v22, %v4032_v27 }
 0x53b   : > { %4222 = vst.msk [vmem:[%s6831_s19 + $0x10] sm:$0xff] %vm258_vm0, %v4190_v36  ;;  %4685 = vmatmul.mubr.msk.bf16.gmra.mxu1 %vm1912_vm10, %v3880_v41 }
 0x53c   : > { %4220 = vst.msk [vmem:[%s6831_s19] sm:$0xff] %vm258_vm0, %v4188_v32  ;;  %v4191_v39 = vmax.f32 %v4159_v33, 0.0  ;;  %v4157_v40 = vadd.f32 %v4528_v55, %v4033_v2  ;;  %v2991_v52 = vpop.permute.xlu1 %2990  ;;  %v2993_v59 = vpop.permute.xlu0 %2992 }
 0x53d   : > { %3061 = vst.msk [vmem:[#allocation3 + $0xc8] sm:$0xff] %vm1031_vm4, %v2991_v52  ;;  %3062 = vst.msk [vmem:[#allocation3 + $0xd0] sm:$0xff] %vm1031_vm4, %v2993_v59  ;;  %v4537_v52 = vld [vmem:[%s4783_s23 + $0x91] sm:$0xff] }
 0x53e   : > { %4223 = vst.msk [vmem:[%s6831_s19 + $0x18] sm:$0xff] %vm258_vm0, %v4191_v39  ;;  %v4189_v47 = vmax.f32 %v4157_v40, 0.0 }
 0x540   : > { %4221 = vst.msk [vmem:[%s6831_s19 + $0x8] sm:$0xff] %vm258_vm0, %v4189_v47  ;;  %v2995_v6 = vpop.permute.xlu1 %2994  ;;  %v3181_v1 = vpop.permute.xlu0 %3180 }
 0x541   : > { %3063 = vst.msk [vmem:[#allocation3 + $0xd8] sm:$0xff] %vm1031_vm4, %v2995_v6 }
 0x542   : > { %3252 = vst.msk [vmem:[#allocation3 + $0xc0] sm:$0xff] %vm1224_vm5, %v3181_v1 }
 0x544   : > { %v3183_v62 = vpop.permute.xlu1 %3182  ;;  %v3185_v49 = vpop.permute.xlu0 %3184 }
 0x545   : > { %3253 = vst.msk [vmem:[#allocation3 + $0xc8] sm:$0xff] %vm1224_vm5, %v3183_v62  ;;  %3254 = vst.msk [vmem:[#allocation3 + $0xd0] sm:$0xff] %vm1224_vm5, %v3185_v49  ;;  %v4535_v62 = vld [vmem:[%s4783_s23 + $0x79] sm:$0xff] }
 0x548   : > { %v3187_v29 = vpop.permute.xlu1 %3186  ;;  %v3374_v56 = vpop.permute.xlu0 %3373 }
 0x549   : > { %3255 = vst.msk [vmem:[#allocation3 + $0xd8] sm:$0xff] %vm1224_vm5, %v3187_v29 }
 0x54a   : > { %3445 = vst.msk [vmem:[#allocation3 + $0xc0] sm:$0xff] %vm1418_vm7, %v3374_v56 }
 0x54c   : > { %v3376_v17 = vpop.permute.xlu1 %3375  ;;  %v3378_v45 = vpop.permute.xlu0 %3377 }
 0x54d   : > { %3446 = vst.msk [vmem:[#allocation3 + $0xc8] sm:$0xff] %vm1418_vm7, %v3376_v17  ;;  %3447 = vst.msk [vmem:[#allocation3 + $0xd0] sm:$0xff] %vm1418_vm7, %v3378_v45  ;;  %v4538_v17 = vld [vmem:[%s4783_s23 + $0x99] sm:$0xff] }
 0x550   : > { %v3380_v20 = vpop.permute.xlu1 %3379  ;;  %v3566_v53 = vpop.permute.xlu0 %3565 }
 0x551   : > { %3448 = vst.msk [vmem:[#allocation3 + $0xd8] sm:$0xff] %vm1418_vm7, %v3380_v20 }
 0x552   : > { %3637 = vst.msk [vmem:[#allocation3 + $0xc0] sm:$0xff] %vm1611_vm8, %v3566_v53 }
 0x554   : > { %v3568_v11 = vpop.permute.xlu1 %3567  ;;  %v3570_v3 = vpop.permute.xlu0 %3569 }
 0x555   : > { %3638 = vst.msk [vmem:[#allocation3 + $0xc8] sm:$0xff] %vm1611_vm8, %v3568_v11  ;;  %3639 = vst.msk [vmem:[#allocation3 + $0xd0] sm:$0xff] %vm1611_vm8, %v3570_v3 }
 0x558   : > { %v3572_v23 = vpop.permute.xlu1 %3571  ;;  %v3758_v14 = vpop.permute.xlu0 %3757 }
 0x559   : > { %3640 = vst.msk [vmem:[#allocation3 + $0xd8] sm:$0xff] %vm1611_vm8, %v3572_v23 }
 0x55a   : > { %3829 = vst.msk [vmem:[#allocation3 + $0xc0] sm:$0xff] %vm1804_vm9, %v3758_v14  ;;  %v4536_v14 = vld [vmem:[%s4783_s23 + $0x81] sm:$0xff] }
 0x55b   : > { %v4670_v54 = vpop.f32.mrf.mxu1 }
 0x55c   : > { %v4054_v10 = vadd.f32 %v4670_v54, %v6819_v22  ;;  %v3760_v31 = vpop.permute.xlu1 %3759  ;;  %v3762_v37 = vpop.permute.xlu0 %3761 }
 0x55d   : > { %3830 = vst.msk [vmem:[#allocation3 + $0xc8] sm:$0xff] %vm1804_vm9, %v3760_v31  ;;  %3831 = vst.msk [vmem:[#allocation3 + $0xd0] sm:$0xff] %vm1804_vm9, %v3762_v37  ;;  %v4045_v0 = vpop.f32.mrf.mxu1 }
 0x55e   : > { %v4162_v43 = vadd.f32 %v4533_v28, %v4054_v10  ;;  %v4046_v9 = vadd.f32 %v6819_v22, %v4045_v0 }
 0x55f   : > { %v4671_v21 = vpop.f32.mrf.mxu1 }
 0x560   : > { %v4194_v42 = vmax.f32 %v4162_v43, 0.0  ;;  %v4160_v50 = vadd.f32 %v4531_v16, %v4046_v9  ;;  %v4057_v63 = vadd.f32 %v4671_v21, %v6819_v22  ;;  %v3764_v5 = vpop.permute.xlu1 %3763  ;;  %v2805_v13 = vpop.permute.xlu0 %2804 }
 0x561   : > { %3832 = vst.msk [vmem:[#allocation3 + $0xd8] sm:$0xff] %vm1804_vm9, %v3764_v5  ;;  %v4048_v58 = vpop.f32.mrf.mxu1  ;;  %v3861_v24 = vld [vmem:[#allocation3 + $0xc0] sm:$0xff] }
 0x562   : > { %2872 = vst.msk [vmem:[#allocation3 + $0xe0] sm:$0xff] %vm838_vm3, %v2805_v13  ;;  %v4192_v12 = vmax.f32 %v4160_v50, 0.0  ;;  %v4163_v19 = vadd.f32 %v4534_v15, %v4057_v63  ;;  %v4049_v26 = vadd.f32 %v6819_v22, %v4048_v58 }
 0x563   : > { %4226 = vst.msk [vmem:[%s6831_s19 + $0x30] sm:$0xff] %vm258_vm0, %v4194_v42 }
 0x564   : > { %4224 = vst.msk [vmem:[%s6831_s19 + $0x20] sm:$0xff] %vm258_vm0, %v4192_v12  ;;  %v4195_v35 = vmax.f32 %v4163_v19, 0.0  ;;  %v4161_v30 = vadd.f32 %v4532_v8, %v4049_v26  ;;  %v2807_v51 = vpop.permute.xlu1 %2806  ;;  %v2809_v4 = vpop.permute.xlu0 %2808  ;;  %v3862_v60 = vld [vmem:[#allocation3 + $0xc8] sm:$0xff]  ;;  %v3863_v36 = vld [vmem:[#allocation3 + $0xd0] sm:$0xff]  ;;  %v4539_v19 = vld [vmem:[%s4783_s23 + $0xa9] sm:$0xff] }
 0x565   : > { %2873 = vst.msk [vmem:[#allocation3 + $0xe8] sm:$0xff] %vm838_vm3, %v2807_v51  ;;  %2874 = vst.msk [vmem:[#allocation3 + $0xf0] sm:$0xff] %vm838_vm3, %v2809_v4  ;;  %v3881_v18 = vpack.c.bf16 %v3862_v60, %v3861_v24  ;;  %v4541_v8 = vld [vmem:[%s4783_s23 + $0xc1] sm:$0xff]  ;;  %v4542_v51 = vld [vmem:[%s4783_s23 + $0xc9] sm:$0xff] }
 0x566   : > { %4227 = vst.msk [vmem:[%s6831_s19 + $0x38] sm:$0xff] %vm258_vm0, %v4195_v35  ;;  %v4193_v7 = vmax.f32 %v4161_v30, 0.0 }
 0x567   : > { %4688 = vmatprep.mubr.msk.bf16.mxu1 %vm1912_vm10, %v3881_v18 }
 0x568   : > { %4225 = vst.msk [vmem:[%s6831_s19 + $0x28] sm:$0xff] %vm258_vm0, %v4193_v7  ;;  %v2811_v38 = vpop.permute.xlu1 %2810  ;;  %v2997_v44 = vpop.permute.xlu0 %2996  ;;  %v3864_v46 = vld [vmem:[#allocation3 + $0xd8] sm:$0xff]  ;;  %v4540_v7 = vld [vmem:[%s4783_s23 + $0xb1] sm:$0xff] }
 0x569   : > { %2875 = vst.msk [vmem:[#allocation3 + $0xf8] sm:$0xff] %vm838_vm3, %v2811_v38  ;;  %v3882_v61 = vpack.c.bf16 %v3864_v46, %v3863_v36 }
 0x56a   : > { %3064 = vst.msk [vmem:[#allocation3 + $0xe0] sm:$0xff] %vm1031_vm4, %v2997_v44 }
 0x56b   : > { %4689 = vmatmul.mubr.msk.bf16.gmra.mxu1 %vm1912_vm10, %v3882_v61 }
 0x56c   : > { %v2999_v25 = vpop.permute.xlu1 %2998  ;;  %v3001_v34 = vpop.permute.xlu0 %3000 }
 0x56d   : > { %3065 = vst.msk [vmem:[#allocation3 + $0xe8] sm:$0xff] %vm1031_vm4, %v2999_v25  ;;  %3066 = vst.msk [vmem:[#allocation3 + $0xf0] sm:$0xff] %vm1031_vm4, %v3001_v34 }
 0x570   : > { %v3003_v48 = vpop.permute.xlu1 %3002  ;;  %v3189_v57 = vpop.permute.xlu0 %3188 }
 0x571   : > { %3067 = vst.msk [vmem:[#allocation3 + $0xf8] sm:$0xff] %vm1031_vm4, %v3003_v48  ;;  %v4545_v48 = vld [vmem:[%s4783_s23 + $0xf1] sm:$0xff] }
 0x572   : > { %3256 = vst.msk [vmem:[#allocation3 + $0xe0] sm:$0xff] %vm1224_vm5, %v3189_v57 }
 0x574   : > { %v3191_v55 = vpop.permute.xlu1 %3190  ;;  %v3193_v27 = vpop.permute.xlu0 %3192 }
 0x575   : > { %3257 = vst.msk [vmem:[#allocation3 + $0xe8] sm:$0xff] %vm1224_vm5, %v3191_v55  ;;  %3258 = vst.msk [vmem:[#allocation3 + $0xf0] sm:$0xff] %vm1224_vm5, %v3193_v27  ;;  %v4543_v27 = vld [vmem:[%s4783_s23 + $0xd9] sm:$0xff] }
 0x578   : > { %v3195_v41 = vpop.permute.xlu1 %3194  ;;  %v3382_v32 = vpop.permute.xlu0 %3381 }
 0x579   : > { %3259 = vst.msk [vmem:[#allocation3 + $0xf8] sm:$0xff] %vm1224_vm5, %v3195_v41 }
 0x57a   : > { %3449 = vst.msk [vmem:[#allocation3 + $0xe0] sm:$0xff] %vm1418_vm7, %v3382_v32 }
 0x57c   : > { %v3384_v33 = vpop.permute.xlu1 %3383  ;;  %v3386_v2 = vpop.permute.xlu0 %3385 }
 0x57d   : > { %3450 = vst.msk [vmem:[#allocation3 + $0xe8] sm:$0xff] %vm1418_vm7, %v3384_v33  ;;  %3451 = vst.msk [vmem:[#allocation3 + $0xf0] sm:$0xff] %vm1418_vm7, %v3386_v2  ;;  %v4546_v2 = vld [vmem:[%s4783_s23 + $0xf9] sm:$0xff] }
 0x580   : > { %v3388_v39 = vpop.permute.xlu1 %3387  ;;  %v3574_v40 = vpop.permute.xlu0 %3573 }
 0x581   : > { %3452 = vst.msk [vmem:[#allocation3 + $0xf8] sm:$0xff] %vm1418_vm7, %v3388_v39 }
 0x582   : > { %3641 = vst.msk [vmem:[#allocation3 + $0xe0] sm:$0xff] %vm1611_vm8, %v3574_v40 }
 0x583   : > { %v4674_v59 = vpop.f32.mrf.mxu1 }
 0x584   : > { %v4070_v47 = vadd.f32 %v4674_v59, %v6819_v22  ;;  %v3576_v6 = vpop.permute.xlu1 %3575  ;;  %v3578_v1 = vpop.permute.xlu0 %3577 }
 0x585   : > { %3642 = vst.msk [vmem:[#allocation3 + $0xe8] sm:$0xff] %vm1611_vm8, %v3576_v6  ;;  %3643 = vst.msk [vmem:[#allocation3 + $0xf0] sm:$0xff] %vm1611_vm8, %v3578_v1  ;;  %v4061_v49 = vpop.f32.mrf.mxu1 }
 0x586   : > { %v4166_v29 = vadd.f32 %v4537_v52, %v4070_v47  ;;  %v4062_v56 = vadd.f32 %v6819_v22, %v4061_v49  ;;  %v4544_v47 = vld [vmem:[%s4783_s23 + $0xe1] sm:$0xff] }
 0x587   : > { %v4675_v45 = vpop.f32.mrf.mxu1 }
 0x588   : > { %v4198_v20 = vmax.f32 %v4166_v29, 0.0  ;;  %v4164_v53 = vadd.f32 %v4535_v62, %v4062_v56  ;;  %v4073_v11 = vadd.f32 %v4675_v45, %v6819_v22  ;;  %v3580_v3 = vpop.permute.xlu1 %3579  ;;  %v3766_v23 = vpop.permute.xlu0 %3765  ;;  %v4549_v45 = vld [vmem:[%s4783_s23 + $0x121] sm:$0xff] }
 0x589   : > { %3644 = vst.msk [vmem:[#allocation3 + $0xf8] sm:$0xff] %vm1611_vm8, %v3580_v3  ;;  %v4064_v28 = vpop.f32.mrf.mxu1 }
 0x58a   : > { %3833 = vst.msk [vmem:[#allocation3 + $0xe0] sm:$0xff] %vm1804_vm9, %v3766_v23  ;;  %v4196_v54 = vmax.f32 %v4164_v53, 0.0  ;;  %v4167_v10 = vadd.f32 %v4538_v17, %v4073_v11  ;;  %v4065_v31 = vadd.f32 %v6819_v22, %v4064_v28  ;;  %v4547_v11 = vld [vmem:[%s4783_s23 + $0x109] sm:$0xff] }
 0x58b   : > { %4230 = vst.msk [vmem:[%s6831_s19 + $0x50] sm:$0xff] %vm258_vm0, %v4198_v20  ;;  %v4550_v28 = vld [vmem:[%s4783_s23 + $0x129] sm:$0xff] }
 0x58c   : > { %4228 = vst.msk [vmem:[%s6831_s19 + $0x40] sm:$0xff] %vm258_vm0, %v4196_v54  ;;  %v4199_v37 = vmax.f32 %v4167_v10, 0.0  ;;  %v4165_v16 = vadd.f32 %v4536_v14, %v4065_v31  ;;  %v3768_v0 = vpop.permute.xlu1 %3767  ;;  %v3770_v43 = vpop.permute.xlu0 %3769 }
 0x58d   : > { %3834 = vst.msk [vmem:[#allocation3 + $0xe8] sm:$0xff] %vm1804_vm9, %v3768_v0  ;;  %3835 = vst.msk [vmem:[#allocation3 + $0xf0] sm:$0xff] %vm1804_vm9, %v3770_v43 }
 0x58e   : > { %4231 = vst.msk [vmem:[%s6831_s19 + $0x58] sm:$0xff] %vm258_vm0, %v4199_v37  ;;  %v4197_v9 = vmax.f32 %v4165_v16, 0.0  ;;  %v4548_v16 = vld [vmem:[%s4783_s23 + $0x111] sm:$0xff] }
 0x590   : > { %4229 = vst.msk [vmem:[%s6831_s19 + $0x48] sm:$0xff] %vm258_vm0, %v4197_v9  ;;  %v3772_v15 = vpop.permute.xlu1 %3771 }
 0x591   : > { %3836 = vst.msk [vmem:[#allocation3 + $0xf8] sm:$0xff] %vm1804_vm9, %v3772_v15  ;;  %v3865_v21 = vld [vmem:[#allocation3 + $0xe0] sm:$0xff] }
 0x594   : > { %v3866_v42 = vld [vmem:[#allocation3 + $0xe8] sm:$0xff]  ;;  %v3867_v63 = vld [vmem:[#allocation3 + $0xf0] sm:$0xff] }
 0x595   : > { %v3883_v50 = vpack.c.bf16 %v3866_v42, %v3865_v21 }
 0x597   : > { %4692 = vmatprep.mubr.msk.bf16.mxu1 %vm1912_vm10, %v3883_v50 }
 0x598   : > { %v3868_v5 = vld [vmem:[#allocation3 + $0xf8] sm:$0xff] }
 0x599   : > { %v3884_v13 = vpack.c.bf16 %v3868_v5, %v3867_v63  ;;  %v4553_v63 = vld [vmem:[%s4783_s23 + $0x151] sm:$0xff] }
 0x59b   : > { %4693 = vmatmul.mubr.msk.bf16.gmra.mxu1 %vm1912_vm10, %v3884_v13 }
 0x5ab   : > { %v4678_v58 = vpop.f32.mrf.mxu1 }
 0x5ac   : > { %v4086_v12 = vadd.f32 %v4678_v58, %v6819_v22 }
 0x5ad   : > { %v4077_v26 = vpop.f32.mrf.mxu1 }
 0x5ae   : > { %v4170_v35 = vadd.f32 %v4541_v8, %v4086_v12  ;;  %v4078_v30 = vadd.f32 %v6819_v22, %v4077_v26  ;;  %v4551_v8 = vld [vmem:[%s4783_s23 + $0x139] sm:$0xff] }
 0x5af   : > { %v4679_v4 = vpop.f32.mrf.mxu1  ;;  %v4554_v26 = vld [vmem:[%s4783_s23 + $0x159] sm:$0xff] }
 0x5b0   : > { %v4202_v24 = vmax.f32 %v4170_v35, 0.0  ;;  %v4168_v60 = vadd.f32 %v4539_v19, %v4078_v30  ;;  %v4089_v18 = vadd.f32 %v4679_v4, %v6819_v22 }
 0x5b1   : > { %v4080_v38 = vpop.f32.mrf.mxu1 }
 0x5b2   : > { %4234 = vst.msk [vmem:[%s6831_s19 + $0x70] sm:$0xff] %vm258_vm0, %v4202_v24  ;;  %v4200_v44 = vmax.f32 %v4168_v60, 0.0  ;;  %v4171_v36 = vadd.f32 %v4542_v51, %v4089_v18  ;;  %v4081_v46 = vadd.f32 %v6819_v22, %v4080_v38  ;;  %v4552_v24 = vld [vmem:[%s4783_s23 + $0x141] sm:$0xff] }
 0x5b4   : > { %4232 = vst.msk [vmem:[%s6831_s19 + $0x60] sm:$0xff] %vm258_vm0, %v4200_v44  ;;  %v4203_v61 = vmax.f32 %v4171_v36, 0.0  ;;  %v4169_v25 = vadd.f32 %v4540_v7, %v4081_v46 }
 0x5b6   : > { %4235 = vst.msk [vmem:[%s6831_s19 + $0x78] sm:$0xff] %vm258_vm0, %v4203_v61  ;;  %v4201_v34 = vmax.f32 %v4169_v25, 0.0  ;;  %v4557_v61 = vld [vmem:[%s4783_s23 + $0x181] sm:$0xff] }
 0x5b8   : > { %4233 = vst.msk [vmem:[%s6831_s19 + $0x68] sm:$0xff] %vm258_vm0, %v4201_v34 }
 0x5d3   : > { %v4682_v57 = vpop.f32.mrf.mxu1 }
 0x5d4   : > { %v4102_v55 = vadd.f32 %v4682_v57, %v6819_v22 }
 0x5d5   : > { %v4093_v41 = vpop.f32.mrf.mxu1 }
 0x5d6   : > { %v4174_v32 = vadd.f32 %v4545_v48, %v4102_v55  ;;  %v4094_v33 = vadd.f32 %v6819_v22, %v4093_v41  ;;  %v4555_v48 = vld [vmem:[%s4783_s23 + $0x169] sm:$0xff] }
 0x5d7   : > { %v4683_v39 = vpop.f32.mrf.mxu1  ;;  %v4558_v41 = vld [vmem:[%s4783_s23 + $0x189] sm:$0xff] }
 0x5d8   : > { %v4206_v40 = vmax.f32 %v4174_v32, 0.0  ;;  %v4172_v52 = vadd.f32 %v4543_v27, %v4094_v33  ;;  %v4105_v59 = vadd.f32 %v4683_v39, %v6819_v22 }
 0x5d9   : > { %v4096_v6 = vpop.f32.mrf.mxu1 }
 0x5da   : > { %4238 = vst.msk [vmem:[%s6831_s19 + $0x90] sm:$0xff] %vm258_vm0, %v4206_v40  ;;  %v4204_v1 = vmax.f32 %v4172_v52, 0.0  ;;  %v4175_v62 = vadd.f32 %v4546_v2, %v4105_v59  ;;  %v4097_v49 = vadd.f32 %v6819_v22, %v4096_v6  ;;  %v4556_v40 = vld [vmem:[%s4783_s23 + $0x171] sm:$0xff] }
 0x5dc   : > { %4236 = vst.msk [vmem:[%s6831_s19 + $0x80] sm:$0xff] %vm258_vm0, %v4204_v1  ;;  %v4207_v29 = vmax.f32 %v4175_v62, 0.0  ;;  %v4173_v56 = vadd.f32 %v4544_v47, %v4097_v49 }
 0x5de   : > { %4239 = vst.msk [vmem:[%s6831_s19 + $0x98] sm:$0xff] %vm258_vm0, %v4207_v29  ;;  %v4205_v17 = vmax.f32 %v4173_v56, 0.0 }
 0x5e0   : > { %4237 = vst.msk [vmem:[%s6831_s19 + $0x88] sm:$0xff] %vm258_vm0, %v4205_v17 }
 0x5fb   : > { %v4686_v20 = vpop.f32.mrf.mxu1 }
 0x5fc   : > { %v4118_v53 = vadd.f32 %v4686_v20, %v6819_v22 }
 0x5fd   : > { %v4109_v3 = vpop.f32.mrf.mxu1 }
 0x5fe   : > { %v4178_v23 = vadd.f32 %v4549_v45, %v4118_v53  ;;  %v4110_v14 = vadd.f32 %v6819_v22, %v4109_v3 }
 0x5ff   : > { %v4687_v54 = vpop.f32.mrf.mxu1 }
 0x600   : > { %v4210_v10 = vmax.f32 %v4178_v23, 0.0  ;;  %v4176_v31 = vadd.f32 %v4547_v11, %v4110_v14  ;;  %v4121_v37 = vadd.f32 %v4687_v54, %v6819_v22 }
 0x601   : > { %v4112_v0 = vpop.f32.mrf.mxu1 }
 0x602   : > { %4242 = vst.msk [vmem:[%s6831_s19 + $0xb0] sm:$0xff] %vm258_vm0, %v4210_v10  ;;  %v4208_v43 = vmax.f32 %v4176_v31, 0.0  ;;  %v4179_v9 = vadd.f32 %v4550_v28, %v4121_v37  ;;  %v4113_v15 = vadd.f32 %v6819_v22, %v4112_v0 }
 0x604   : > { %4240 = vst.msk [vmem:[%s6831_s19 + $0xa0] sm:$0xff] %vm258_vm0, %v4208_v43  ;;  %v4211_v21 = vmax.f32 %v4179_v9, 0.0  ;;  %v4177_v42 = vadd.f32 %v4548_v16, %v4113_v15 }
 0x606   : > { %4243 = vst.msk [vmem:[%s6831_s19 + $0xb8] sm:$0xff] %vm258_vm0, %v4211_v21  ;;  %v4209_v50 = vmax.f32 %v4177_v42, 0.0 }
 0x608   : > { %4241 = vst.msk [vmem:[%s6831_s19 + $0xa8] sm:$0xff] %vm258_vm0, %v4209_v50 }
 0x62b   : > { %v4690_v5 = vpop.f32.mrf.mxu1 }
 0x62c   : > { %v4134_v13 = vadd.f32 %v4690_v5, %v6819_v22 }
 0x62d   : > { %v4125_v58 = vpop.f32.mrf.mxu1 }
 0x62e   : > { %v4182_v12 = vadd.f32 %v4553_v63, %v4134_v13  ;;  %v4126_v19 = vadd.f32 %v6819_v22, %v4125_v58 }
 0x62f   : > { %v4691_v35 = vpop.f32.mrf.mxu1 }
 0x630   : > { %v4214_v30 = vmax.f32 %v4182_v12, 0.0  ;;  %v4180_v51 = vadd.f32 %v4551_v8, %v4126_v19  ;;  %v4137_v4 = vadd.f32 %v4691_v35, %v6819_v22 }
 0x631   : > { %v4128_v60 = vpop.f32.mrf.mxu1 }
 0x632   : > { %4246 = vst.msk [vmem:[%s6831_s19 + $0xd0] sm:$0xff] %vm258_vm0, %v4214_v30  ;;  %v4212_v18 = vmax.f32 %v4180_v51, 0.0  ;;  %v4183_v7 = vadd.f32 %v4554_v26, %v4137_v4  ;;  %v4129_v38 = vadd.f32 %v6819_v22, %v4128_v60 }
 0x634   : > { %4244 = vst.msk [vmem:[%s6831_s19 + $0xc0] sm:$0xff] %vm258_vm0, %v4212_v18  ;;  %v4215_v44 = vmax.f32 %v4183_v7, 0.0  ;;  %v4181_v36 = vadd.f32 %v4552_v24, %v4129_v38 }
 0x636   : > { %4247 = vst.msk [vmem:[%s6831_s19 + $0xd8] sm:$0xff] %vm258_vm0, %v4215_v44  ;;  %v4213_v46 = vmax.f32 %v4181_v36, 0.0 }
 0x638   : > { %4245 = vst.msk [vmem:[%s6831_s19 + $0xc8] sm:$0xff] %vm258_vm0, %v4213_v46 }
 0x65b   : > { %v4694_v25 = vpop.f32.mrf.mxu1 }
 0x65c   : > { %v4150_v34 = vadd.f32 %v4694_v25, %v6819_v22 }
 0x65d   : > { %v4141_v57 = vpop.f32.mrf.mxu1 }
 0x65e   : > { %v4186_v55 = vadd.f32 %v4557_v61, %v4150_v34  ;;  %v4142_v27 = vadd.f32 %v6819_v22, %v4141_v57 }
 0x65f   : > { %v4695_v32 = vpop.f32.mrf.mxu1 }
 0x660   : > { %v4218_v33 = vmax.f32 %v4186_v55, 0.0  ;;  %v4184_v2 = vadd.f32 %v4555_v48, %v4142_v27  ;;  %v4153_v39 = vadd.f32 %v4695_v32, %v6819_v22 }
 0x661   : > { %v4144_v52 = vpop.f32.mrf.mxu1 }
 0x662   : > { %4250 = vst.msk [vmem:[%s6831_s19 + $0xf0] sm:$0xff] %vm258_vm0, %v4218_v33  ;;  %v4216_v59 = vmax.f32 %v4184_v2, 0.0  ;;  %v4187_v47 = vadd.f32 %v4558_v41, %v4153_v39  ;;  %v4145_v6 = vadd.f32 %v6819_v22, %v4144_v52 }
 0x664   : > { %4248 = vst.msk [vmem:[%s6831_s19 + $0xe0] sm:$0xff] %vm258_vm0, %v4216_v59  ;;  %v4219_v1 = vmax.f32 %v4187_v47, 0.0  ;;  %v4185_v62 = vadd.f32 %v4556_v40, %v4145_v6 }
 0x666   : > { %4251 = vst.msk [vmem:[%s6831_s19 + $0xf8] sm:$0xff] %vm258_vm0, %v4219_v1  ;;  %v4217_v49 = vmax.f32 %v4185_v62, 0.0 }
 0x668   : > { %4249 = vst.msk [vmem:[%s6831_s19 + $0xe8] sm:$0xff] %vm258_vm0, %v4217_v49 }
 0x669 PF: > { %s15_s18 = sadd.s32 1, %s4728_s18  }
 0x66a   : > { %p12_p4 = scmp.ge.s32.totalorder %s15_s18, 4  }
 0x66c   :  { %14 = sbr.rel (!%p12_p4) target bundleno = 1 (0x1), region = 75 }

</bundles_post_ra>
